<compile_context>
chip_gen: v7x
topology: tpu7x:2x2x1
jax: 0.10.0
libtpu: 0.0.40
codegen_flags: <defaults>
</compile_context>

<pallas_src>
import numpy as np
import jax
import jax.numpy as jnp
from jax.experimental import pallas as pl
from jax.experimental.pallas import tpu as pltpu

C_IN = 3
KH = KW = 3
K_TAPS = C_IN * KH * KW      # 27
C_FEAT = 128                 # stand-in backbone conv channels
RESNET_DIM = 1024            # Res18RoIEncoder.fc expects 1024-d input features
EMBED_DIM = 256              # CNN_embed_dim

LANE = 128
THW_CAP = 1024               # max pixels per grid step (lane axis)
TT_CAP = 32                  # max frames per grid step


def _round_up(x, m):
    return ((x + m - 1) // m) * m


def _resident_spec(shape, index_map):
    """BlockSpec for operands resident across all grid steps (constant map).

    Requests single buffering so no dead second pipeline buffer is allocated;
    falls back to a plain BlockSpec if this JAX build lacks pipeline_mode.
    """
    try:
        return pl.BlockSpec(shape, index_map, pipeline_mode=pl.Buffered(1))
    except Exception:
        return pl.BlockSpec(shape, index_map)


def _im2col_taps(imgs_nchw):
    """(N, C, H, W) -> (N, 27, H*W): SAME zero-padded 3x3 taps, pixel axis last."""
    n, c, h, w = imgs_nchw.shape
    xp = jnp.pad(imgs_nchw, ((0, 0), (0, 0), (1, 1), (1, 1)))
    taps = [xp[:, :, dy:dy + h, dx:dx + w]
            for dy in range(KH) for dx in range(KW)]          # each (N, C, H, W)
    return jnp.concatenate(taps, axis=1).reshape(n, K_TAPS, h * w)


# ---------------------------------------------------------------------------
# Parameters (deterministic, synthetic stand-in backbone + the module's fc).
# ---------------------------------------------------------------------------
def init_params(key):
    k1, k2, k3 = jax.random.split(key, 3)
    return {
        # conv weight kept feature-major (C_FEAT, K_TAPS) for the in-kernel layout
        "wc": (jax.random.normal(k1, (C_FEAT, K_TAPS), jnp.float32) * 0.1
               ).astype(jnp.bfloat16),
        "bc": jnp.zeros((C_FEAT, 1), jnp.float32),
        "w1": (jax.random.normal(k2, (C_FEAT, RESNET_DIM), jnp.float32) * 0.05
               ).astype(jnp.bfloat16),
        "b1": jnp.full((1, RESNET_DIM), 0.01, jnp.float32),
        "w2": (jax.random.normal(k3, (RESNET_DIM, EMBED_DIM), jnp.float32) * 0.03
               ).astype(jnp.bfloat16),
        "b2": jnp.full((1, EMBED_DIM), 0.01, jnp.float32),
    }


# ---------------------------------------------------------------------------
# Fused encoder: backbone stand-in + fc + ReLU + pad mask, one pallas_call.
# ---------------------------------------------------------------------------
@jax.jit
def _forward_padded(x_5d, lengths, params):
    B, T, C, H, W = x_5d.shape
    HW = H * W
    N = B * T

    # --- XLA glue: one-pass im2col, bf16 *before* the 9x tap expansion -------
    imgs = x_5d.reshape(N, C, H, W).astype(jnp.bfloat16)
    patches = _im2col_taps(imgs).reshape(B, T, K_TAPS, HW)     # (B,T,27,HW) bf16

    # --- tiling ---------------------------------------------------------------
    TT = min(_round_up(T, 8), TT_CAP)                          # frames / step
    Tp = _round_up(T, TT)
    if B * (Tp // TT) < 2 and Tp >= 16:                        # megacore coverage
        TT = max(8, (Tp // 2) // 8 * 8)
        Tp = _round_up(T, TT)
    HWp0 = _round_up(HW, LANE)
    THW = min(HWp0, THW_CAP)                                   # pixels / step
    HWp = _round_up(HWp0, THW)
    n_h = HWp // THW
    needs_pix_mask = (HWp != HW)
    inv_hw = 1.0 / float(HW)

    if (Tp, HWp) != (T, HW):
        patches = jnp.pad(patches, ((0, 0), (0, Tp - T), (0, 0), (0, HWp - HW)))

    wc, bc = params["wc"], params["bc"]
    w1, b1 = params["w1"], params["b1"]
    w2, b2 = params["w2"], params["b2"]

    def kernel(lengths_ref,                     # SMEM scalar prefetch (B,)
               patch_ref,                       # (1, TT, 27, THW) bf16
               wc_ref, bc_ref,                  # (128, 27) bf16, (128, 1) f32
               w1_ref, b1_ref,                  # (128, 1024) bf16, (1, 1024) f32
               w2_ref, b2_ref,                  # (1024, 256) bf16, (1, 256) f32
               out_ref,                         # (1, TT, 256) f32
               pooled_acc):                     # VMEM scratch (128, TT) f32
        # Grid indices / scalar reads hoisted to the top level (never call
        # pl.program_id inside a pl.when body).
        b_idx = pl.program_id(0)
        t_idx = pl.program_id(1)
        h_idx = pl.program_id(2)
        len_b = lengths_ref[b_idx]

        @pl.when(h_idx == 0)
        def _init():
            pooled_acc[...] = jnp.zeros_like(pooled_acc)

        wc_v = wc_ref[...]                      # (128, 27) bf16
        bc_v = bc_ref[...]                      # (128, 1)  f32
        if needs_pix_mask:
            pix = h_idx * THW + jax.lax.broadcasted_iota(jnp.int32, (1, THW), 1)
            pix_mask = pix < HW

        # Stand-in backbone: per-frame 3x3 conv as a feature-major matmul
        # (128,27)x(27,THW) on the MXU, bias+ReLU on the VPU, then an f32
        # partial global-average-pool (lane reduction) accumulated in scratch.
        for t in range(TT):                     # static unroll, TT <= 32
            a = jnp.dot(wc_v, patch_ref[0, t],
                        preferred_element_type=jnp.float32)    # (128, THW) f32
            a = jnp.maximum(a + bc_v, 0.0)
            if needs_pix_mask:
                a = jnp.where(pix_mask, a, 0.0)
            pooled_acc[:, t:t + 1] += jnp.sum(a, axis=1, keepdims=True)

        @pl.when(h_idx == n_h - 1)              # n_h is a static Python constant
        def _epilogue():
            # 1/HW applied once; backbone head 128->1024 + ReLU, module fc
            # 1024->256 + ReLU, then the pad_sequence(padding_value=0) mask.
            x = (jnp.transpose(pooled_acc[...]) * inv_hw).astype(jnp.bfloat16)
            h1 = jnp.dot(x, w1_ref[...], preferred_element_type=jnp.float32)
            h1 = jnp.maximum(h1 + b1_ref[...], 0.0).astype(jnp.bfloat16)
            y = jnp.dot(h1, w2_ref[...], preferred_element_type=jnp.float32)
            y = jnp.maximum(y + b2_ref[...], 0.0)
            t_glob = t_idx * TT + jax.lax.broadcasted_iota(jnp.int32, (TT, 1), 0)
            y = jnp.where(t_glob < len_b, y, 0.0)
            out_ref[0] = y

    grid = (B, Tp // TT, n_h)
    out = pl.pallas_call(
        kernel,
        out_shape=jax.ShapeDtypeStruct((B, Tp, EMBED_DIM), jnp.float32),
        grid_spec=pltpu.PrefetchScalarGridSpec(
            num_scalar_prefetch=1,
            grid=grid,
            in_specs=[
                pl.BlockSpec((1, TT, K_TAPS, THW), lambda b, t, h, L: (b, t, 0, h)),
                _resident_spec((C_FEAT, K_TAPS), lambda b, t, h, L: (0, 0)),
                _resident_spec((C_FEAT, 1), lambda b, t, h, L: (0, 0)),
                _resident_spec((C_FEAT, RESNET_DIM), lambda b, t, h, L: (0, 0)),
                _resident_spec((1, RESNET_DIM), lambda b, t, h, L: (0, 0)),
                _resident_spec((RESNET_DIM, EMBED_DIM), lambda b, t, h, L: (0, 0)),
                _resident_spec((1, EMBED_DIM), lambda b, t, h, L: (0, 0)),
            ],
            out_specs=pl.BlockSpec((1, TT, EMBED_DIM), lambda b, t, h, L: (b, t, 0)),
            scratch_shapes=[pltpu.VMEM((C_FEAT, TT), jnp.float32)],
        ),
        compiler_params=pltpu.CompilerParams(
            # B and T tiles are parallel (megacore); the pixel axis is the
            # trailing reduction axis accumulating the pool sum in scratch.
            dimension_semantics=("parallel", "parallel", "arbitrary"),
            # Tiles above stay well under ~12 MiB, so this fits v7x (64 MiB/TC)
            # and leaves room to enlarge THW/TT on v5e/v6e (128 MiB physical).
            vmem_limit_bytes=48 * 1024 * 1024,
        ),
    )(lengths, patches, wc, bc, w1, b1, w2, b2)
    return out


def res18_roi_encoder_forward(x_5d, x_lengths, params):
    """Equivalent of Res18RoIEncoder.forward(x_5d, x_lengths).

    x_5d: (B, T, 3, H, W) float, x_lengths: host list of ints (len B).
    Returns (B, max(x_lengths), EMBED_DIM); padded timesteps are exactly zero.
    """
    lengths = jnp.asarray([int(l) for l in x_lengths], jnp.int32)
    t_max = int(max(int(l) for l in x_lengths))
    # Frames past max(x_lengths) would be fully masked anyway -> skip the work.
    out_padded = _forward_padded(x_5d[:, :t_max], lengths, params)
    return out_padded[:, :t_max, :]


# ---------------------------------------------------------------------------
# Pure-JAX reference (f32) for numerical checking.
# ---------------------------------------------------------------------------
def reference_forward(x_5d, x_lengths, params):
    B, T, C, H, W = x_5d.shape
    N = B * T
    HW = H * W
    imgs = x_5d.reshape(N, C, H, W).astype(jnp.float32)
    xp = jnp.pad(imgs, ((0, 0), (0, 0), (1, 1), (1, 1)))
    taps = [xp[:, :, dy:dy + H, dx:dx + W] for dy in range(KH) for dx in range(KW)]
    p = jnp.concatenate(taps, axis=1).reshape(N, K_TAPS, HW)   # (N, 27, HW)
    wc = params["wc"].astype(jnp.float32)                      # (128, 27)
    a = jnp.einsum("ck,nkp->ncp", wc, p) + params["bc"][None]
    a = jnp.maximum(a, 0.0)
    pooled = a.mean(axis=2)                                    # (N, 128)
    h = jnp.maximum(pooled @ params["w1"].astype(jnp.float32) + params["b1"], 0.0)
    y = jnp.maximum(h @ params["w2"].astype(jnp.float32) + params["b2"], 0.0)
    y = y.reshape(B, T, EMBED_DIM)
    lengths = jnp.asarray([int(l) for l in x_lengths])[:, None]
    mask = jnp.arange(T)[None, :] < lengths
    y = jnp.where(mask[:, :, None], y, 0.0)
    t_max = int(max(int(l) for l in x_lengths))
    return y[:, :t_max]


if __name__ == "__main__":
    key = jax.random.PRNGKey(0)
    k_params, k_x = jax.random.split(key)

    B, T, H, W = 2, 4, 16, 16
    x_5d = jax.random.normal(k_x, (B, T, C_IN, H, W), jnp.float32)
    x_lengths = [4, 2]

    params = init_params(k_params)
    out = res18_roi_encoder_forward(x_5d, x_lengths, params)
    out = jax.block_until_ready(out)

    t_max = max(x_lengths)
    assert out.shape == (B, t_max, EMBED_DIM), out.shape
    # pad_sequence(padding_value=0): padded timesteps of sequence 1 are zero
    assert float(jnp.abs(out[1, x_lengths[1]:, :]).max()) == 0.0
    # ReLU output must be non-negative
    assert float(out.min()) >= 0.0
    # numerics vs pure-JAX f32 reference (kernel uses bf16 weights/activations)
    ref = reference_forward(x_5d, x_lengths, params)
    np.testing.assert_allclose(np.asarray(out), np.asarray(ref),
                               rtol=1e-1, atol=5e-2)

    print("KERNEL_OK")
</pallas_src>

<mosaic_0001>
module attributes {stable_mosaic.version = 11 : i64} {
  func.func @kernel(%arg0: i32, %arg1: i32, %arg2: i32, %arg3: memref<2xi32, #tpu.memory_space<smem>>, %arg4: memref<1x8x27x256xbf16, #tpu.memory_space<vmem>>, %arg5: memref<128x27xbf16, #tpu.memory_space<vmem>>, %arg6: memref<128x1xf32, #tpu.memory_space<vmem>>, %arg7: memref<128x1024xbf16, #tpu.memory_space<vmem>>, %arg8: memref<1x1024xf32, #tpu.memory_space<vmem>>, %arg9: memref<1024x256xbf16, #tpu.memory_space<vmem>>, %arg10: memref<1x256xf32, #tpu.memory_space<vmem>>, %arg11: memref<1x8x256xf32, #tpu.memory_space<vmem>>, %arg12: memref<128x8xf32, #tpu.memory_space<vmem>>) attributes {dimension_semantics = [#tpu.dimension_semantics<parallel>, #tpu.dimension_semantics<parallel>, #tpu.dimension_semantics<arbitrary>], iteration_bounds = array<i64: 2, 1, 1>, scalar_prefetch = 1 : i64, scratch_operands = 1 : i64, tpu.core_type = #tpu.core_type<tc>, window_params = [{transform_indices = @transform_0, window_bounds = array<i64: 1, 8, 27, 256>}, {pipeline_mode = #tpu.pipeline_mode<synchronous>, transform_indices = @transform_1, window_bounds = array<i64: 128, 27>}, {pipeline_mode = #tpu.pipeline_mode<synchronous>, transform_indices = @transform_2, window_bounds = array<i64: 128, 1>}, {pipeline_mode = #tpu.pipeline_mode<synchronous>, transform_indices = @transform_3, window_bounds = array<i64: 128, 1024>}, {pipeline_mode = #tpu.pipeline_mode<synchronous>, transform_indices = @transform_4, window_bounds = array<i64: 1, 1024>}, {pipeline_mode = #tpu.pipeline_mode<synchronous>, transform_indices = @transform_5, window_bounds = array<i64: 1024, 256>}, {pipeline_mode = #tpu.pipeline_mode<synchronous>, transform_indices = @transform_6, window_bounds = array<i64: 1, 256>}, {transform_indices = @transform_7, window_bounds = array<i64: 1, 8, 256>}]} {
    %0 = arith.index_cast %arg0 : i32 to index
    %1 = memref.load %arg3[%0] : memref<2xi32, #tpu.memory_space<smem>>
    %c0_i32 = arith.constant 0 : i32
    %2 = arith.cmpi eq, %arg2, %c0_i32 : i32
    %3 = arith.extui %2 : i1 to i32
    %c0_i32_0 = arith.constant 0 : i32
    %4 = arith.cmpi ne, %3, %c0_i32_0 : i32
    scf.if %4 {
      %cst_86 = arith.constant 0.000000e+00 : f32
      %106 = vector.broadcast %cst_86 : f32 to vector<128x8xf32>
      %c0_87 = arith.constant 0 : index
      %c0_88 = arith.constant 0 : index
      %107 = vector.load %arg12[%c0_87, %c0_88] : memref<128x8xf32, #tpu.memory_space<vmem>>, vector<128x8xf32>
      tpu.vector_store %arg12[%c0_87, %c0_88], %106 {strides = array<i32>} : memref<128x8xf32, #tpu.memory_space<vmem>>, vector<128x8xf32>,
    } else {
    }
    %c0 = arith.constant 0 : index
    %c0_1 = arith.constant 0 : index
    %5 = vector.load %arg5[%c0, %c0_1] : memref<128x27xbf16, #tpu.memory_space<vmem>>, vector<128x27xbf16>
    %c0_2 = arith.constant 0 : index
    %c0_3 = arith.constant 0 : index
    %6 = vector.load %arg6[%c0_2, %c0_3] : memref<128x1xf32, #tpu.memory_space<vmem>>, vector<128x1xf32>
    %c0_4 = arith.constant 0 : index
    %c0_5 = arith.constant 0 : index
    %c0_6 = arith.constant 0 : index
    %c0_7 = arith.constant 0 : index
    %7 = vector.load %arg4[%c0_4, %c0_5, %c0_6, %c0_7] : memref<1x8x27x256xbf16, #tpu.memory_space<vmem>>, vector<1x1x27x256xbf16>
    %8 = vector.shape_cast %7 : vector<1x1x27x256xbf16> to vector<27x256xbf16>
    %cst = arith.constant dense<0.000000e+00> : vector<128x256xf32>
    %9 = tpu.matmul %5, %8, %cst {dimension_numbers = #tpu.dot_dimension_numbers<[1], [0], [0], [1], [0, 0, 1, 1], [], []>} : vector<128x27xbf16>, vector<27x256xbf16>, vector<128x256xf32> -> vector<128x256xf32>
    %10 = vector.broadcast %6 : vector<128x1xf32> to vector<128x256xf32>
    %11 = arith.addf %9, %10 : vector<128x256xf32>
    %cst_8 = arith.constant 0.000000e+00 : f32
    %12 = vector.broadcast %cst_8 : f32 to vector<128x256xf32>
    %13 = arith.maximumf %11, %12 : vector<128x256xf32>
    %c0_9 = arith.constant 0 : index
    %c0_10 = arith.constant 0 : index
    %14 = vector.load %arg12[%c0_9, %c0_10] : memref<128x8xf32, #tpu.memory_space<vmem>>, vector<128x1xf32>
    %cst_11 = arith.constant dense<0.000000e+00> : vector<128xf32>
    %15 = vector.multi_reduction <add>, %13, %cst_11 [1] : vector<128x256xf32> to vector<128xf32>
    %16 = vector.shape_cast %15 : vector<128xf32> to vector<128x1xf32>
    %17 = arith.addf %14, %16 : vector<128x1xf32>
    %c0_12 = arith.constant 0 : index
    %c0_13 = arith.constant 0 : index
    %18 = vector.load %arg12[%c0_12, %c0_13] : memref<128x8xf32, #tpu.memory_space<vmem>>, vector<128x1xf32>
    tpu.vector_store %arg12[%c0_12, %c0_13], %17 {strides = array<i32>} : memref<128x8xf32, #tpu.memory_space<vmem>>, vector<128x1xf32>,
    %c0_14 = arith.constant 0 : index
    %c1 = arith.constant 1 : index
    %c0_15 = arith.constant 0 : index
    %c0_16 = arith.constant 0 : index
    %19 = vector.load %arg4[%c0_14, %c1, %c0_15, %c0_16] : memref<1x8x27x256xbf16, #tpu.memory_space<vmem>>, vector<1x1x27x256xbf16>
    %20 = vector.shape_cast %19 : vector<1x1x27x256xbf16> to vector<27x256xbf16>
    %cst_17 = arith.constant dense<0.000000e+00> : vector<128x256xf32>
    %21 = tpu.matmul %5, %20, %cst_17 {dimension_numbers = #tpu.dot_dimension_numbers<[1], [0], [0], [1], [0, 0, 1, 1], [], []>} : vector<128x27xbf16>, vector<27x256xbf16>, vector<128x256xf32> -> vector<128x256xf32>
    %22 = vector.broadcast %6 : vector<128x1xf32> to vector<128x256xf32>
    %23 = arith.addf %21, %22 : vector<128x256xf32>
    %cst_18 = arith.constant 0.000000e+00 : f32
    %24 = vector.broadcast %cst_18 : f32 to vector<128x256xf32>
    %25 = arith.maximumf %23, %24 : vector<128x256xf32>
    %c0_19 = arith.constant 0 : index
    %c1_20 = arith.constant 1 : index
    %26 = vector.load %arg12[%c0_19, %c1_20] : memref<128x8xf32, #tpu.memory_space<vmem>>, vector<128x1xf32>
    %cst_21 = arith.constant dense<0.000000e+00> : vector<128xf32>
    %27 = vector.multi_reduction <add>, %25, %cst_21 [1] : vector<128x256xf32> to vector<128xf32>
    %28 = vector.shape_cast %27 : vector<128xf32> to vector<128x1xf32>
    %29 = arith.addf %26, %28 : vector<128x1xf32>
    %c0_22 = arith.constant 0 : index
    %c1_23 = arith.constant 1 : index
    %30 = vector.load %arg12[%c0_22, %c1_23] : memref<128x8xf32, #tpu.memory_space<vmem>>, vector<128x1xf32>
    tpu.vector_store %arg12[%c0_22, %c1_23], %29 {strides = array<i32>} : memref<128x8xf32, #tpu.memory_space<vmem>>, vector<128x1xf32>,
    %c0_24 = arith.constant 0 : index
    %c2 = arith.constant 2 : index
    %c0_25 = arith.constant 0 : index
    %c0_26 = arith.constant 0 : index
    %31 = vector.load %arg4[%c0_24, %c2, %c0_25, %c0_26] : memref<1x8x27x256xbf16, #tpu.memory_space<vmem>>, vector<1x1x27x256xbf16>
    %32 = vector.shape_cast %31 : vector<1x1x27x256xbf16> to vector<27x256xbf16>
    %cst_27 = arith.constant dense<0.000000e+00> : vector<128x256xf32>
    %33 = tpu.matmul %5, %32, %cst_27 {dimension_numbers = #tpu.dot_dimension_numbers<[1], [0], [0], [1], [0, 0, 1, 1], [], []>} : vector<128x27xbf16>, vector<27x256xbf16>, vector<128x256xf32> -> vector<128x256xf32>
    %34 = vector.broadcast %6 : vector<128x1xf32> to vector<128x256xf32>
    %35 = arith.addf %33, %34 : vector<128x256xf32>
    %cst_28 = arith.constant 0.000000e+00 : f32
    %36 = vector.broadcast %cst_28 : f32 to vector<128x256xf32>
    %37 = arith.maximumf %35, %36 : vector<128x256xf32>
    %c0_29 = arith.constant 0 : index
    %c2_30 = arith.constant 2 : index
    %38 = vector.load %arg12[%c0_29, %c2_30] : memref<128x8xf32, #tpu.memory_space<vmem>>, vector<128x1xf32>
    %cst_31 = arith.constant dense<0.000000e+00> : vector<128xf32>
    %39 = vector.multi_reduction <add>, %37, %cst_31 [1] : vector<128x256xf32> to vector<128xf32>
    %40 = vector.shape_cast %39 : vector<128xf32> to vector<128x1xf32>
    %41 = arith.addf %38, %40 : vector<128x1xf32>
    %c0_32 = arith.constant 0 : index
    %c2_33 = arith.constant 2 : index
    %42 = vector.load %arg12[%c0_32, %c2_33] : memref<128x8xf32, #tpu.memory_space<vmem>>, vector<128x1xf32>
    tpu.vector_store %arg12[%c0_32, %c2_33], %41 {strides = array<i32>} : memref<128x8xf32, #tpu.memory_space<vmem>>, vector<128x1xf32>,
    %c0_34 = arith.constant 0 : index
    %c3 = arith.constant 3 : index
    %c0_35 = arith.constant 0 : index
    %c0_36 = arith.constant 0 : index
    %43 = vector.load %arg4[%c0_34, %c3, %c0_35, %c0_36] : memref<1x8x27x256xbf16, #tpu.memory_space<vmem>>, vector<1x1x27x256xbf16>
    %44 = vector.shape_cast %43 : vector<1x1x27x256xbf16> to vector<27x256xbf16>
    %cst_37 = arith.constant dense<0.000000e+00> : vector<128x256xf32>
    %45 = tpu.matmul %5, %44, %cst_37 {dimension_numbers = #tpu.dot_dimension_numbers<[1], [0], [0], [1], [0, 0, 1, 1], [], []>} : vector<128x27xbf16>, vector<27x256xbf16>, vector<128x256xf32> -> vector<128x256xf32>
    %46 = vector.broadcast %6 : vector<128x1xf32> to vector<128x256xf32>
    %47 = arith.addf %45, %46 : vector<128x256xf32>
    %cst_38 = arith.constant 0.000000e+00 : f32
    %48 = vector.broadcast %cst_38 : f32 to vector<128x256xf32>
    %49 = arith.maximumf %47, %48 : vector<128x256xf32>
    %c0_39 = arith.constant 0 : index
    %c3_40 = arith.constant 3 : index
    %50 = vector.load %arg12[%c0_39, %c3_40] : memref<128x8xf32, #tpu.memory_space<vmem>>, vector<128x1xf32>
    %cst_41 = arith.constant dense<0.000000e+00> : vector<128xf32>
    %51 = vector.multi_reduction <add>, %49, %cst_41 [1] : vector<128x256xf32> to vector<128xf32>
    %52 = vector.shape_cast %51 : vector<128xf32> to vector<128x1xf32>
    %53 = arith.addf %50, %52 : vector<128x1xf32>
    %c0_42 = arith.constant 0 : index
    %c3_43 = arith.constant 3 : index
    %54 = vector.load %arg12[%c0_42, %c3_43] : memref<128x8xf32, #tpu.memory_space<vmem>>, vector<128x1xf32>
    tpu.vector_store %arg12[%c0_42, %c3_43], %53 {strides = array<i32>} : memref<128x8xf32, #tpu.memory_space<vmem>>, vector<128x1xf32>,
    %c0_44 = arith.constant 0 : index
    %c4 = arith.constant 4 : index
    %c0_45 = arith.constant 0 : index
    %c0_46 = arith.constant 0 : index
    %55 = vector.load %arg4[%c0_44, %c4, %c0_45, %c0_46] : memref<1x8x27x256xbf16, #tpu.memory_space<vmem>>, vector<1x1x27x256xbf16>
    %56 = vector.shape_cast %55 : vector<1x1x27x256xbf16> to vector<27x256xbf16>
    %cst_47 = arith.constant dense<0.000000e+00> : vector<128x256xf32>
    %57 = tpu.matmul %5, %56, %cst_47 {dimension_numbers = #tpu.dot_dimension_numbers<[1], [0], [0], [1], [0, 0, 1, 1], [], []>} : vector<128x27xbf16>, vector<27x256xbf16>, vector<128x256xf32> -> vector<128x256xf32>
    %58 = vector.broadcast %6 : vector<128x1xf32> to vector<128x256xf32>
    %59 = arith.addf %57, %58 : vector<128x256xf32>
    %cst_48 = arith.constant 0.000000e+00 : f32
    %60 = vector.broadcast %cst_48 : f32 to vector<128x256xf32>
    %61 = arith.maximumf %59, %60 : vector<128x256xf32>
    %c0_49 = arith.constant 0 : index
    %c4_50 = arith.constant 4 : index
    %62 = vector.load %arg12[%c0_49, %c4_50] : memref<128x8xf32, #tpu.memory_space<vmem>>, vector<128x1xf32>
    %cst_51 = arith.constant dense<0.000000e+00> : vector<128xf32>
    %63 = vector.multi_reduction <add>, %61, %cst_51 [1] : vector<128x256xf32> to vector<128xf32>
    %64 = vector.shape_cast %63 : vector<128xf32> to vector<128x1xf32>
    %65 = arith.addf %62, %64 : vector<128x1xf32>
    %c0_52 = arith.constant 0 : index
    %c4_53 = arith.constant 4 : index
    %66 = vector.load %arg12[%c0_52, %c4_53] : memref<128x8xf32, #tpu.memory_space<vmem>>, vector<128x1xf32>
    tpu.vector_store %arg12[%c0_52, %c4_53], %65 {strides = array<i32>} : memref<128x8xf32, #tpu.memory_space<vmem>>, vector<128x1xf32>,
    %c0_54 = arith.constant 0 : index
    %c5 = arith.constant 5 : index
    %c0_55 = arith.constant 0 : index
    %c0_56 = arith.constant 0 : index
    %67 = vector.load %arg4[%c0_54, %c5, %c0_55, %c0_56] : memref<1x8x27x256xbf16, #tpu.memory_space<vmem>>, vector<1x1x27x256xbf16>
    %68 = vector.shape_cast %67 : vector<1x1x27x256xbf16> to vector<27x256xbf16>
    %cst_57 = arith.constant dense<0.000000e+00> : vector<128x256xf32>
    %69 = tpu.matmul %5, %68, %cst_57 {dimension_numbers = #tpu.dot_dimension_numbers<[1], [0], [0], [1], [0, 0, 1, 1], [], []>} : vector<128x27xbf16>, vector<27x256xbf16>, vector<128x256xf32> -> vector<128x256xf32>
    %70 = vector.broadcast %6 : vector<128x1xf32> to vector<128x256xf32>
    %71 = arith.addf %69, %70 : vector<128x256xf32>
    %cst_58 = arith.constant 0.000000e+00 : f32
    %72 = vector.broadcast %cst_58 : f32 to vector<128x256xf32>
    %73 = arith.maximumf %71, %72 : vector<128x256xf32>
    %c0_59 = arith.constant 0 : index
    %c5_60 = arith.constant 5 : index
    %74 = vector.load %arg12[%c0_59, %c5_60] : memref<128x8xf32, #tpu.memory_space<vmem>>, vector<128x1xf32>
    %cst_61 = arith.constant dense<0.000000e+00> : vector<128xf32>
    %75 = vector.multi_reduction <add>, %73, %cst_61 [1] : vector<128x256xf32> to vector<128xf32>
    %76 = vector.shape_cast %75 : vector<128xf32> to vector<128x1xf32>
    %77 = arith.addf %74, %76 : vector<128x1xf32>
    %c0_62 = arith.constant 0 : index
    %c5_63 = arith.constant 5 : index
    %78 = vector.load %arg12[%c0_62, %c5_63] : memref<128x8xf32, #tpu.memory_space<vmem>>, vector<128x1xf32>
    tpu.vector_store %arg12[%c0_62, %c5_63], %77 {strides = array<i32>} : memref<128x8xf32, #tpu.memory_space<vmem>>, vector<128x1xf32>,
    %c0_64 = arith.constant 0 : index
    %c6 = arith.constant 6 : index
    %c0_65 = arith.constant 0 : index
    %c0_66 = arith.constant 0 : index
    %79 = vector.load %arg4[%c0_64, %c6, %c0_65, %c0_66] : memref<1x8x27x256xbf16, #tpu.memory_space<vmem>>, vector<1x1x27x256xbf16>
    %80 = vector.shape_cast %79 : vector<1x1x27x256xbf16> to vector<27x256xbf16>
    %cst_67 = arith.constant dense<0.000000e+00> : vector<128x256xf32>
    %81 = tpu.matmul %5, %80, %cst_67 {dimension_numbers = #tpu.dot_dimension_numbers<[1], [0], [0], [1], [0, 0, 1, 1], [], []>} : vector<128x27xbf16>, vector<27x256xbf16>, vector<128x256xf32> -> vector<128x256xf32>
    %82 = vector.broadcast %6 : vector<128x1xf32> to vector<128x256xf32>
    %83 = arith.addf %81, %82 : vector<128x256xf32>
    %cst_68 = arith.constant 0.000000e+00 : f32
    %84 = vector.broadcast %cst_68 : f32 to vector<128x256xf32>
    %85 = arith.maximumf %83, %84 : vector<128x256xf32>
    %c0_69 = arith.constant 0 : index
    %c6_70 = arith.constant 6 : index
    %86 = vector.load %arg12[%c0_69, %c6_70] : memref<128x8xf32, #tpu.memory_space<vmem>>, vector<128x1xf32>
    %cst_71 = arith.constant dense<0.000000e+00> : vector<128xf32>
    %87 = vector.multi_reduction <add>, %85, %cst_71 [1] : vector<128x256xf32> to vector<128xf32>
    %88 = vector.shape_cast %87 : vector<128xf32> to vector<128x1xf32>
    %89 = arith.addf %86, %88 : vector<128x1xf32>
    %c0_72 = arith.constant 0 : index
    %c6_73 = arith.constant 6 : index
    %90 = vector.load %arg12[%c0_72, %c6_73] : memref<128x8xf32, #tpu.memory_space<vmem>>, vector<128x1xf32>
    tpu.vector_store %arg12[%c0_72, %c6_73], %89 {strides = array<i32>} : memref<128x8xf32, #tpu.memory_space<vmem>>, vector<128x1xf32>,
    %c0_74 = arith.constant 0 : index
    %c7 = arith.constant 7 : index
    %c0_75 = arith.constant 0 : index
    %c0_76 = arith.constant 0 : index
    %91 = vector.load %arg4[%c0_74, %c7, %c0_75, %c0_76] : memref<1x8x27x256xbf16, #tpu.memory_space<vmem>>, vector<1x1x27x256xbf16>
    %92 = vector.shape_cast %91 : vector<1x1x27x256xbf16> to vector<27x256xbf16>
    %cst_77 = arith.constant dense<0.000000e+00> : vector<128x256xf32>
    %93 = tpu.matmul %5, %92, %cst_77 {dimension_numbers = #tpu.dot_dimension_numbers<[1], [0], [0], [1], [0, 0, 1, 1], [], []>} : vector<128x27xbf16>, vector<27x256xbf16>, vector<128x256xf32> -> vector<128x256xf32>
    %94 = vector.broadcast %6 : vector<128x1xf32> to vector<128x256xf32>
    %95 = arith.addf %93, %94 : vector<128x256xf32>
    %cst_78 = arith.constant 0.000000e+00 : f32
    %96 = vector.broadcast %cst_78 : f32 to vector<128x256xf32>
    %97 = arith.maximumf %95, %96 : vector<128x256xf32>
    %c0_79 = arith.constant 0 : index
    %c7_80 = arith.constant 7 : index
    %98 = vector.load %arg12[%c0_79, %c7_80] : memref<128x8xf32, #tpu.memory_space<vmem>>, vector<128x1xf32>
    %cst_81 = arith.constant dense<0.000000e+00> : vector<128xf32>
    %99 = vector.multi_reduction <add>, %97, %cst_81 [1] : vector<128x256xf32> to vector<128xf32>
    %100 = vector.shape_cast %99 : vector<128xf32> to vector<128x1xf32>
    %101 = arith.addf %98, %100 : vector<128x1xf32>
    %c0_82 = arith.constant 0 : index
    %c7_83 = arith.constant 7 : index
    %102 = vector.load %arg12[%c0_82, %c7_83] : memref<128x8xf32, #tpu.memory_space<vmem>>, vector<128x1xf32>
    tpu.vector_store %arg12[%c0_82, %c7_83], %101 {strides = array<i32>} : memref<128x8xf32, #tpu.memory_space<vmem>>, vector<128x1xf32>,
    %c0_i32_84 = arith.constant 0 : i32
    %103 = arith.cmpi eq, %arg2, %c0_i32_84 : i32
    %104 = arith.extui %103 : i1 to i32
    %c0_i32_85 = arith.constant 0 : i32
    %105 = arith.cmpi ne, %104, %c0_i32_85 : i32
    scf.if %105 {
      %c0_86 = arith.constant 0 : index
      %c0_87 = arith.constant 0 : index
      %106 = vector.load %arg12[%c0_86, %c0_87] : memref<128x8xf32, #tpu.memory_space<vmem>>, vector<128x8xf32>
      %107 = tpu.transpose %106, [1, 0] : vector<128x8xf32> -> vector<8x128xf32>
      %cst_88 = arith.constant 3.906250e-03 : f32
      %108 = vector.broadcast %cst_88 : f32 to vector<8x128xf32>
      %109 = arith.mulf %107, %108 : vector<8x128xf32>
      %110 = arith.truncf %109 : vector<8x128xf32> to vector<8x128xbf16>
      %c0_89 = arith.constant 0 : index
      %c0_90 = arith.constant 0 : index
      %111 = vector.load %arg7[%c0_89, %c0_90] : memref<128x1024xbf16, #tpu.memory_space<vmem>>, vector<128x1024xbf16>
      %cst_91 = arith.constant dense<0.000000e+00> : vector<8x1024xf32>
      %112 = tpu.matmul %110, %111, %cst_91 {dimension_numbers = #tpu.dot_dimension_numbers<[1], [0], [0], [1], [0, 0, 1, 1], [], []>} : vector<8x128xbf16>, vector<128x1024xbf16>, vector<8x1024xf32> -> vector<8x1024xf32>
      %c0_92 = arith.constant 0 : index
      %c0_93 = arith.constant 0 : index
      %113 = vector.load %arg8[%c0_92, %c0_93] : memref<1x1024xf32, #tpu.memory_space<vmem>>, vector<1x1024xf32>
      %114 = vector.broadcast %113 : vector<1x1024xf32> to vector<8x1024xf32>
      %115 = arith.addf %112, %114 : vector<8x1024xf32>
      %cst_94 = arith.constant 0.000000e+00 : f32
      %116 = vector.broadcast %cst_94 : f32 to vector<8x1024xf32>
      %117 = arith.maximumf %115, %116 : vector<8x1024xf32>
      %118 = arith.truncf %117 : vector<8x1024xf32> to vector<8x1024xbf16>
      %c0_95 = arith.constant 0 : index
      %c0_96 = arith.constant 0 : index
      %119 = vector.load %arg9[%c0_95, %c0_96] : memref<1024x256xbf16, #tpu.memory_space<vmem>>, vector<1024x256xbf16>
      %cst_97 = arith.constant dense<0.000000e+00> : vector<8x256xf32>
      %120 = tpu.matmul %118, %119, %cst_97 {dimension_numbers = #tpu.dot_dimension_numbers<[1], [0], [0], [1], [0, 0, 1, 1], [], []>} : vector<8x1024xbf16>, vector<1024x256xbf16>, vector<8x256xf32> -> vector<8x256xf32>
      %c0_98 = arith.constant 0 : index
      %c0_99 = arith.constant 0 : index
      %121 = vector.load %arg10[%c0_98, %c0_99] : memref<1x256xf32, #tpu.memory_space<vmem>>, vector<1x256xf32>
      %122 = vector.broadcast %121 : vector<1x256xf32> to vector<8x256xf32>
      %123 = arith.addf %120, %122 : vector<8x256xf32>
      %cst_100 = arith.constant 0.000000e+00 : f32
      %124 = vector.broadcast %cst_100 : f32 to vector<8x256xf32>
      %125 = arith.maximumf %123, %124 : vector<8x256xf32>
      %c8_i32 = arith.constant 8 : i32
      %126 = arith.muli %arg1, %c8_i32 : i32
      %127 = tpu.iota {dimensions = array<i32: 0>} : vector<8x1xi32>
      %128 = vector.broadcast %126 : i32 to vector<8x1xi32>
      %129 = arith.addi %128, %127 : vector<8x1xi32>
      %130 = vector.broadcast %1 : i32 to vector<8x1xi32>
      %131 = arith.cmpi slt, %129, %130 : vector<8x1xi32>
      %cst_101 = arith.constant 0.000000e+00 : f32
      %132 = vector.shape_cast %131 : vector<8x1xi1> to vector<8x1xi1>
      %133 = vector.broadcast %132 : vector<8x1xi1> to vector<8x256xi1>
      %134 = vector.broadcast %cst_101 : f32 to vector<8x256xf32>
      %135 = arith.select %133, %125, %134 : vector<8x256xi1>, vector<8x256xf32>
      %c0_102 = arith.constant 0 : index
      %c0_103 = arith.constant 0 : index
      %c0_104 = arith.constant 0 : index
      %136 = vector.load %arg11[%c0_102, %c0_103, %c0_104] : memref<1x8x256xf32, #tpu.memory_space<vmem>>, vector<1x8x256xf32>
      %137 = vector.shape_cast %136 : vector<1x8x256xf32> to vector<8x256xf32>
      %138 = vector.shape_cast %135 : vector<8x256xf32> to vector<1x8x256xf32>
      tpu.vector_store %arg11[%c0_102, %c0_103, %c0_104], %138 {strides = array<i32>} : memref<1x8x256xf32, #tpu.memory_space<vmem>>, vector<1x8x256xf32>,
    } else {
    }
    return
  }
  func.func @transform_0(%arg0: i32, %arg1: i32, %arg2: i32, %arg3: memref<2xi32, #tpu.memory_space<smem>>) -> (i32, i32, i32, i32) {
    %c0_i32 = arith.constant 0 : i32
    %c0_i32_0 = arith.constant 0 : i32
    return %arg0, %arg1, %c0_i32, %arg2 : i32, i32, i32, i32
  }
  func.func @transform_1(%arg0: i32, %arg1: i32, %arg2: i32, %arg3: memref<2xi32, #tpu.memory_space<smem>>) -> (i32, i32) {
    %c0_i32 = arith.constant 0 : i32
    %c0_i32_0 = arith.constant 0 : i32
    %c0_i32_1 = arith.constant 0 : i32
    return %c0_i32, %c0_i32_0 : i32, i32
  }
  func.func @transform_2(%arg0: i32, %arg1: i32, %arg2: i32, %arg3: memref<2xi32, #tpu.memory_space<smem>>) -> (i32, i32) {
    %c0_i32 = arith.constant 0 : i32
    %c0_i32_0 = arith.constant 0 : i32
    %c0_i32_1 = arith.constant 0 : i32
    return %c0_i32, %c0_i32_0 : i32, i32
  }
  func.func @transform_3(%arg0: i32, %arg1: i32, %arg2: i32, %arg3: memref<2xi32, #tpu.memory_space<smem>>) -> (i32, i32) {
    %c0_i32 = arith.constant 0 : i32
    %c0_i32_0 = arith.constant 0 : i32
    %c0_i32_1 = arith.constant 0 : i32
    return %c0_i32, %c0_i32_0 : i32, i32
  }
  func.func @transform_4(%arg0: i32, %arg1: i32, %arg2: i32, %arg3: memref<2xi32, #tpu.memory_space<smem>>) -> (i32, i32) {
    %c0_i32 = arith.constant 0 : i32
    %c0_i32_0 = arith.constant 0 : i32
    %c0_i32_1 = arith.constant 0 : i32
    return %c0_i32, %c0_i32_0 : i32, i32
  }
  func.func @transform_5(%arg0: i32, %arg1: i32, %arg2: i32, %arg3: memref<2xi32, #tpu.memory_space<smem>>) -> (i32, i32) {
    %c0_i32 = arith.constant 0 : i32
    %c0_i32_0 = arith.constant 0 : i32
    %c0_i32_1 = arith.constant 0 : i32
    return %c0_i32, %c0_i32_0 : i32, i32
  }
  func.func @transform_6(%arg0: i32, %arg1: i32, %arg2: i32, %arg3: memref<2xi32, #tpu.memory_space<smem>>) -> (i32, i32) {
    %c0_i32 = arith.constant 0 : i32
    %c0_i32_0 = arith.constant 0 : i32
    %c0_i32_1 = arith.constant 0 : i32
    return %c0_i32, %c0_i32_0 : i32, i32
  }
  func.func @transform_7(%arg0: i32, %arg1: i32, %arg2: i32, %arg3: memref<2xi32, #tpu.memory_space<smem>>) -> (i32, i32, i32) {
    %c0_i32 = arith.constant 0 : i32
    %c0_i32_0 = arith.constant 0 : i32
    return %arg0, %arg1, %c0_i32 : i32, i32, i32
  }
}

</mosaic_0001>

<bundles_post_ra>
// kernel: _forward_padded.1
= control target key start
LH: loop header
LB: loop body
LE: loop exit
PB: predicated region body
PF: predicated region fallthrough
CT: control target
= control target key end

     0   :  { %s6945_s0 = inlined_call_operand.vmem [shape: s32[2], index: 0, kind: input, shape index: {}]   ;;  %s6946_s1 = inlined_call_operand.vmem [shape: bf16[2,8,27,256], index: 1, kind: input, shape index: {}]   ;;  %s6947_s2 = inlined_call_operand.vmem [shape: bf16[128,27], index: 2, kind: input, shape index: {}]   ;;  %s6948_s3 = inlined_call_operand.vmem [shape: f32[128,1], index: 3, kind: input, shape index: {}]   ;;  %s6949_s4 = inlined_call_operand.vmem [shape: bf16[128,1024], index: 4, kind: input, shape index: {}]   ;;  %s6950_s5 = inlined_call_operand.vmem [shape: f32[1,1024], index: 5, kind: input, shape index: {}]   ;;  %s6951_s6 = inlined_call_operand.vmem [shape: bf16[1024,256], index: 6, kind: input, shape index: {}]   ;;  %s6952_s7 = inlined_call_operand.vmem [shape: f32[1,256], index: 7, kind: input, shape index: {}]   ;;  %s6953_s8 = inlined_call_operand.hbm [shape: f32[2,8,256], index: 8, kind: output, shape index: {}]  }
   0x1   :  { %s13_s29 = sshll.u32 %s6945_s0, 4  ;;  %s14_s29 = int_to_ptr.vmem [resolvable:$true] %s13_s29 }
   0x2   :  { %s5101_s30 = scalar_lea.vmem %s14_s29, 16  ;;  %p5106_p1 = scmp.lt.s32.totalorder %s14_s29, %s14_s29 }
   0x3   :  { %p5102_p0 = scmp.ne.s32.totalorder %s14_s29, %s5101_s30  ;;  %p5107_p2 = scmp.lt.s32.totalorder %s5101_s30, %s5101_s30 }
   0x5   :  { %p5108_p3 = por %p5107_p2, %p5106_p1 }
   0x7   :  { %p5109_p4 = pnand %p5108_p3, %p5102_p0 }
   0x9   :  { %5112 = shalt.err (!%p5109_p4)  }
   0xa   :  { %s5195_s9 = smov [#allocation4]  }
   0xb   :  { %16 = dma.vmem_to_smem %s14_s29, 16, %s5195_s9, [#allocation3] }
   0xc   :  { %5165 = dma.done.wait [#allocation3], 16 }
   0xd   :  { %5166 = vsyncadd [#allocation3], 4294967280 }
   0xe   :  { %18 = sfence }
   0xf   :  { %19 = vsyncpa [#allocation6], 0 }
  0x10   :  { %21 = vsyncpa [#allocation6 + $0x1], 0  ;;  %s5248_s10 = smov 0   ;;  %s5250_s11 = smov 0  }
  0x11   :  { %s5252_s0 = smov 0   ;;  %s5254_s12 = smov 0  }
  0x12   :  { %s5256_s13 = smov 0   ;;  %s5258_s14 = smov 0  }
  0x13 LB: > { %s4431_s15 = sadd.s32 4294967295, %s5193_s14   ;;  %s4432_s16 = sadd.s32 4294967294, %s5193_s14   ;;  %s5193_s14 = sphi %s5258_s14, %s27_s14   ;;  %s5189_s13 = sphi %s5256_s13, %s6971_s13   ;;  %s5185_s12 = sphi %s5254_s12, %s6970_s12   ;;  %s5181_s0 = sphi %s5252_s0, %s6969_s0   ;;  %s5177_s11 = sphi %s5250_s11, %s6968_s11   ;;  %s5173_s10 = sphi %s5248_s10, %s6967_s10  }
  0x14   : > { %s46_s17 = sadd.s32 1, %s5189_s13  ;;  %s211_s18 = sadd.s32 1, %s5181_s0 }
  0x15   : > { %p48_p5 = scmp.ge.s32.totalorder %s46_s17, 2  ;;  %p221_p6 = scmp.ne.s32.totalorder %s5181_s0, %s5177_s11 }
  0x16   : > { %p222_p7 = scmp.eq.s32.totalorder %s4431_s15, 1  ;;  %p227_p8 = scmp.ne.s32.totalorder %s5177_s11, %s5173_s10 }
  0x17   : > { %s6973_s17 = smov (%p48_p5, %s46_s17), 0  ;;  %p228_p10 = scmp.eq.s32.totalorder %s4432_s16, 1 }
  0x18   : > { %p5288_p9 = por %p222_p7, %p221_p6  ;;  %s206_s20 = ssub.s32 %s5189_s13, %s6973_s17 }
  0x19   : > { %p4435_p11 = scmp.ge.s32.totalorder %s5193_s14, 1  ;;  %p209_p12 = scmp.eq.s32.totalorder %s206_s20, 0 }
  0x1a   : > { %p5295_p13 = por %p228_p10, %p227_p8  ;;  %p283_p0 = scmp.lt.s32.totalorder %s5193_s14, 3 }
  0x1b   : > { %s5301_s22 = scalar_select %p209_p12, %s5181_s0, %s211_s18  }
  0x1c   : > { %p284_p1 = pnand %p4435_p11, %p283_p0 }
  0x1e   : > { %287 = sbr.rel (%p284_p1) target bundleno = 1520 (0x5f0), region = 48 }
  0x25   : > { %p326_p2 = scmp.lt.s32.totalorder %s5185_s12, 1  ;;  %vm562_vm0 = vcmask 1044480   ;;  %v6954_v0 = vmov 0   ;;  %vm563_vm1 = vcmask 1045504   ;;  %v5197_v1 = vmov 65535   ;;  %v5332_v17 = vld [vmem:[%s6947_s2] sm:$0xff]  }
  0x26   : > { %604 = vmatprep.mubr.bf16.mxu1 %v6954_v0  ;;  %1688 = vmatprep.mubr.bf16.mxu0 %v6954_v0  ;;  %v564_v2 = vsel %vm562_vm0, 4294967295, %v5197_v1  ;;  %vm537_vm2 = vcmask 220160   ;;  %v5352_v27 = vld [vmem:[%s6947_s2 + $0x8] sm:$0xff]   ;;  %v379_v30 = vld [vmem:[%s6948_s3] sm:$0xff]  ;;  %v381_v31 = vld [vmem:[%s6948_s3 + $0x10] sm:$0xff]  ;;  %vm346_vm3 = vcmask 64512  }
  0x27   : > { %s327_s23 = scalar_select %p326_p2, %s5185_s12, 1  ;;  %4843 = vset.pattern.permute.xlu0 %v6954_v0  ;;  %4844 = vset.pattern.permute.xlu1 %v6954_v0  ;;  %v5318_v7 = vsel %vm563_vm1, %v564_v2, 0  ;;  %v380_v33 = vld [vmem:[%s6948_s3 + $0x8] sm:$0xff]  ;;  %v382_v34 = vld [vmem:[%s6948_s3 + $0x18] sm:$0xff]  ;;  %v5378_v35 = vld [vmem:[%s6947_s2 + $0x10] sm:$0xff]   ;;  %vm797_vm4 = vcmask 7168  }
  0x28   : > { %401 = vperm.xlu0 %4843, %v379_v30   ;;  %411 = vperm.xlu1 %4844, %v381_v31   ;;  %v383_v36 = vld [vmem:[%s6948_s3 + $0x20] sm:$0xff]  ;;  %v384_v37 = vld [vmem:[%s6948_s3 + $0x28] sm:$0xff]  ;;  %v385_v38 = vld [vmem:[%s6948_s3 + $0x30] sm:$0xff]  ;;  %vm1068_vm5 = vcmask 15368   ;;  %vm1339_vm6 = vcmask 23568   ;;  %vm1610_vm7 = vcmask 31768  }
  0x29   : > { %s4768_s24 = sshll.u32 %s327_s23, 8  ;;  %v386_v39 = vld [vmem:[%s6948_s3 + $0x38] sm:$0xff]  ;;  %v387_v40 = vld [vmem:[%s6948_s3 + $0x40] sm:$0xff]  ;;  %v388_v42 = vld [vmem:[%s6948_s3 + $0x48] sm:$0xff]  ;;  %vm1881_vm8 = vcmask 39968   ;;  %vm2152_vm9 = vcmask 48168  }
  0x2a   : > { %s5312_s27 = scalar_lea.vmem %s6946_s1, %s4768_s24  ;;  %v5404_v41 = vld [vmem:[%s6947_s2 + $0x18] sm:$0xff]   ;;  %v389_v43 = vld [vmem:[%s6948_s3 + $0x50] sm:$0xff]  ;;  %v391_v45 = vld [vmem:[%s6948_s3 + $0x60] sm:$0xff]  ;;  %vm2423_vm10 = vcmask 56368   ;;  %vm2694_vm11 = vcmask 64568   ;;  %s341_s26 = sld [smem:[#allocation4 + %s5185_s12]] }
  0x2b   : > { %v4845_v3 = vld [vmem:[%s5312_s27 + $0x4] ss:$8 sps:$4 sm:$0xff]   ;;  %v4849_v5 = vld [vmem:[%s5312_s27] ss:$8 sps:$4 sm:$0xff]   ;;  %v390_v44 = vld [vmem:[%s6948_s3 + $0x58] sm:$0xff]  ;;  %s4769_s9 = sshll.u32 %s5185_s12, 8 }
  0x2c   : > { %v4847_v4 = vld [vmem:[%s5312_s27 + $0x84] ss:$8 sps:$4 sm:$0xff]   ;;  %572 = vmatprep.subr.bf16.mxu1 %v4845_v3  ;;  %v4850_v6 = vld [vmem:[%s5312_s27 + $0x80] ss:$8 sps:$4 sm:$0xff]   ;;  %406 = vperm.xlu0 %4843, %v380_v33   ;;  %v393_v48 = vld [vmem:[%s6948_s3 + $0x70] sm:$0xff]  ;;  %s6898_s23 = scalar_lea.hbm %s6953_s8, %s4769_s9  ;;  %s5199_s25 = smov [#allocation5]  }
  0x2d   : > { %1656 = vmatprep.subr.bf16.mxu0 %v4847_v4  ;;  %v4851_v8 = vld [vmem:[%s5312_s27 + $0x14] ss:$8 sps:$4 sm:$0x3f]   ;;  %573 = vmatpush1.bf16.msra.mxu1 %v4849_v5  ;;  %v4855_v11 = vld [vmem:[%s5312_s27 + $0x10] ss:$8 sps:$4 sm:$0x3f]  }
  0x2e   : > { %1657 = vmatpush1.bf16.msra.mxu0 %v4850_v6  ;;  %v4853_v9 = vld [vmem:[%s5312_s27 + $0x94] ss:$8 sps:$4 sm:$0x3f]   ;;  %v570_v10 = vand.u32 %v4851_v8, %v5318_v7  ;;  %v4856_v12 = vld [vmem:[%s5312_s27 + $0x90] ss:$8 sps:$4 sm:$0x3f]   ;;  %v567_v15 = vand.u32 %v4855_v11, %v5318_v7  ;;  %416 = vperm.xlu1 %4844, %v382_v34  }
  0x2f   : > { %v1654_v13 = vand.u32 %v4853_v9, %v5318_v7  ;;  %v4860_v14 = vld [vmem:[%s5312_s27 + $0x24] ss:$8 sps:$4 sm:$0xff]   ;;  %v1651_v16 = vand.u32 %v4856_v12, %v5318_v7  ;;  %v4865_v18 = vld [vmem:[%s5312_s27 + $0x30] ss:$8 sps:$4 sm:$0x3f]  }
  0x30   : > { %574 = vmatprep.subr.bf16.mxu1 %v570_v10  ;;  %v4867_v19 = vld [vmem:[%s5312_s27 + $0x34] ss:$8 sps:$4 sm:$0x3f]   ;;  %v4858_v20 = vld [vmem:[%s5312_s27 + $0x20] ss:$8 sps:$4 sm:$0xff]   ;;  %v838_v23 = vand.u32 %v4865_v18, %v5318_v7  ;;  %421 = vperm.xlu0 %4843, %v383_v36  }
  0x31   : > { %1658 = vmatprep.subr.bf16.mxu0 %v1654_v13  ;;  %575 = vmatpush1.bf16.msra.mxu1 %v567_v15  ;;  %v841_v21 = vand.u32 %v4867_v19, %v5318_v7  ;;  %v4871_v22 = vld [vmem:[%s5312_s27 + $0xc0] ss:$8 sps:$4 sm:$0xff]   ;;  %v4873_v24 = vld [vmem:[%s5312_s27 + $0xc4] ss:$8 sps:$4 sm:$0xff]   ;;  %v394_v49 = vld [vmem:[%s6948_s3 + $0x78] sm:$0xff] }
  0x32   : > { %1659 = vmatpush1.bf16.msra.mxu0 %v1651_v16  ;;  %843 = vmatprep.subr.bf16.mxu1 %v4860_v14  ;;  %v4874_v25 = vld [vmem:[%s5312_s27 + $0xd0] ss:$8 sps:$4 sm:$0x3f]   ;;  %v4876_v26 = vld [vmem:[%s5312_s27 + $0xd4] ss:$8 sps:$4 sm:$0x3f]  }
  0x33   : > { %2198 = vmatprep.subr.bf16.mxu0 %v4873_v24  ;;  %v2196_v28 = vand.u32 %v4876_v26, %v5318_v7  ;;  %v4879_v29 = vld [vmem:[%s5312_s27 + $0x44] ss:$8 sps:$4 sm:$0xff]   ;;  %v2193_v32 = vand.u32 %v4874_v25, %v5318_v7  ;;  %426 = vperm.xlu1 %4844, %v384_v37   ;;  %v5458_v51 = vld [vmem:[%s6947_s2 + $0x30] sm:$0xff]   ;;  %v5469_v52 = vld [vmem:[%s6947_s2 + $0x38] sm:$0xff]  }
  0x34   : > { %4451 = vmatmul.mubr.msk.bf16.vlgmr.msra.gmra.mrb[0].mxu1 %vm537_vm2, %v5332_v17  ;;  %431 = vperm.xlu0 %4843, %v385_v38   ;;  %v5427_v46 = vld [vmem:[%s6947_s2 + $0x20] sm:$0xff]   ;;  %v392_v47 = vld [vmem:[%s6948_s3 + $0x68] sm:$0xff]  ;;  %v4882_v53 = vld [vmem:[%s5312_s27 + $0x54] ss:$8 sps:$4 sm:$0x3f]  }
  0x35   : > { %4515 = vmatmul.mubr.msk.bf16.vlgmr.msra.gmra.mrb[0].mxu0 %vm537_vm2, %v5332_v17  ;;  %844 = vmatpush1.bf16.msra.mxu1 %v4858_v20  ;;  %v5447_v50 = vld [vmem:[%s6947_s2 + $0x28] sm:$0xff]   ;;  %v4880_v55 = vld [vmem:[%s5312_s27 + $0x50] ss:$8 sps:$4 sm:$0x3f]   ;;  %v1112_v56 = vand.u32 %v4882_v53, %v5318_v7 }
  0x36   : > { %614 = vmatprep.mubr.bf16.mxu1 %v6954_v0  ;;  %1698 = vmatprep.mubr.bf16.mxu0 %v6954_v0  ;;  %v4877_v54 = vld [vmem:[%s5312_s27 + $0x40] ss:$8 sps:$4 sm:$0xff]   ;;  %v1109_v57 = vand.u32 %v4880_v55, %v5318_v7  ;;  %v4885_v58 = vld [vmem:[%s5312_s27 + $0x64] ss:$8 sps:$4 sm:$0xff]  }
  0x37   : > { %845 = vmatprep.subr.bf16.mxu1 %v841_v21  ;;  %2199 = vmatpush1.bf16.msra.mxu0 %v4871_v22  ;;  %v4888_v59 = vld [vmem:[%s5312_s27 + $0x74] ss:$8 sps:$4 sm:$0x3f]   ;;  %v4883_v60 = vld [vmem:[%s5312_s27 + $0x60] ss:$8 sps:$4 sm:$0xff]  }
  0x38   : > { %2200 = vmatprep.subr.bf16.mxu0 %v2196_v28  ;;  %436 = vperm.xlu1 %4844, %v386_v39   ;;  %v4886_v61 = vld [vmem:[%s5312_s27 + $0x70] ss:$8 sps:$4 sm:$0x3f]   ;;  %v1383_v62 = vand.u32 %v4888_v59, %v5318_v7  ;;  %v4891_v1 = vld [vmem:[%s5312_s27 + $0xa4] ss:$8 sps:$4 sm:$0xff]  }
  0x39   : > { %846 = vmatpush1.bf16.msra.mxu1 %v838_v23  ;;  %441 = vperm.xlu0 %4843, %v387_v40   ;;  %v1380_v63 = vand.u32 %v4886_v61, %v5318_v7  ;;  %v4894_v2 = vld [vmem:[%s5312_s27 + $0xb4] ss:$8 sps:$4 sm:$0x3f]   ;;  %v4889_v3 = vld [vmem:[%s5312_s27 + $0xa0] ss:$8 sps:$4 sm:$0xff]  }
  0x3a   : > { %1114 = vmatprep.subr.bf16.mxu1 %v4879_v29  ;;  %v4892_v4 = vld [vmem:[%s5312_s27 + $0xb0] ss:$8 sps:$4 sm:$0x3f]   ;;  %v1925_v5 = vand.u32 %v4894_v2, %v5318_v7  ;;  %v4897_v8 = vld [vmem:[%s5312_s27 + $0xe4] ss:$8 sps:$4 sm:$0xff]  }
  0x3b   : > { %2201 = vmatpush1.bf16.msra.mxu0 %v2193_v32  ;;  %v1922_v6 = vand.u32 %v4892_v4, %v5318_v7 }
  0x3c   : > { %4452 = vmatmul.mubr.msk.bf16.gmra.mrb[4].mxu1 %vm537_vm2, %v5352_v27  ;;  %446 = vperm.xlu1 %4844, %v388_v42  }
  0x3d   : > { %4516 = vmatmul.mubr.msk.bf16.gmra.mrb[4].mxu0 %vm537_vm2, %v5352_v27  ;;  %624 = vmatprep.mubr.bf16.mxu1 %v6954_v0 }
  0x3e   : > { %1708 = vmatprep.mubr.bf16.mxu0 %v6954_v0  ;;  %451 = vperm.xlu0 %4843, %v389_v43  }
  0x40   : > { %456 = vperm.xlu1 %4844, %v390_v44  }
  0x42   : > { %461 = vperm.xlu0 %4843, %v391_v45  }
  0x44   : > { %4453 = vmatmul.mubr.msk.bf16.gmra.mrb[8].mxu1 %vm537_vm2, %v5378_v35  ;;  %466 = vperm.xlu1 %4844, %v392_v47  }
  0x45   : > { %4517 = vmatmul.mubr.msk.bf16.gmra.mrb[8].mxu0 %vm537_vm2, %v5378_v35  ;;  %634 = vmatprep.mubr.bf16.mxu1 %v6954_v0 }
  0x46   : > { %1718 = vmatprep.mubr.bf16.mxu0 %v6954_v0  ;;  %471 = vperm.xlu0 %4843, %v393_v48  }
  0x48   : > { %476 = vperm.xlu1 %4844, %v394_v49  }
  0x4c   : > { %4454 = vmatmul.mubr.msk.bf16.gmra.mrb[12].mxu1 %vm537_vm2, %v5404_v41 }
  0x4d   : > { %4518 = vmatmul.mubr.msk.bf16.gmra.mrb[12].mxu0 %vm537_vm2, %v5404_v41  ;;  %644 = vmatprep.mubr.bf16.mxu1 %v6954_v0 }
  0x4e   : > { %1728 = vmatprep.mubr.bf16.mxu0 %v6954_v0 }
  0x54   : > { %4455 = vmatmul.mubr.msk.bf16.gmra.mrb[16].mxu1 %vm537_vm2, %v5427_v46 }
  0x55   : > { %4519 = vmatmul.mubr.msk.bf16.gmra.mrb[16].mxu0 %vm537_vm2, %v5427_v46  ;;  %654 = vmatprep.mubr.bf16.mxu1 %v6954_v0 }
  0x56   : > { %1738 = vmatprep.mubr.bf16.mxu0 %v6954_v0 }
  0x5c   : > { %4456 = vmatmul.mubr.msk.bf16.gmra.mrb[20].mxu1 %vm537_vm2, %v5447_v50 }
  0x5d   : > { %4520 = vmatmul.mubr.msk.bf16.gmra.mrb[20].mxu0 %vm537_vm2, %v5447_v50  ;;  %664 = vmatprep.mubr.bf16.mxu1 %v6954_v0 }
  0x5e   : > { %1748 = vmatprep.mubr.bf16.mxu0 %v6954_v0 }
  0x64   : > { %4457 = vmatmul.mubr.msk.bf16.gmra.mrb[24].mxu1 %vm537_vm2, %v5458_v51 }
  0x65   : > { %4521 = vmatmul.mubr.msk.bf16.gmra.mrb[24].mxu0 %vm537_vm2, %v5458_v51  ;;  %674 = vmatprep.mubr.bf16.mxu1 %v6954_v0 }
  0x66   : > { %1758 = vmatprep.mubr.bf16.mxu0 %v6954_v0 }
  0x6c   : > { %4458 = vmatmul.mubr.msk.bf16.gmra.mrb[28].mxu1 %vm537_vm2, %v5469_v52 }
  0x6d   : > { %4522 = vmatmul.mubr.msk.bf16.gmra.mrb[28].mxu0 %vm537_vm2, %v5469_v52  ;;  %875 = vmatprep.mubr.bf16.mxu1 %v6954_v0 }
  0x6e   : > { %2230 = vmatprep.mubr.bf16.mxu0 %v6954_v0 }
  0x74   : > { %4467 = vmatmul.mubr.msk.bf16.vlgmr.msra.gmra.mrb[32].mxu1 %vm537_vm2, %v5332_v17 }
  0x75   : > { %4547 = vmatmul.mubr.msk.bf16.vlgmr.msra.gmra.mrb[32].mxu0 %vm537_vm2, %v5332_v17  ;;  %1115 = vmatpush1.bf16.msra.mxu1 %v4877_v54 }
  0x76   : > { %885 = vmatprep.mubr.bf16.mxu1 %v6954_v0  ;;  %2240 = vmatprep.mubr.bf16.mxu0 %v6954_v0 }
  0x77   : > { %1116 = vmatprep.subr.bf16.mxu1 %v1112_v56 }
  0x79   : > { %1117 = vmatpush1.bf16.msra.mxu1 %v1109_v57 }
  0x7a   : > { %1385 = vmatprep.subr.bf16.mxu1 %v4885_v58 }
  0x7c   : > { %4468 = vmatmul.mubr.msk.bf16.gmra.mrb[36].mxu1 %vm537_vm2, %v5352_v27 }
  0x7d   : > { %4548 = vmatmul.mubr.msk.bf16.gmra.mrb[36].mxu0 %vm537_vm2, %v5352_v27  ;;  %895 = vmatprep.mubr.bf16.mxu1 %v6954_v0 }
  0x7e   : > { %2250 = vmatprep.mubr.bf16.mxu0 %v6954_v0 }
  0x84   : > { %4469 = vmatmul.mubr.msk.bf16.gmra.mrb[40].mxu1 %vm537_vm2, %v5378_v35 }
  0x85   : > { %4549 = vmatmul.mubr.msk.bf16.gmra.mrb[40].mxu0 %vm537_vm2, %v5378_v35  ;;  %905 = vmatprep.mubr.bf16.mxu1 %v6954_v0 }
  0x86   : > { %2260 = vmatprep.mubr.bf16.mxu0 %v6954_v0 }
  0x8c   : > { %4470 = vmatmul.mubr.msk.bf16.gmra.mrb[44].mxu1 %vm537_vm2, %v5404_v41 }
  0x8d   : > { %4550 = vmatmul.mubr.msk.bf16.gmra.mrb[44].mxu0 %vm537_vm2, %v5404_v41  ;;  %915 = vmatprep.mubr.bf16.mxu1 %v6954_v0 }
  0x8e   : > { %2270 = vmatprep.mubr.bf16.mxu0 %v6954_v0 }
  0x94   : > { %4471 = vmatmul.mubr.msk.bf16.gmra.mrb[48].mxu1 %vm537_vm2, %v5427_v46 }
  0x95   : > { %4551 = vmatmul.mubr.msk.bf16.gmra.mrb[48].mxu0 %vm537_vm2, %v5427_v46  ;;  %925 = vmatprep.mubr.bf16.mxu1 %v6954_v0 }
  0x96   : > { %2280 = vmatprep.mubr.bf16.mxu0 %v6954_v0 }
  0x9c   : > { %4472 = vmatmul.mubr.msk.bf16.gmra.mrb[52].mxu1 %vm537_vm2, %v5447_v50 }
  0x9d   : > { %4552 = vmatmul.mubr.msk.bf16.gmra.mrb[52].mxu0 %vm537_vm2, %v5447_v50  ;;  %935 = vmatprep.mubr.bf16.mxu1 %v6954_v0 }
  0x9e   : > { %2290 = vmatprep.mubr.bf16.mxu0 %v6954_v0 }
  0xa4   : > { %4473 = vmatmul.mubr.msk.bf16.gmra.mrb[56].mxu1 %vm537_vm2, %v5458_v51 }
  0xa5   : > { %4553 = vmatmul.mubr.msk.bf16.gmra.mrb[56].mxu0 %vm537_vm2, %v5458_v51  ;;  %945 = vmatprep.mubr.bf16.mxu1 %v6954_v0 }
  0xa6   : > { %2300 = vmatprep.mubr.bf16.mxu0 %v6954_v0 }
  0xa7   : > { %v5573_v9 = vpop.permute.xlu0 %401  ;;  %v5580_v11 = vpop.permute.xlu1 %411 }
  0xab   : > { %v5578_v10 = vpop.permute.xlu0 %406 }
  0xac   : > { %4474 = vmatmul.mubr.msk.bf16.gmra.mrb[60].mxu1 %vm537_vm2, %v5469_v52 }
  0xad   : > { %4554 = vmatmul.mubr.msk.bf16.gmra.mrb[60].mxu0 %vm537_vm2, %v5469_v52  ;;  %1146 = vmatprep.mubr.bf16.mxu1 %v6954_v0  ;;  %v5593_v38 = vpop.permute.xlu1 %416 }
  0xae   : > { %3222 = vmatprep.mubr.bf16.mxu0 %v6954_v0 }
  0xb4   : > { %4483 = vmatmul.mubr.msk.bf16.vlgmr.msra.gmra.mrb[64].mxu1 %vm537_vm2, %v5332_v17 }
  0xb5   : > { %1386 = vmatpush1.bf16.msra.mxu1 %v4883_v60  ;;  %1156 = vmatprep.mubr.bf16.mxu1 %v6954_v0 }
  0xb6   : > { %1387 = vmatprep.subr.bf16.mxu1 %v1383_v62 }
  0xb9   : > { %1388 = vmatpush1.bf16.msra.mxu1 %v1380_v63 }
  0xba   : > { %1927 = vmatprep.subr.bf16.mxu1 %v4891_v1 }
  0xbc   : > { %4484 = vmatmul.mubr.msk.bf16.gmra.mrb[68].mxu1 %vm537_vm2, %v5352_v27 }
  0xbd   : > { %1166 = vmatprep.mubr.bf16.mxu1 %v6954_v0 }
  0xc4   : > { %4485 = vmatmul.mubr.msk.bf16.gmra.mrb[72].mxu1 %vm537_vm2, %v5378_v35 }
  0xc5   : > { %1176 = vmatprep.mubr.bf16.mxu1 %v6954_v0 }
  0xcc   : > { %4486 = vmatmul.mubr.msk.bf16.gmra.mrb[76].mxu1 %vm537_vm2, %v5404_v41 }
  0xcd   : > { %1186 = vmatprep.mubr.bf16.mxu1 %v6954_v0 }
  0xd4   : > { %4487 = vmatmul.mubr.msk.bf16.gmra.mrb[80].mxu1 %vm537_vm2, %v5427_v46 }
  0xd5   : > { %1196 = vmatprep.mubr.bf16.mxu1 %v6954_v0 }
  0xdc   : > { %4488 = vmatmul.mubr.msk.bf16.gmra.mrb[84].mxu1 %vm537_vm2, %v5447_v50 }
  0xdd   : > { %1206 = vmatprep.mubr.bf16.mxu1 %v6954_v0 }
  0xe4   : > { %4489 = vmatmul.mubr.msk.bf16.gmra.mrb[88].mxu1 %vm537_vm2, %v5458_v51 }
  0xe5   : > { %1216 = vmatprep.mubr.bf16.mxu1 %v6954_v0 }
  0xec   : > { %4490 = vmatmul.mubr.msk.bf16.gmra.mrb[92].mxu1 %vm537_vm2, %v5469_v52 }
  0xed   : > { %1417 = vmatprep.mubr.bf16.mxu1 %v6954_v0 }
  0xf4   : > { %4499 = vmatmul.mubr.msk.bf16.vlgmr.msra.gmra.mrb[96].mxu1 %vm537_vm2, %v5332_v17 }
  0xf5   : > { %1928 = vmatpush1.bf16.msra.mxu1 %v4889_v3  ;;  %1427 = vmatprep.mubr.bf16.mxu1 %v6954_v0 }
  0xf6   : > { %1929 = vmatprep.subr.bf16.mxu1 %v1925_v5 }
  0xf9   : > { %1930 = vmatpush1.bf16.msra.mxu1 %v1922_v6 }
  0xfa   : > { %2469 = vmatprep.subr.bf16.mxu1 %v4897_v8  ;;  %v5605_v8 = vpop.permute.xlu0 %421 }
  0xfc   : > { %4500 = vmatmul.mubr.msk.bf16.gmra.mrb[100].mxu1 %vm537_vm2, %v5352_v27 }
  0xfd   : > { %1437 = vmatprep.mubr.bf16.mxu1 %v6954_v0 }
 0x104   : > { %4501 = vmatmul.mubr.msk.bf16.gmra.mrb[104].mxu1 %vm537_vm2, %v5378_v35 }
 0x105   : > { %1447 = vmatprep.mubr.bf16.mxu1 %v6954_v0 }
 0x107   : > { %v606_v12 = vpop.f32.mrb[0].mxu1 }
 0x108   : > { %v1690_v13 = vpop.f32.mrb[0].mxu0  ;;  %v607_v14 = vadd.f32 %v606_v12, %v5573_v9  ;;  %v608_v15 = vpop.f32.mrb[1].mxu1 }
 0x109   : > { %v1691_v16 = vadd.f32 %v1690_v13, %v5573_v9  ;;  %v1692_v17 = vpop.f32.mrb[1].mxu0  ;;  %v609_v18 = vadd.f32 %v608_v15, %v5573_v9  ;;  %v610_v19 = vpop.f32.mrb[2].mxu1  ;;  %v5198_v13 = vmov 0.0  }
 0x10a   : > { %v1693_v20 = vadd.f32 %v1692_v17, %v5573_v9  ;;  %v1694_v21 = vpop.f32.mrb[2].mxu0  ;;  %v685_v22 = vmax.f32 %v607_v14, 0.0  ;;  %v611_v23 = vadd.f32 %v610_v19, %v5578_v10  ;;  %v612_v24 = vpop.f32.mrb[3].mxu1  ;;  %347 = vst.msk [vmem:[#allocation2] sm:$0xff] %vm346_vm3, %v5198_v13  ;;  %348 = vst.msk [vmem:[#allocation2 + $0x8] sm:$0xff] %vm346_vm3, %v5198_v13 }
 0x10b   : > { %v1769_v25 = vmax.f32 %v1691_v16, 0.0  ;;  %v1695_v26 = vadd.f32 %v1694_v21, %v5578_v10  ;;  %v1696_v27 = vpop.f32.mrb[3].mxu0  ;;  %v686_v28 = vmax.f32 %v609_v18, 0.0  ;;  %v613_v29 = vadd.f32 %v612_v24, %v5578_v10  ;;  %349 = vst.msk [vmem:[#allocation2 + $0x10] sm:$0xff] %vm346_vm3, %v5198_v13  ;;  %350 = vst.msk [vmem:[#allocation2 + $0x18] sm:$0xff] %vm346_vm3, %v5198_v13 }
 0x10c   : > { %v1770_v30 = vmax.f32 %v1693_v20, 0.0  ;;  %v1697_v31 = vadd.f32 %v1696_v27, %v5578_v10  ;;  %v687_v32 = vmax.f32 %v611_v23, 0.0  ;;  %4502 = vmatmul.mubr.msk.bf16.gmra.mrb[108].mxu1 %vm537_vm2, %v5404_v41  ;;  %351 = vst.msk [vmem:[#allocation2 + $0x20] sm:$0xff] %vm346_vm3, %v5198_v13  ;;  %352 = vst.msk [vmem:[#allocation2 + $0x28] sm:$0xff] %vm346_vm3, %v5198_v13 }
 0x10d   : > { %v1771_v33 = vmax.f32 %v1695_v26, 0.0  ;;  %v688_v34 = vmax.f32 %v613_v29, 0.0  ;;  %v733_v35 = vadd.f32 %v686_v28, %v685_v22  ;;  %1457 = vmatprep.mubr.bf16.mxu1 %v6954_v0  ;;  %353 = vst.msk [vmem:[#allocation2 + $0x30] sm:$0xff] %vm346_vm3, %v5198_v13  ;;  %354 = vst.msk [vmem:[#allocation2 + $0x38] sm:$0xff] %vm346_vm3, %v5198_v13 }
 0x10e   : > { %v1772_v36 = vmax.f32 %v1697_v31, 0.0  ;;  %v1817_v37 = vadd.f32 %v1770_v30, %v1769_v25  ;;  %355 = vst.msk [vmem:[#allocation2 + $0x40] sm:$0xff] %vm346_vm3, %v5198_v13  ;;  %356 = vst.msk [vmem:[#allocation2 + $0x48] sm:$0xff] %vm346_vm3, %v5198_v13 }
 0x10f   : > { %v616_v39 = vpop.f32.mrb[4].mxu1  ;;  %734 = vadd.xlane.f32.xlu0 %v733_v35  ;;  %v736_v42 = vadd.f32 %v688_v34, %v687_v32  ;;  %357 = vst.msk [vmem:[#allocation2 + $0x50] sm:$0xff] %vm346_vm3, %v5198_v13  ;;  %358 = vst.msk [vmem:[#allocation2 + $0x58] sm:$0xff] %vm346_vm3, %v5198_v13 }
 0x110   : > { %v1700_v40 = vpop.f32.mrb[4].mxu0  ;;  %v1820_v43 = vadd.f32 %v1772_v36, %v1771_v33  ;;  %v617_v44 = vadd.f32 %v616_v39, %v5580_v11  ;;  %v618_v45 = vpop.f32.mrb[5].mxu1  ;;  %359 = vst.msk [vmem:[#allocation2 + $0x60] sm:$0xff] %vm346_vm3, %v5198_v13  ;;  %360 = vst.msk [vmem:[#allocation2 + $0x68] sm:$0xff] %vm346_vm3, %v5198_v13 }
 0x111   : > { %v1701_v47 = vadd.f32 %v1700_v40, %v5580_v11  ;;  %v1702_v41 = vpop.f32.mrb[5].mxu0  ;;  %v619_v48 = vadd.f32 %v618_v45, %v5580_v11  ;;  %v620_v49 = vpop.f32.mrb[6].mxu1  ;;  %737 = vadd.xlane.f32.xlu1 %v736_v42  ;;  %361 = vst.msk [vmem:[#allocation2 + $0x70] sm:$0xff] %vm346_vm3, %v5198_v13  ;;  %362 = vst.msk [vmem:[#allocation2 + $0x78] sm:$0xff] %vm346_vm3, %v5198_v13 }
 0x112   : > { %v1703_v53 = vadd.f32 %v1702_v41, %v5580_v11  ;;  %v1704_v54 = vpop.f32.mrb[6].mxu0  ;;  %v689_v55 = vmax.f32 %v617_v44, 0.0  ;;  %v621_v56 = vadd.f32 %v620_v49, %v5593_v38  ;;  %v622_v58 = vpop.f32.mrb[7].mxu1 }
 0x113   : > { %v1773_v57 = vmax.f32 %v1701_v47, 0.0  ;;  %v1705_v59 = vadd.f32 %v1704_v54, %v5593_v38  ;;  %v1706_v60 = vpop.f32.mrb[7].mxu0  ;;  %v690_v61 = vmax.f32 %v619_v48, 0.0  ;;  %v623_v62 = vadd.f32 %v622_v58, %v5593_v38  ;;  %1818 = vadd.xlane.f32.xlu0 %v1817_v37  ;;  %v5636_v42 = vpop.permute.xlu0 %431 }
 0x114   : > { %v1774_v63 = vmax.f32 %v1703_v53, 0.0  ;;  %v1707_v1 = vadd.f32 %v1706_v60, %v5593_v38  ;;  %v691_v2 = vmax.f32 %v621_v56, 0.0  ;;  %4503 = vmatmul.mubr.msk.bf16.gmra.mrb[112].mxu1 %vm537_vm2, %v5427_v46  ;;  %v5624_v46 = vpop.permute.xlu1 %426 }
 0x115   : > { %v1775_v3 = vmax.f32 %v1705_v59, 0.0  ;;  %v692_v4 = vmax.f32 %v623_v62, 0.0  ;;  %1821 = vadd.xlane.f32.xlu1 %v1820_v43  ;;  %v739_v6 = vadd.f32 %v690_v61, %v689_v55  ;;  %1467 = vmatprep.mubr.bf16.mxu1 %v6954_v0 }
 0x116   : > { %v1776_v5 = vmax.f32 %v1707_v1, 0.0  ;;  %v1823_v12 = vadd.f32 %v1774_v63, %v1773_v57 }
 0x117   : > { %v626_v14 = vpop.f32.mrb[8].mxu1  ;;  %740 = vadd.xlane.f32.xlu0 %v739_v6  ;;  %v742_v17 = vadd.f32 %v692_v4, %v691_v2 }
 0x118   : > { %v1710_v15 = vpop.f32.mrb[8].mxu0  ;;  %v1826_v16 = vadd.f32 %v1776_v5, %v1775_v3  ;;  %v628_v18 = vpop.f32.mrb[9].mxu1  ;;  %v627_v21 = vadd.f32 %v626_v14, %v5605_v8 }
 0x119   : > { %v1711_v19 = vadd.f32 %v1710_v15, %v5605_v8  ;;  %v1712_v20 = vpop.f32.mrb[9].mxu0  ;;  %v629_v22 = vadd.f32 %v628_v18, %v5605_v8  ;;  %v630_v23 = vpop.f32.mrb[10].mxu1 }
 0x11a   : > { %1827 = vadd.xlane.f32.xlu1 %v1826_v16  ;;  %v1713_v24 = vadd.f32 %v1712_v20, %v5605_v8  ;;  %v1714_v25 = vpop.f32.mrb[10].mxu0  ;;  %v631_v26 = vadd.f32 %v630_v23, %v5624_v46  ;;  %v632_v27 = vpop.f32.mrb[11].mxu1  ;;  %v693_v29 = vmax.f32 %v627_v21, 0.0 }
 0x11b   : > { %v1777_v28 = vmax.f32 %v1711_v19, 0.0  ;;  %v1715_v30 = vadd.f32 %v1714_v25, %v5624_v46  ;;  %v1716_v31 = vpop.f32.mrb[11].mxu0  ;;  %v694_v32 = vmax.f32 %v629_v22, 0.0  ;;  %v633_v33 = vadd.f32 %v632_v27, %v5624_v46  ;;  %1824 = vadd.xlane.f32.xlu0 %v1823_v12  ;;  %v5639_v45 = vpop.permute.xlu1 %436 }
 0x11c   : > { %v1778_v34 = vmax.f32 %v1713_v24, 0.0  ;;  %v1717_v35 = vadd.f32 %v1716_v31, %v5624_v46  ;;  %v695_v36 = vmax.f32 %v631_v26, 0.0  ;;  %4504 = vmatmul.mubr.msk.bf16.gmra.mrb[116].mxu1 %vm537_vm2, %v5447_v50  ;;  %v5651_v15 = vpop.permute.xlu0 %441 }
 0x11d   : > { %v1779_v37 = vmax.f32 %v1715_v30, 0.0  ;;  %v696_v39 = vmax.f32 %v633_v33, 0.0  ;;  %v745_v40 = vadd.f32 %v694_v32, %v693_v29  ;;  %1477 = vmatprep.mubr.bf16.mxu1 %v6954_v0 }
 0x11e   : > { %v1829_v43 = vadd.f32 %v1778_v34, %v1777_v28  ;;  %v1780_v44 = vmax.f32 %v1717_v35, 0.0 }
 0x11f   : > { %v636_v47 = vpop.f32.mrb[12].mxu1  ;;  %746 = vadd.xlane.f32.xlu1 %v745_v40  ;;  %743 = vadd.xlane.f32.xlu0 %v742_v17  ;;  %v748_v48 = vadd.f32 %v696_v39, %v695_v36  ;;  %v5654_v19 = vpop.permute.xlu1 %446 }
 0x120   : > { %v1720_v41 = vpop.f32.mrb[12].mxu0  ;;  %v1832_v49 = vadd.f32 %v1780_v44, %v1779_v37  ;;  %v638_v53 = vpop.f32.mrb[13].mxu1  ;;  %v637_v55 = vadd.f32 %v636_v47, %v5636_v42 }
 0x121   : > { %v1721_v50 = vadd.f32 %v1720_v41, %v5636_v42  ;;  %v1722_v54 = vpop.f32.mrb[13].mxu0  ;;  %v639_v56 = vadd.f32 %v638_v53, %v5636_v42  ;;  %v640_v57 = vpop.f32.mrb[14].mxu1 }
 0x122   : > { %v1723_v58 = vadd.f32 %v1722_v54, %v5636_v42  ;;  %v1724_v59 = vpop.f32.mrb[14].mxu0  ;;  %v641_v60 = vadd.f32 %v640_v57, %v5639_v45  ;;  %v642_v61 = vpop.f32.mrb[15].mxu1  ;;  %v697_v2 = vmax.f32 %v637_v55, 0.0  ;;  %v4900_v54 = vld [vmem:[%s5312_s27 + $0xf4] ss:$8 sps:$4 sm:$0x3f]  }
 0x123   : > { %v1781_v62 = vmax.f32 %v1721_v50, 0.0  ;;  %v1725_v63 = vadd.f32 %v1724_v59, %v5639_v45  ;;  %v1726_v1 = vpop.f32.mrb[15].mxu0  ;;  %v698_v3 = vmax.f32 %v639_v56, 0.0  ;;  %v643_v4 = vadd.f32 %v642_v61, %v5639_v45  ;;  %1830 = vadd.xlane.f32.xlu0 %v1829_v43  ;;  %1833 = vadd.xlane.f32.xlu1 %v1832_v49  ;;  %v5666_v49 = vpop.permute.xlu0 %451 }
 0x124   : > { %v1782_v5 = vmax.f32 %v1723_v58, 0.0  ;;  %v1727_v6 = vadd.f32 %v1726_v1, %v5639_v45  ;;  %v699_v12 = vmax.f32 %v641_v60, 0.0  ;;  %4505 = vmatmul.mubr.msk.bf16.gmra.mrb[120].mxu1 %vm537_vm2, %v5458_v51  ;;  %v5672_v55 = vpop.permute.xlu1 %456 }
 0x125   : > { %v1783_v13 = vmax.f32 %v1725_v63, 0.0  ;;  %v700_v14 = vmax.f32 %v643_v4, 0.0  ;;  %1487 = vmatprep.mubr.bf16.mxu1 %v6954_v0  ;;  %v751_v17 = vadd.f32 %v698_v3, %v697_v2  ;;  %v4898_v63 = vld [vmem:[%s5312_s27 + $0xf0] ss:$8 sps:$4 sm:$0x3f]  }
 0x126   : > { %v1784_v16 = vmax.f32 %v1727_v6, 0.0  ;;  %v1835_v18 = vadd.f32 %v1782_v5, %v1781_v62  ;;  %v4895_v4 = vld [vmem:[%s5312_s27 + $0xe0] ss:$8 sps:$4 sm:$0xff]   ;;  %v2467_v6 = vand.u32 %v4900_v54, %v5318_v7  ;;  %s321_s27 = sand.u32 1, %s5177_s11  }
 0x127   : > { %v646_v20 = vpop.f32.mrb[16].mxu1  ;;  %749 = vadd.xlane.f32.xlu0 %v748_v48  ;;  %v754_v23 = vadd.f32 %v700_v14, %v699_v12  ;;  %s4436_s30 = sshll.u32 %s321_s27, 4  ;;  %s4330_s12 = scalar_lea.sflag [#allocation6], %s321_s27 }
 0x128   : > { %v1730_v21 = vpop.f32.mrb[16].mxu0  ;;  %v1838_v22 = vadd.f32 %v1784_v16, %v1783_v13  ;;  %v648_v24 = vpop.f32.mrb[17].mxu1  ;;  %v647_v26 = vadd.f32 %v646_v20, %v5651_v15  ;;  %s323_s15 = scalar_lea.vmem [#allocation5], %s4436_s30 }
 0x129   : > { %v1731_v25 = vadd.f32 %v1730_v21, %v5651_v15  ;;  %v1732_v51 = vpop.f32.mrb[17].mxu0  ;;  %v649_v27 = vadd.f32 %v648_v24, %v5651_v15  ;;  %v650_v28 = vpop.f32.mrb[18].mxu1  ;;  %s4346_s16 = sshll.u32 %s323_s15, 4  ;;  %s6900_s16 = int_to_ptr.vmem [resolvable:$true] %s4346_s16 }
 0x12a   : > { %v1733_v29 = vadd.f32 %v1732_v51, %v5651_v15  ;;  %v1734_v30 = vpop.f32.mrb[18].mxu0  ;;  %1839 = vadd.xlane.f32.xlu1 %v1838_v22  ;;  %v651_v31 = vadd.f32 %v650_v28, %v5654_v19  ;;  %v652_v32 = vpop.f32.mrb[19].mxu1  ;;  %v701_v36 = vmax.f32 %v647_v26, 0.0  ;;  %v5690_v51 = vld [vmem:[%s6947_s2] sm:$0xff]   ;;  %s5113_s24 = scalar_lea.vmem %s6900_s16, 256 }
 0x12b   : > { %v1785_v33 = vmax.f32 %v1731_v25, 0.0  ;;  %v1735_v34 = vadd.f32 %v1734_v30, %v5654_v19  ;;  %v1736_v35 = vpop.f32.mrb[19].mxu0  ;;  %v702_v37 = vmax.f32 %v649_v27, 0.0  ;;  %v653_v39 = vadd.f32 %v652_v32, %v5654_v19  ;;  %752 = vadd.xlane.f32.xlu0 %v751_v17  ;;  %v5695_v30 = vpop.permute.xlu0 %461  ;;  %p5114_p3 = scmp.ne.s32.totalorder %s6900_s16, %s5113_s24 }
 0x12c   : > { %v1786_v40 = vmax.f32 %v1733_v29, 0.0  ;;  %v1737_v43 = vadd.f32 %v1736_v35, %v5654_v19  ;;  %v703_v44 = vmax.f32 %v651_v31, 0.0  ;;  %4506 = vmatmul.mubr.msk.bf16.gmra.mrb[124].mxu1 %vm537_vm2, %v5469_v52  ;;  %v2464_v27 = vand.u32 %v4898_v63, %v5318_v7  ;;  %v5702_v32 = vpop.permute.xlu1 %466 }
 0x12d   : > { %v1787_v47 = vmax.f32 %v1735_v34, 0.0  ;;  %v704_v41 = vmax.f32 %v653_v39, 0.0  ;;  %1959 = vmatprep.mubr.bf16.mxu1 %v6954_v0  ;;  %v757_v53 = vadd.f32 %v702_v37, %v701_v36  ;;  %p5115_p4 = pnand %p5114_p3, %p5288_p9 }
 0x12e   : > { %v1788_v48 = vmax.f32 %v1737_v43, 0.0  ;;  %v5669_v50 = vadd.f32 %v1786_v40, %v1785_v33 }
 0x12f   : > { %v656_v56 = vpop.f32.mrb[20].mxu1  ;;  %1836 = vadd.xlane.f32.xlu0 %v1835_v18  ;;  %v5674_v52 = vadd.f32 %v704_v41, %v703_v44  ;;  %p5116_p5 = pneg %p5115_p4 }
 0x130   : > { %v1740_v57 = vpop.f32.mrb[20].mxu0  ;;  %v1844_v58 = vadd.f32 %v1788_v48, %v1787_v47  ;;  %v658_v59 = vpop.f32.mrb[21].mxu1  ;;  %v657_v62 = vadd.f32 %v656_v56, %v5666_v49 }
 0x131   : > { %v1741_v60 = vadd.f32 %v1740_v57, %v5666_v49  ;;  %v1742_v61 = vpop.f32.mrb[21].mxu0  ;;  %v659_v1 = vadd.f32 %v658_v59, %v5666_v49  ;;  %v660_v2 = vpop.f32.mrb[22].mxu1 }
 0x132   : > { %v1743_v3 = vadd.f32 %v1742_v61, %v5666_v49  ;;  %v1744_v5 = vpop.f32.mrb[22].mxu0  ;;  %1845 = vadd.xlane.f32.xlu1 %v1844_v58  ;;  %v661_v12 = vadd.f32 %v660_v2, %v5672_v55  ;;  %v662_v13 = vpop.f32.mrb[23].mxu1  ;;  %v705_v18 = vmax.f32 %v657_v62, 0.0 }
 0x133   : > { %v1789_v14 = vmax.f32 %v1741_v60, 0.0  ;;  %v1745_v16 = vadd.f32 %v1744_v5, %v5672_v55  ;;  %v1746_v17 = vpop.f32.mrb[23].mxu0  ;;  %v706_v20 = vmax.f32 %v659_v1, 0.0  ;;  %v663_v21 = vadd.f32 %v662_v13, %v5672_v55  ;;  %755 = vadd.xlane.f32.xlu0 %v754_v23  ;;  %v5716_v1 = vld [vmem:[%s6947_s2 + $0x8] sm:$0xff]   ;;  %v5720_v5 = vpop.permute.xlu0 %471 }
 0x134   : > { %v1790_v22 = vmax.f32 %v1743_v3, 0.0  ;;  %v1747_v24 = vadd.f32 %v1746_v17, %v5672_v55  ;;  %v707_v25 = vmax.f32 %v661_v12, 0.0  ;;  %4531 = vmatmul.mubr.msk.bf16.vlgmr.msra.gmra.mrb[128].mxu1 %vm537_vm2, %v5690_v51  ;;  %v5725_v12 = vpop.permute.xlu1 %476 }
 0x135   : > { %v1791_v26 = vmax.f32 %v1745_v16, 0.0  ;;  %v708_v28 = vmax.f32 %v663_v21, 0.0  ;;  %2470 = vmatpush1.bf16.msra.mxu1 %v4895_v4  ;;  %1969 = vmatprep.mubr.bf16.mxu1 %v6954_v0  ;;  %v5698_v23 = vadd.f32 %v706_v20, %v705_v18 }
 0x136   : > { %v1792_v29 = vmax.f32 %v1747_v24, 0.0  ;;  %v5700_v31 = vadd.f32 %v1790_v22, %v1789_v14  ;;  %2471 = vmatprep.subr.bf16.mxu1 %v2467_v6 }
 0x137   : > { %v666_v33 = vpop.f32.mrb[24].mxu1  ;;  %758 = vadd.xlane.f32.xlu0 %v757_v53  ;;  %v766_v34 = vadd.f32 %v708_v28, %v707_v25 }
 0x138   : > { %v1750_v35 = vpop.f32.mrb[24].mxu0  ;;  %v1850_v36 = vadd.f32 %v1792_v29, %v1791_v26  ;;  %v668_v7 = vpop.f32.mrb[25].mxu1  ;;  %v667_v40 = vadd.f32 %v666_v33, %v5695_v30 }
 0x139   : > { %v1751_v37 = vadd.f32 %v1750_v35, %v5695_v30  ;;  %v1752_v39 = vpop.f32.mrb[25].mxu0  ;;  %v669_v43 = vadd.f32 %v668_v7, %v5695_v30  ;;  %v670_v44 = vpop.f32.mrb[26].mxu1  ;;  %767 = vadd.xlane.f32.xlu1 %v766_v34  ;;  %2472 = vmatpush1.bf16.msra.mxu1 %v2464_v27 }
 0x13a   : > { %v1753_v47 = vadd.f32 %v1752_v39, %v5695_v30  ;;  %v1754_v41 = vpop.f32.mrb[26].mxu0  ;;  %v671_v48 = vadd.f32 %v670_v44, %v5702_v32  ;;  %v672_v53 = vpop.f32.mrb[27].mxu1  ;;  %v709_v58 = vmax.f32 %v667_v40, 0.0 }
 0x13b   : > { %v1793_v54 = vmax.f32 %v1751_v37, 0.0  ;;  %v1755_v56 = vadd.f32 %v1754_v41, %v5702_v32  ;;  %v1756_v57 = vpop.f32.mrb[27].mxu0  ;;  %v710_v59 = vmax.f32 %v669_v43, 0.0  ;;  %v673_v60 = vadd.f32 %v672_v53, %v5702_v32  ;;  %1842 = vadd.xlane.f32.xlu0 %v5669_v50  ;;  %v5740_v43 = vld [vmem:[%s6947_s2 + $0x10] sm:$0xff]  }
 0x13c   : > { %v1794_v61 = vmax.f32 %v1753_v47, 0.0  ;;  %v1757_v62 = vadd.f32 %v1756_v57, %v5702_v32  ;;  %v711_v63 = vmax.f32 %v671_v48, 0.0  ;;  %4532 = vmatmul.mubr.msk.bf16.gmra.mrb[132].mxu1 %vm537_vm2, %v5716_v1 }
 0x13d   : > { %v1795_v2 = vmax.f32 %v1755_v56, 0.0  ;;  %v712_v3 = vmax.f32 %v673_v60, 0.0  ;;  %1851 = vadd.xlane.f32.xlu1 %v1850_v36  ;;  %1979 = vmatprep.mubr.bf16.mxu1 %v6954_v0  ;;  %v769_v50 = vadd.f32 %v710_v59, %v709_v58 }
 0x13e   : > { %v1796_v4 = vmax.f32 %v1757_v62, 0.0  ;;  %v5723_v6 = vadd.f32 %v1794_v61, %v1793_v54 }
 0x13f   : > { %v676_v13 = vpop.f32.mrb[28].mxu1  ;;  %761 = vadd.xlane.f32.xlu0 %v5674_v52  ;;  %v772_v14 = vadd.f32 %v712_v3, %v711_v63 }
 0x140   : > { %v1760_v16 = vpop.f32.mrb[28].mxu0  ;;  %v1856_v17 = vadd.f32 %v1796_v4, %v1795_v2  ;;  %v678_v18 = vpop.f32.mrb[29].mxu1  ;;  %v677_v22 = vadd.f32 %v676_v13, %v5720_v5 }
 0x141   : > { %v1761_v20 = vadd.f32 %v1760_v16, %v5720_v5  ;;  %v1762_v21 = vpop.f32.mrb[29].mxu0  ;;  %v679_v24 = vadd.f32 %v678_v18, %v5720_v5  ;;  %v680_v25 = vpop.f32.mrb[30].mxu1  ;;  %773 = vadd.xlane.f32.xlu1 %v772_v14 }
 0x142   : > { %v1763_v26 = vadd.f32 %v1762_v21, %v5720_v5  ;;  %v1764_v27 = vpop.f32.mrb[30].mxu0  ;;  %v681_v28 = vadd.f32 %v680_v25, %v5725_v12  ;;  %v682_v29 = vpop.f32.mrb[31].mxu1  ;;  %v713_v35 = vmax.f32 %v677_v22, 0.0  ;;  %v5759_v25 = vld [vmem:[%s6947_s2 + $0x18] sm:$0xff]  }
 0x143   : > { %v1797_v52 = vmax.f32 %v1761_v20, 0.0  ;;  %v1765_v33 = vadd.f32 %v1764_v27, %v5725_v12  ;;  %v1766_v34 = vpop.f32.mrb[31].mxu0  ;;  %v714_v36 = vmax.f32 %v679_v24, 0.0  ;;  %v683_v7 = vadd.f32 %v682_v29, %v5725_v12  ;;  %764 = vadd.xlane.f32.xlu0 %v5698_v23 }
 0x144   : > { %v1798_v37 = vmax.f32 %v1763_v26, 0.0  ;;  %v1767_v39 = vadd.f32 %v1766_v34, %v5725_v12  ;;  %v715_v40 = vmax.f32 %v681_v28, 0.0  ;;  %4533 = vmatmul.mubr.msk.bf16.gmra.mrb[136].mxu1 %vm537_vm2, %v5740_v43 }
 0x145   : > { %v1799_v44 = vmax.f32 %v1765_v33, 0.0  ;;  %v716_v47 = vmax.f32 %v683_v7, 0.0  ;;  %1857 = vadd.xlane.f32.xlu1 %v1856_v17  ;;  %1989 = vmatprep.mubr.bf16.mxu1 %v6954_v0  ;;  %v775_v48 = vadd.f32 %v714_v36, %v713_v35 }
 0x146   : > { %v1800_v41 = vmax.f32 %v1767_v39, 0.0  ;;  %v5745_v23 = vadd.f32 %v1798_v37, %v1797_v52 }
 0x147   : > { %v877_v53 = vpop.f32.mrb[32].mxu1  ;;  %1848 = vadd.xlane.f32.xlu0 %v5700_v31  ;;  %v778_v54 = vadd.f32 %v716_v47, %v715_v40 }
 0x148   : > { %v1862_v56 = vadd.f32 %v1800_v41, %v1799_v44  ;;  %v2232_v57 = vpop.f32.mrb[32].mxu0  ;;  %v878_v58 = vadd.f32 %v877_v53, %v5573_v9  ;;  %v879_v59 = vpop.f32.mrb[33].mxu1 }
 0x149   : > { %v2233_v60 = vadd.f32 %v2232_v57, %v5573_v9  ;;  %v2234_v61 = vpop.f32.mrb[33].mxu0  ;;  %v880_v62 = vadd.f32 %v879_v59, %v5573_v9  ;;  %v881_v63 = vpop.f32.mrb[34].mxu1  ;;  %779 = vadd.xlane.f32.xlu1 %v778_v54 }
 0x14a   : > { %v2235_v2 = vadd.f32 %v2234_v61, %v5573_v9  ;;  %v2236_v3 = vpop.f32.mrb[34].mxu0  ;;  %v956_v4 = vmax.f32 %v878_v58, 0.0  ;;  %v882_v13 = vadd.f32 %v881_v63, %v5578_v10  ;;  %v883_v31 = vpop.f32.mrb[35].mxu1 }
 0x14b   : > { %v2311_v14 = vmax.f32 %v2233_v60, 0.0  ;;  %v2237_v16 = vadd.f32 %v2236_v3, %v5578_v10  ;;  %v2238_v17 = vpop.f32.mrb[35].mxu0  ;;  %v957_v18 = vmax.f32 %v880_v62, 0.0  ;;  %v884_v20 = vadd.f32 %v883_v31, %v5578_v10  ;;  %770 = vadd.xlane.f32.xlu0 %v769_v50 }
 0x14c   : > { %v2312_v21 = vmax.f32 %v2235_v2, 0.0  ;;  %v2239_v22 = vadd.f32 %v2238_v17, %v5578_v10  ;;  %v958_v24 = vmax.f32 %v882_v13, 0.0  ;;  %4534 = vmatmul.mubr.msk.bf16.gmra.mrb[140].mxu1 %vm537_vm2, %v5759_v25  ;;  %v5776_v2 = vld [vmem:[%s6947_s2 + $0x20] sm:$0xff]  }
 0x14d   : > { %v2313_v26 = vmax.f32 %v2237_v16, 0.0  ;;  %v959_v27 = vmax.f32 %v884_v20, 0.0  ;;  %1863 = vadd.xlane.f32.xlu1 %v1862_v56  ;;  %v1004_v28 = vadd.f32 %v957_v18, %v956_v4  ;;  %1999 = vmatprep.mubr.bf16.mxu1 %v6954_v0 }
 0x14e   : > { %v2314_v29 = vmax.f32 %v2239_v22, 0.0  ;;  %v2359_v50 = vadd.f32 %v2312_v21, %v2311_v14 }
 0x14f   : > { %v887_v52 = vpop.f32.mrb[36].mxu1  ;;  %1854 = vadd.xlane.f32.xlu0 %v5723_v6  ;;  %v1007_v33 = vadd.f32 %v959_v27, %v958_v24 }
 0x150   : > { %v2242_v34 = vpop.f32.mrb[36].mxu0  ;;  %v2362_v35 = vadd.f32 %v2314_v29, %v2313_v26  ;;  %v888_v36 = vadd.f32 %v887_v52, %v5580_v11  ;;  %v889_v7 = vpop.f32.mrb[37].mxu1 }
 0x151   : > { %v2243_v37 = vadd.f32 %v2242_v34, %v5580_v11  ;;  %v2244_v39 = vpop.f32.mrb[37].mxu0  ;;  %v890_v40 = vadd.f32 %v889_v7, %v5580_v11  ;;  %v891_v44 = vpop.f32.mrb[38].mxu1  ;;  %1005 = vadd.xlane.f32.xlu1 %v1004_v28 }
 0x152   : > { %v2245_v47 = vadd.f32 %v2244_v39, %v5580_v11  ;;  %v2246_v41 = vpop.f32.mrb[38].mxu0  ;;  %v960_v53 = vmax.f32 %v888_v36, 0.0  ;;  %v892_v54 = vadd.f32 %v891_v44, %v5593_v38  ;;  %v893_v6 = vpop.f32.mrb[39].mxu1 }
 0x153   : > { %v2315_v56 = vmax.f32 %v2243_v37, 0.0  ;;  %v2247_v57 = vadd.f32 %v2246_v41, %v5593_v38  ;;  %v2248_v58 = vpop.f32.mrb[39].mxu0  ;;  %v961_v59 = vmax.f32 %v890_v40, 0.0  ;;  %v894_v60 = vadd.f32 %v893_v6, %v5593_v38  ;;  %776 = vadd.xlane.f32.xlu0 %v775_v48 }
 0x154   : > { %v2316_v61 = vmax.f32 %v2245_v47, 0.0  ;;  %v2249_v62 = vadd.f32 %v2248_v58, %v5593_v38  ;;  %v962_v63 = vmax.f32 %v892_v54, 0.0  ;;  %4535 = vmatmul.mubr.msk.bf16.gmra.mrb[144].mxu1 %vm537_vm2, %v5776_v2 }
 0x155   : > { %v2317_v3 = vmax.f32 %v2247_v57, 0.0  ;;  %v963_v4 = vmax.f32 %v894_v60, 0.0  ;;  %1008 = vadd.xlane.f32.xlu1 %v1007_v33  ;;  %2009 = vmatprep.mubr.bf16.mxu1 %v6954_v0  ;;  %v1010_v31 = vadd.f32 %v961_v59, %v960_v53 }
 0x156   : > { %v2318_v13 = vmax.f32 %v2249_v62, 0.0  ;;  %v2365_v48 = vadd.f32 %v2316_v61, %v2315_v56 }
 0x157   : > { %v897_v14 = vpop.f32.mrb[40].mxu1  ;;  %1860 = vadd.xlane.f32.xlu0 %v5745_v23  ;;  %v1013_v17 = vadd.f32 %v963_v4, %v962_v63 }
 0x158   : > { %v2252_v16 = vpop.f32.mrb[40].mxu0  ;;  %v2368_v18 = vadd.f32 %v2318_v13, %v2317_v3  ;;  %v898_v20 = vadd.f32 %v897_v14, %v5605_v8  ;;  %v899_v21 = vpop.f32.mrb[41].mxu1 }
 0x159   : > { %v2253_v22 = vadd.f32 %v2252_v16, %v5605_v8  ;;  %v2254_v24 = vpop.f32.mrb[41].mxu0  ;;  %v900_v26 = vadd.f32 %v899_v21, %v5605_v8  ;;  %v901_v27 = vpop.f32.mrb[42].mxu1  ;;  %2363 = vadd.xlane.f32.xlu1 %v2362_v35  ;;  %v5793_v35 = vld [vmem:[%s6947_s2 + $0x28] sm:$0xff]  }
 0x15a   : > { %v2255_v28 = vadd.f32 %v2254_v24, %v5605_v8  ;;  %v2256_v29 = vpop.f32.mrb[42].mxu0  ;;  %v964_v52 = vmax.f32 %v898_v20, 0.0  ;;  %v902_v33 = vadd.f32 %v901_v27, %v5624_v46  ;;  %v903_v23 = vpop.f32.mrb[43].mxu1 }
 0x15b   : > { %v2319_v34 = vmax.f32 %v2253_v22, 0.0  ;;  %v2257_v36 = vadd.f32 %v2256_v29, %v5624_v46  ;;  %v2258_v7 = vpop.f32.mrb[43].mxu0  ;;  %v965_v37 = vmax.f32 %v900_v26, 0.0  ;;  %v904_v39 = vadd.f32 %v903_v23, %v5624_v46  ;;  %2360 = vadd.xlane.f32.xlu0 %v2359_v50 }
 0x15c   : > { %v2320_v40 = vmax.f32 %v2255_v28, 0.0  ;;  %v2259_v44 = vadd.f32 %v2258_v7, %v5624_v46  ;;  %v966_v47 = vmax.f32 %v902_v33, 0.0  ;;  %4536 = vmatmul.mubr.msk.bf16.gmra.mrb[148].mxu1 %vm537_vm2, %v5793_v35 }
 0x15d   : > { %v2321_v41 = vmax.f32 %v2257_v36, 0.0  ;;  %v967_v53 = vmax.f32 %v904_v39, 0.0  ;;  %1011 = vadd.xlane.f32.xlu1 %v1010_v31  ;;  %2019 = vmatprep.mubr.bf16.mxu1 %v6954_v0  ;;  %v1016_v50 = vadd.f32 %v965_v37, %v964_v52 }
 0x15e   : > { %v2322_v54 = vmax.f32 %v2259_v44, 0.0  ;;  %v2371_v6 = vadd.f32 %v2320_v40, %v2319_v34 }
 0x15f   : > { %v907_v56 = vpop.f32.mrb[44].mxu1  ;;  %2366 = vadd.xlane.f32.xlu0 %v2365_v48  ;;  %v1019_v58 = vadd.f32 %v967_v53, %v966_v47 }
 0x160   : > { %v2262_v57 = vpop.f32.mrb[44].mxu0  ;;  %v5798_v59 = vadd.f32 %v2322_v54, %v2321_v41  ;;  %v908_v60 = vadd.f32 %v907_v56, %v5636_v42  ;;  %v909_v61 = vpop.f32.mrb[45].mxu1 }
 0x161   : > { %v2263_v62 = vadd.f32 %v2262_v57, %v5636_v42  ;;  %v2264_v63 = vpop.f32.mrb[45].mxu0  ;;  %v910_v3 = vadd.f32 %v909_v61, %v5636_v42  ;;  %v911_v4 = vpop.f32.mrb[46].mxu1  ;;  %1014 = vadd.xlane.f32.xlu1 %v1013_v17  ;;  %v5811_v17 = vld [vmem:[%s6947_s2 + $0x30] sm:$0xff]  }
 0x162   : > { %v2265_v13 = vadd.f32 %v2264_v63, %v5636_v42  ;;  %v2266_v31 = vpop.f32.mrb[46].mxu0  ;;  %v968_v14 = vmax.f32 %v908_v60, 0.0  ;;  %v912_v48 = vadd.f32 %v911_v4, %v5639_v45  ;;  %v913_v16 = vpop.f32.mrb[47].mxu1 }
 0x163   : > { %v2323_v20 = vmax.f32 %v2263_v62, 0.0  ;;  %v2267_v21 = vadd.f32 %v2266_v31, %v5639_v45  ;;  %v2268_v22 = vpop.f32.mrb[47].mxu0  ;;  %v969_v24 = vmax.f32 %v910_v3, 0.0  ;;  %v914_v26 = vadd.f32 %v913_v16, %v5639_v45  ;;  %2372 = vadd.xlane.f32.xlu0 %v2371_v6 }
 0x164   : > { %v2324_v27 = vmax.f32 %v2265_v13, 0.0  ;;  %v2269_v28 = vadd.f32 %v2268_v22, %v5639_v45  ;;  %v970_v29 = vmax.f32 %v912_v48, 0.0  ;;  %4537 = vmatmul.mubr.msk.bf16.gmra.mrb[152].mxu1 %vm537_vm2, %v5811_v17 }
 0x165   : > { %v2325_v52 = vmax.f32 %v2267_v21, 0.0  ;;  %v971_v33 = vmax.f32 %v914_v26, 0.0  ;;  %2369 = vadd.xlane.f32.xlu1 %v2368_v18  ;;  %v1022_v34 = vadd.f32 %v969_v24, %v968_v14  ;;  %2029 = vmatprep.mubr.bf16.mxu1 %v6954_v0 }
 0x166   : > { %v2326_v23 = vmax.f32 %v2269_v28, 0.0  ;;  %v2377_v36 = vadd.f32 %v2324_v27, %v2323_v20 }
 0x167   : > { %v917_v7 = vpop.f32.mrb[48].mxu1  ;;  %1023 = vadd.xlane.f32.xlu0 %v1022_v34  ;;  %v1025_v39 = vadd.f32 %v971_v33, %v970_v29 }
 0x168   : > { %v2272_v37 = vpop.f32.mrb[48].mxu0  ;;  %v5816_v40 = vadd.f32 %v2326_v23, %v2325_v52  ;;  %v918_v44 = vadd.f32 %v917_v7, %v5651_v15  ;;  %v919_v47 = vpop.f32.mrb[49].mxu1 }
 0x169   : > { %v2273_v41 = vadd.f32 %v2272_v37, %v5651_v15  ;;  %v2274_v53 = vpop.f32.mrb[49].mxu0  ;;  %v920_v54 = vadd.f32 %v919_v47, %v5651_v15  ;;  %v921_v18 = vpop.f32.mrb[50].mxu1  ;;  %1017 = vadd.xlane.f32.xlu1 %v1016_v50  ;;  %v5829_v50 = vld [vmem:[%s6947_s2 + $0x38] sm:$0xff]  }
 0x16a   : > { %v2275_v6 = vadd.f32 %v2274_v53, %v5651_v15  ;;  %v2276_v56 = vpop.f32.mrb[50].mxu0  ;;  %v972_v57 = vmax.f32 %v918_v44, 0.0  ;;  %v922_v61 = vadd.f32 %v921_v18, %v5654_v19  ;;  %v923_v62 = vpop.f32.mrb[51].mxu1 }
 0x16b   : > { %v2327_v60 = vmax.f32 %v2273_v41, 0.0  ;;  %v2277_v63 = vadd.f32 %v2276_v56, %v5654_v19  ;;  %v2278_v3 = vpop.f32.mrb[51].mxu0  ;;  %v973_v4 = vmax.f32 %v920_v54, 0.0  ;;  %v924_v31 = vadd.f32 %v923_v62, %v5654_v19  ;;  %2378 = vadd.xlane.f32.xlu0 %v2377_v36 }
 0x16c   : > { %v2328_v13 = vmax.f32 %v2275_v6, 0.0  ;;  %v2279_v14 = vadd.f32 %v2278_v3, %v5654_v19  ;;  %v974_v48 = vmax.f32 %v922_v61, 0.0  ;;  %4538 = vmatmul.mubr.msk.bf16.gmra.mrb[156].mxu1 %vm537_vm2, %v5829_v50 }
 0x16d   : > { %v2329_v16 = vmax.f32 %v2277_v63, 0.0  ;;  %v975_v20 = vmax.f32 %v924_v31, 0.0  ;;  %1020 = vadd.xlane.f32.xlu1 %v1019_v58  ;;  %v1028_v22 = vadd.f32 %v973_v4, %v972_v57  ;;  %2501 = vmatprep.mubr.bf16.mxu1 %v6954_v0 }
 0x16e   : > { %v2330_v21 = vmax.f32 %v2279_v14, 0.0  ;;  %v2383_v24 = vadd.f32 %v2328_v13, %v2327_v60 }
 0x16f   : > { %v927_v26 = vpop.f32.mrb[52].mxu1  ;;  %1029 = vadd.xlane.f32.xlu0 %v1028_v22  ;;  %v1031_v28 = vadd.f32 %v975_v20, %v974_v48 }
 0x170   : > { %v2282_v27 = vpop.f32.mrb[52].mxu0  ;;  %v5834_v29 = vadd.f32 %v2330_v21, %v2329_v16  ;;  %v928_v52 = vadd.f32 %v927_v26, %v5666_v49  ;;  %v929_v23 = vpop.f32.mrb[53].mxu1 }
 0x171   : > { %v2283_v33 = vadd.f32 %v2282_v27, %v5666_v49  ;;  %v2284_v34 = vpop.f32.mrb[53].mxu0  ;;  %v930_v36 = vadd.f32 %v929_v23, %v5666_v49  ;;  %v931_v7 = vpop.f32.mrb[54].mxu1  ;;  %2375 = vadd.xlane.f32.xlu1 %v5798_v59 }
 0x172   : > { %v2285_v58 = vadd.f32 %v2284_v34, %v5666_v49  ;;  %v2286_v37 = vpop.f32.mrb[54].mxu0  ;;  %v976_v44 = vmax.f32 %v928_v52, 0.0  ;;  %v932_v41 = vadd.f32 %v931_v7, %v5672_v55  ;;  %v933_v54 = vpop.f32.mrb[55].mxu1 }
 0x173   : > { %v2331_v47 = vmax.f32 %v2283_v33, 0.0  ;;  %v2287_v53 = vadd.f32 %v2286_v37, %v5672_v55  ;;  %v2288_v18 = vpop.f32.mrb[55].mxu0  ;;  %v977_v6 = vmax.f32 %v930_v36, 0.0  ;;  %v934_v57 = vadd.f32 %v933_v54, %v5672_v55  ;;  %2384 = vadd.xlane.f32.xlu0 %v2383_v24 }
 0x174   : > { %v2332_v56 = vmax.f32 %v2285_v58, 0.0  ;;  %v2289_v60 = vadd.f32 %v2288_v18, %v5672_v55  ;;  %v978_v61 = vmax.f32 %v932_v41, 0.0  ;;  %4563 = vmatmul.mubr.msk.bf16.vlgmr.msra.gmra.mrb[160].mxu1 %vm537_vm2, %v5690_v51 }
 0x175   : > { %v2333_v62 = vmax.f32 %v2287_v53, 0.0  ;;  %v979_v59 = vmax.f32 %v934_v57, 0.0  ;;  %1026 = vadd.xlane.f32.xlu1 %v1025_v39  ;;  %v1034_v3 = vadd.f32 %v977_v6, %v976_v44  ;;  %2511 = vmatprep.mubr.bf16.mxu1 %v6954_v0 }
 0x176   : > { %v2334_v63 = vmax.f32 %v2289_v60, 0.0  ;;  %v2389_v4 = vadd.f32 %v2332_v56, %v2331_v47 }
 0x177   : > { %v937_v13 = vpop.f32.mrb[56].mxu1  ;;  %1035 = vadd.xlane.f32.xlu0 %v1034_v3  ;;  %v1037_v48 = vadd.f32 %v979_v59, %v978_v61 }
 0x178   : > { %v2292_v31 = vpop.f32.mrb[56].mxu0  ;;  %v2392_v14 = vadd.f32 %v2334_v63, %v2333_v62  ;;  %v938_v16 = vadd.f32 %v937_v13, %v5695_v30  ;;  %v939_v21 = vpop.f32.mrb[57].mxu1 }
 0x179   : > { %v2293_v20 = vadd.f32 %v2292_v31, %v5695_v30  ;;  %v2294_v22 = vpop.f32.mrb[57].mxu0  ;;  %v940_v51 = vadd.f32 %v939_v21, %v5695_v30  ;;  %v941_v39 = vpop.f32.mrb[58].mxu1  ;;  %2381 = vadd.xlane.f32.xlu1 %v5816_v40 }
 0x17a   : > { %v2295_v24 = vadd.f32 %v2294_v22, %v5695_v30  ;;  %v2296_v26 = vpop.f32.mrb[58].mxu0  ;;  %v980_v27 = vmax.f32 %v938_v16, 0.0  ;;  %v942_v33 = vadd.f32 %v941_v39, %v5702_v32  ;;  %v943_v34 = vpop.f32.mrb[59].mxu1 }
 0x17b   : > { %v2335_v52 = vmax.f32 %v2293_v20, 0.0  ;;  %v2297_v23 = vadd.f32 %v2296_v26, %v5702_v32  ;;  %v2298_v36 = vpop.f32.mrb[59].mxu0  ;;  %v981_v58 = vmax.f32 %v940_v51, 0.0  ;;  %v944_v37 = vadd.f32 %v943_v34, %v5702_v32  ;;  %2390 = vadd.xlane.f32.xlu0 %v2389_v4 }
 0x17c   : > { %v2336_v7 = vmax.f32 %v2295_v24, 0.0  ;;  %v2299_v44 = vadd.f32 %v2298_v36, %v5702_v32  ;;  %v982_v47 = vmax.f32 %v942_v33, 0.0  ;;  %4564 = vmatmul.mubr.msk.bf16.gmra.mrb[164].mxu1 %vm537_vm2, %v5716_v1 }
 0x17d   : > { %v2337_v41 = vmax.f32 %v2297_v23, 0.0  ;;  %v983_v40 = vmax.f32 %v944_v37, 0.0  ;;  %1032 = vadd.xlane.f32.xlu1 %v1031_v28  ;;  %2521 = vmatprep.mubr.bf16.mxu1 %v6954_v0  ;;  %v1040_v54 = vadd.f32 %v981_v58, %v980_v27 }
 0x17e   : > { %v2338_v53 = vmax.f32 %v2299_v44, 0.0  ;;  %v2395_v18 = vadd.f32 %v2336_v7, %v2335_v52 }
 0x17f   : > { %v947_v56 = vpop.f32.mrb[60].mxu1  ;;  %2393 = vadd.xlane.f32.xlu0 %v2392_v14  ;;  %v1043_v60 = vadd.f32 %v983_v40, %v982_v47 }
 0x180   : > { %v5860_v6 = vadd.f32 %v2338_v53, %v2337_v41  ;;  %v2302_v57 = vpop.f32.mrb[60].mxu0  ;;  %v948_v61 = vadd.f32 %v947_v56, %v5720_v5  ;;  %v949_v59 = vpop.f32.mrb[61].mxu1 }
 0x181   : > { %v2303_v62 = vadd.f32 %v2302_v57, %v5720_v5  ;;  %v2304_v63 = vpop.f32.mrb[61].mxu0  ;;  %v950_v1 = vadd.f32 %v949_v59, %v5720_v5  ;;  %v951_v3 = vpop.f32.mrb[62].mxu1  ;;  %2387 = vadd.xlane.f32.xlu1 %v5834_v29 }
 0x182   : > { %v2305_v28 = vadd.f32 %v2304_v63, %v5720_v5  ;;  %v2306_v4 = vpop.f32.mrb[62].mxu0  ;;  %v984_v13 = vmax.f32 %v948_v61, 0.0  ;;  %v952_v16 = vadd.f32 %v951_v3, %v5725_v12  ;;  %v953_v20 = vpop.f32.mrb[63].mxu1 }
 0x183   : > { %v2339_v31 = vmax.f32 %v2303_v62, 0.0  ;;  %v2307_v14 = vadd.f32 %v2306_v4, %v5725_v12  ;;  %v2308_v21 = vpop.f32.mrb[63].mxu0  ;;  %v985_v22 = vmax.f32 %v950_v1, 0.0  ;;  %v954_v24 = vadd.f32 %v953_v20, %v5725_v12  ;;  %1041 = vadd.xlane.f32.xlu0 %v1040_v54 }
 0x184   : > { %v2340_v51 = vmax.f32 %v2305_v28, 0.0  ;;  %v2309_v39 = vadd.f32 %v2308_v21, %v5725_v12  ;;  %v986_v26 = vmax.f32 %v952_v16, 0.0  ;;  %4565 = vmatmul.mubr.msk.bf16.gmra.mrb[168].mxu1 %vm537_vm2, %v5740_v43 }
 0x185   : > { %v2341_v27 = vmax.f32 %v2307_v14, 0.0  ;;  %v987_v52 = vmax.f32 %v954_v24, 0.0  ;;  %1038 = vadd.xlane.f32.xlu1 %v1037_v48  ;;  %2531 = vmatprep.mubr.bf16.mxu1 %v6954_v0  ;;  %v1046_v23 = vadd.f32 %v985_v22, %v984_v13 }
 0x186   : > { %v5873_v29 = vadd.f32 %v2340_v51, %v2339_v31  ;;  %v2342_v33 = vmax.f32 %v2309_v39, 0.0 }
 0x187   : > { %v1148_v36 = vpop.f32.mrb[64].mxu1  ;;  %2396 = vadd.xlane.f32.xlu0 %v2395_v18  ;;  %v1049_v58 = vadd.f32 %v987_v52, %v986_v26  ;;  %v717_v52 = vld [vmem:[#allocation2] sm:$0xff] }
 0x188   : > { %v5876_v34 = vadd.f32 %v2342_v33, %v2341_v27  ;;  %v1149_v7 = vadd.f32 %v1148_v36, %v5573_v9  ;;  %v1150_v37 = vpop.f32.mrb[65].mxu1 }
 0x189   : > { %v1151_v44 = vadd.f32 %v1150_v37, %v5573_v9  ;;  %v1152_v47 = vpop.f32.mrb[66].mxu1  ;;  %1044 = vadd.xlane.f32.xlu1 %v1043_v60 }
 0x18a   : > { %v1227_v43 = vmax.f32 %v1149_v7, 0.0  ;;  %v1153_v41 = vadd.f32 %v1152_v47, %v5578_v10  ;;  %v1154_v40 = vpop.f32.mrb[67].mxu1 }
 0x18b   : > { %v1228_v48 = vmax.f32 %v1151_v44, 0.0  ;;  %v1155_v53 = vadd.f32 %v1154_v40, %v5578_v10  ;;  %1047 = vadd.xlane.f32.xlu0 %v1046_v23 }
 0x18c   : > { %v1229_v54 = vmax.f32 %v1153_v41, 0.0  ;;  %4566 = vmatmul.mubr.msk.bf16.gmra.mrb[172].mxu1 %vm537_vm2, %v5759_v25 }
 0x18d   : > { %v1230_v18 = vmax.f32 %v1155_v53, 0.0  ;;  %1050 = vadd.xlane.f32.xlu1 %v1049_v58  ;;  %v1275_v56 = vadd.f32 %v1228_v48, %v1227_v43  ;;  %2541 = vmatprep.mubr.bf16.mxu1 %v6954_v0  ;;  %v718_v58 = vld [vmem:[#allocation2 + $0x8] sm:$0xff] }
 0x18f   : > { %v1158_v57 = vpop.f32.mrb[68].mxu1  ;;  %1276 = vadd.xlane.f32.xlu0 %v1275_v56  ;;  %v1278_v60 = vadd.f32 %v1230_v18, %v1229_v54 }
 0x190   : > { %v1159_v61 = vadd.f32 %v1158_v57, %v5580_v11  ;;  %v1160_v62 = vpop.f32.mrb[69].mxu1 }
 0x191   : > { %v1161_v59 = vadd.f32 %v1160_v62, %v5580_v11  ;;  %v1162_v63 = vpop.f32.mrb[70].mxu1  ;;  %1279 = vadd.xlane.f32.xlu1 %v1278_v60  ;;  %v719_v62 = vld [vmem:[#allocation2 + $0x10] sm:$0xff] }
 0x192   : > { %v1231_v1 = vmax.f32 %v1159_v61, 0.0  ;;  %v1163_v28 = vadd.f32 %v1162_v63, %v5593_v38  ;;  %v1164_v3 = vpop.f32.mrb[71].mxu1 }
 0x193   : > { %v1232_v25 = vmax.f32 %v1161_v59, 0.0  ;;  %v1165_v4 = vadd.f32 %v1164_v3, %v5593_v38 }
 0x194   : > { %v1233_v13 = vmax.f32 %v1163_v28, 0.0  ;;  %4567 = vmatmul.mubr.msk.bf16.gmra.mrb[176].mxu1 %vm537_vm2, %v5776_v2 }
 0x195   : > { %v1234_v31 = vmax.f32 %v1165_v4, 0.0  ;;  %v1281_v16 = vadd.f32 %v1232_v25, %v1231_v1  ;;  %2551 = vmatprep.mubr.bf16.mxu1 %v6954_v0 }
 0x197   : > { %v1168_v14 = vpop.f32.mrb[72].mxu1  ;;  %1282 = vadd.xlane.f32.xlu0 %v1281_v16  ;;  %v1284_v20 = vadd.f32 %v1234_v31, %v1233_v13 }
 0x198   : > { %v1169_v21 = vadd.f32 %v1168_v14, %v5605_v8  ;;  %v1170_v22 = vpop.f32.mrb[73].mxu1 }
 0x199   : > { %v1171_v51 = vadd.f32 %v1170_v22, %v5605_v8  ;;  %v1172_v24 = vpop.f32.mrb[74].mxu1  ;;  %1285 = vadd.xlane.f32.xlu1 %v1284_v20 }
 0x19a   : > { %v1235_v39 = vmax.f32 %v1169_v21, 0.0  ;;  %v1173_v26 = vadd.f32 %v1172_v24, %v5624_v46  ;;  %v1174_v27 = vpop.f32.mrb[75].mxu1 }
 0x19b   : > { %v1236_v2 = vmax.f32 %v1171_v51, 0.0  ;;  %v1175_v33 = vadd.f32 %v1174_v27, %v5624_v46  ;;  %v720_v27 = vld [vmem:[#allocation2 + $0x18] sm:$0xff] }
 0x19c   : > { %v1237_v23 = vmax.f32 %v1173_v26, 0.0  ;;  %4568 = vmatmul.mubr.msk.bf16.gmra.mrb[180].mxu1 %vm537_vm2, %v5793_v35  ;;  %v735_v36 = vpop.xlane.xlu0 %734  ;;  %v721_v26 = vld [vmem:[#allocation2 + $0x20] sm:$0xff] }
 0x19d   : > { %v1238_v7 = vmax.f32 %v1175_v33, 0.0  ;;  %v781_v37 = vadd.f32 %v735_v36, %v717_v52  ;;  %v1287_v44 = vadd.f32 %v1236_v2, %v1235_v39  ;;  %2561 = vmatprep.mubr.bf16.mxu1 %v6954_v0 }
 0x19e   : > { %v738_v47 = vpop.xlane.xlu1 %737 }
 0x19f   : > { %798 = vst.msk [vmem:[#allocation2] sm:$0xff] %vm797_vm4, %v781_v37  ;;  %v782_v43 = vadd.f32 %v738_v47, %v718_v58  ;;  %v1178_v41 = vpop.f32.mrb[76].mxu1  ;;  %1288 = vadd.xlane.f32.xlu0 %v1287_v44  ;;  %v1290_v40 = vadd.f32 %v1238_v7, %v1237_v23 }
 0x1a0   : > { %v1179_v48 = vadd.f32 %v1178_v41, %v5636_v42  ;;  %v1180_v53 = vpop.f32.mrb[77].mxu1  ;;  %v5901_v54 = vpop.xlane.xlu0 %1818 }
 0x1a1   : > { %799 = vst.msk [vmem:[#allocation2 + $0x8] sm:$0xff] %vm797_vm4, %v782_v43  ;;  %v1181_v35 = vadd.f32 %v1180_v53, %v5636_v42  ;;  %v1182_v18 = vpop.f32.mrb[78].mxu1  ;;  %1291 = vadd.xlane.f32.xlu1 %v1290_v40 }
 0x1a2   : > { %v1239_v56 = vmax.f32 %v1179_v48, 0.0  ;;  %v1183_v57 = vadd.f32 %v1182_v18, %v5639_v45  ;;  %v1184_v60 = vpop.f32.mrb[79].mxu1  ;;  %v5906_v61 = vpop.xlane.xlu1 %1821 }
 0x1a3   : > { %v1240_v59 = vmax.f32 %v1181_v35, 0.0  ;;  %v1185_v63 = vadd.f32 %v1184_v60, %v5639_v45 }
 0x1a4   : > { %v1241_v1 = vmax.f32 %v1183_v57, 0.0  ;;  %4569 = vmatmul.mubr.msk.bf16.gmra.mrb[184].mxu1 %vm537_vm2, %v5811_v17  ;;  %v741_v28 = vpop.xlane.xlu0 %740  ;;  %v722_v57 = vld [vmem:[#allocation2 + $0x28] sm:$0xff] }
 0x1a5   : > { %v1242_v3 = vmax.f32 %v1185_v63, 0.0  ;;  %v783_v25 = vadd.f32 %v741_v28, %v719_v62  ;;  %v1293_v4 = vadd.f32 %v1240_v59, %v1239_v56  ;;  %2571 = vmatprep.mubr.bf16.mxu1 %v6954_v0 }
 0x1a7   : > { %v5912_v13 = vpop.xlane.xlu1 %1827  ;;  %800 = vst.msk [vmem:[#allocation2 + $0x10] sm:$0xff] %vm797_vm4, %v783_v25  ;;  %v1188_v31 = vpop.f32.mrb[80].mxu1  ;;  %1294 = vadd.xlane.f32.xlu0 %v1293_v4  ;;  %v1296_v16 = vadd.f32 %v1242_v3, %v1241_v1  ;;  %v723_v4 = vld [vmem:[#allocation2 + $0x30] sm:$0xff] }
 0x1a8   : > { %v1189_v14 = vadd.f32 %v1188_v31, %v5651_v15  ;;  %v1190_v20 = vpop.f32.mrb[81].mxu1  ;;  %v5916_v21 = vpop.xlane.xlu0 %1824 }
 0x1a9   : > { %v1191_v17 = vadd.f32 %v1190_v20, %v5651_v15  ;;  %v1192_v22 = vpop.f32.mrb[82].mxu1  ;;  %1297 = vadd.xlane.f32.xlu1 %v1296_v16 }
 0x1aa   : > { %v1243_v51 = vmax.f32 %v1189_v14, 0.0  ;;  %v1193_v24 = vadd.f32 %v1192_v22, %v5654_v19  ;;  %v1194_v39 = vpop.f32.mrb[83].mxu1 }
 0x1ab   : > { %v1244_v52 = vmax.f32 %v1191_v17, 0.0  ;;  %v1195_v2 = vadd.f32 %v1194_v39, %v5654_v19 }
 0x1ac   : > { %v1245_v33 = vmax.f32 %v1193_v24, 0.0  ;;  %4570 = vmatmul.mubr.msk.bf16.gmra.mrb[188].mxu1 %vm537_vm2, %v5829_v50  ;;  %v747_v23 = vpop.xlane.xlu1 %746  ;;  %v744_v36 = vpop.xlane.xlu0 %743 }
 0x1ad   : > { %v1246_v58 = vmax.f32 %v1195_v2, 0.0  ;;  %v785_v7 = vadd.f32 %v747_v23, %v721_v26  ;;  %v784_v37 = vadd.f32 %v744_v36, %v720_v27  ;;  %v1299_v44 = vadd.f32 %v1244_v52, %v1243_v51  ;;  %3263 = vmatprep.mubr.bf16.mxu1 %v6954_v0 }
 0x1af   : > { %802 = vst.msk [vmem:[#allocation2 + $0x20] sm:$0xff] %vm797_vm4, %v785_v7  ;;  %801 = vst.msk [vmem:[#allocation2 + $0x18] sm:$0xff] %vm797_vm4, %v784_v37  ;;  %v1198_v47 = vpop.f32.mrb[84].mxu1  ;;  %1300 = vadd.xlane.f32.xlu0 %v1299_v44  ;;  %v1302_v43 = vadd.f32 %v1246_v58, %v1245_v33  ;;  %v724_v37 = vld [vmem:[#allocation2 + $0x38] sm:$0xff] }
 0x1b0   : > { %v1199_v41 = vadd.f32 %v1198_v47, %v5666_v49  ;;  %v1200_v40 = vpop.f32.mrb[85].mxu1  ;;  %v5927_v48 = vpop.xlane.xlu0 %1830 }
 0x1b1   : > { %v1201_v50 = vadd.f32 %v1200_v40, %v5666_v49  ;;  %v1202_v53 = vpop.f32.mrb[86].mxu1  ;;  %1303 = vadd.xlane.f32.xlu1 %v1302_v43  ;;  %v5932_v59 = vpop.xlane.xlu1 %1833 }
 0x1b2   : > { %v1247_v35 = vmax.f32 %v1199_v41, 0.0  ;;  %v1203_v18 = vadd.f32 %v1202_v53, %v5672_v55  ;;  %v1204_v56 = vpop.f32.mrb[87].mxu1 }
 0x1b3   : > { %v1248_v60 = vmax.f32 %v1201_v50, 0.0  ;;  %v1205_v62 = vadd.f32 %v1204_v56, %v5672_v55 }
 0x1b4   : > { %v1249_v63 = vmax.f32 %v1203_v18, 0.0  ;;  %v750_v1 = vpop.xlane.xlu0 %749 }
 0x1b5   : > { %v1250_v28 = vmax.f32 %v1205_v62, 0.0  ;;  %v786_v3 = vadd.f32 %v750_v1, %v722_v57  ;;  %v1305_v25 = vadd.f32 %v1248_v60, %v1247_v35  ;;  %v725_v62 = vld [vmem:[#allocation2 + $0x40] sm:$0xff] }
 0x1b7   : > { %803 = vst.msk [vmem:[#allocation2 + $0x28] sm:$0xff] %vm797_vm4, %v786_v3  ;;  %v1208_v31 = vpop.f32.mrb[88].mxu1  ;;  %1306 = vadd.xlane.f32.xlu0 %v1305_v25  ;;  %v1308_v16 = vadd.f32 %v1250_v28, %v1249_v63  ;;  %v5937_v39 = vpop.xlane.xlu1 %1839  ;;  %v728_v25 = vld [vmem:[#allocation2 + $0x58] sm:$0xff] }
 0x1b8   : > { %v1209_v14 = vadd.f32 %v1208_v31, %v5695_v30  ;;  %v1210_v20 = vpop.f32.mrb[89].mxu1  ;;  %v753_v17 = vpop.xlane.xlu0 %752 }
 0x1b9   : > { %v1211_v22 = vadd.f32 %v1210_v20, %v5695_v30  ;;  %v787_v51 = vadd.f32 %v753_v17, %v723_v4  ;;  %v1212_v24 = vpop.f32.mrb[90].mxu1  ;;  %1309 = vadd.xlane.f32.xlu1 %v1308_v16 }
 0x1ba   : > { %v1251_v26 = vmax.f32 %v1209_v14, 0.0  ;;  %v1213_v27 = vadd.f32 %v1212_v24, %v5702_v32  ;;  %v1214_v52 = vpop.f32.mrb[91].mxu1 }
 0x1bb   : > { %v1252_v2 = vmax.f32 %v1211_v22, 0.0  ;;  %804 = vst.msk [vmem:[#allocation2 + $0x30] sm:$0xff] %vm797_vm4, %v787_v51  ;;  %v1215_v33 = vadd.f32 %v1214_v52, %v5702_v32 }
 0x1bc   : > { %v1253_v23 = vmax.f32 %v1213_v27, 0.0  ;;  %v5942_v36 = vpop.xlane.xlu0 %1836 }
 0x1bd   : > { %v1254_v58 = vmax.f32 %v1215_v33, 0.0  ;;  %v1311_v7 = vadd.f32 %v1252_v2, %v1251_v26 }
 0x1bf   : > { %v1218_v44 = vpop.f32.mrb[92].mxu1  ;;  %1312 = vadd.xlane.f32.xlu0 %v1311_v7  ;;  %v1314_v47 = vadd.f32 %v1254_v58, %v1253_v23  ;;  %v5944_v43 = vpop.xlane.xlu1 %1845  ;;  %v726_v7 = vld [vmem:[#allocation2 + $0x48] sm:$0xff] }
 0x1c0   : > { %v1219_v41 = vadd.f32 %v1218_v44, %v5720_v5  ;;  %v1220_v40 = vpop.f32.mrb[93].mxu1  ;;  %v756_v50 = vpop.xlane.xlu0 %755 }
 0x1c1   : > { %v1221_v53 = vadd.f32 %v1220_v40, %v5720_v5  ;;  %v788_v35 = vadd.f32 %v756_v50, %v724_v37  ;;  %v1222_v18 = vpop.f32.mrb[94].mxu1  ;;  %1315 = vadd.xlane.f32.xlu1 %v1314_v47  ;;  %v730_v40 = vld [vmem:[#allocation2 + $0x68] sm:$0xff] }
 0x1c2   : > { %v1255_v56 = vmax.f32 %v1219_v41, 0.0  ;;  %v1223_v57 = vadd.f32 %v1222_v18, %v5725_v12  ;;  %v1224_v60 = vpop.f32.mrb[95].mxu1 }
 0x1c3   : > { %v1256_v63 = vmax.f32 %v1221_v53, 0.0  ;;  %805 = vst.msk [vmem:[#allocation2 + $0x38] sm:$0xff] %vm797_vm4, %v788_v35  ;;  %v1225_v1 = vadd.f32 %v1224_v60, %v5725_v12 }
 0x1c4   : > { %v1257_v28 = vmax.f32 %v1223_v57, 0.0  ;;  %v759_v3 = vpop.xlane.xlu0 %758 }
 0x1c5   : > { %v1258_v4 = vmax.f32 %v1225_v1, 0.0  ;;  %v789_v31 = vadd.f32 %v759_v3, %v725_v62  ;;  %v1317_v16 = vadd.f32 %v1256_v63, %v1255_v56  ;;  %v727_v56 = vld [vmem:[#allocation2 + $0x50] sm:$0xff] }
 0x1c6   : > { %v768_v14 = vpop.xlane.xlu1 %767 }
 0x1c7   : > { %806 = vst.msk [vmem:[#allocation2 + $0x40] sm:$0xff] %vm797_vm4, %v789_v31  ;;  %v792_v20 = vadd.f32 %v768_v14, %v728_v25  ;;  %v1419_v17 = vpop.f32.mrb[96].mxu1  ;;  %1318 = vadd.xlane.f32.xlu0 %v1317_v16  ;;  %v1320_v22 = vadd.f32 %v1258_v4, %v1257_v28 }
 0x1c8   : > { %v1420_v51 = vadd.f32 %v1419_v17, %v5573_v9  ;;  %v1421_v24 = vpop.f32.mrb[97].mxu1  ;;  %v5953_v26 = vpop.xlane.xlu0 %1842 }
 0x1c9   : > { %809 = vst.msk [vmem:[#allocation2 + $0x58] sm:$0xff] %vm797_vm4, %v792_v20  ;;  %v1422_v27 = vadd.f32 %v1421_v24, %v5573_v9  ;;  %v1423_v52 = vpop.f32.mrb[98].mxu1  ;;  %1321 = vadd.xlane.f32.xlu1 %v1320_v22 }
 0x1ca   : > { %v1498_v2 = vmax.f32 %v1420_v51, 0.0  ;;  %v1424_v33 = vadd.f32 %v1423_v52, %v5578_v10  ;;  %v1425_v23 = vpop.f32.mrb[99].mxu1  ;;  %v5958_v58 = vpop.xlane.xlu1 %1851 }
 0x1cb   : > { %v1499_v37 = vmax.f32 %v1422_v27, 0.0  ;;  %v1426_v44 = vadd.f32 %v1425_v23, %v5578_v10  ;;  %v732_v27 = vld [vmem:[#allocation2 + $0x78] sm:$0xff]  ;;  %v729_v23 = vld [vmem:[#allocation2 + $0x60] sm:$0xff] }
 0x1cc   : > { %v1500_v47 = vmax.f32 %v1424_v33, 0.0  ;;  %v762_v41 = vpop.xlane.xlu0 %761 }
 0x1cd   : > { %v1501_v50 = vmax.f32 %v1426_v44, 0.0  ;;  %v790_v53 = vadd.f32 %v762_v41, %v726_v7  ;;  %v1546_v35 = vadd.f32 %v1499_v37, %v1498_v2 }
 0x1ce   : > { %v774_v18 = vpop.xlane.xlu1 %773 }
 0x1cf   : > { %807 = vst.msk [vmem:[#allocation2 + $0x48] sm:$0xff] %vm797_vm4, %v790_v53  ;;  %v794_v57 = vadd.f32 %v774_v18, %v730_v40  ;;  %v1429_v60 = vpop.f32.mrb[100].mxu1  ;;  %1547 = vadd.xlane.f32.xlu0 %v1546_v35  ;;  %v1549_v62 = vadd.f32 %v1501_v50, %v1500_v47 }
 0x1d0   : > { %v1430_v63 = vadd.f32 %v1429_v60, %v5580_v11  ;;  %v1431_v1 = vpop.f32.mrb[101].mxu1  ;;  %v765_v28 = vpop.xlane.xlu0 %764 }
 0x1d1   : > { %811 = vst.msk [vmem:[#allocation2 + $0x68] sm:$0xff] %vm797_vm4, %v794_v57  ;;  %v1432_v3 = vadd.f32 %v1431_v1, %v5580_v11  ;;  %v791_v25 = vadd.f32 %v765_v28, %v727_v56  ;;  %v1433_v4 = vpop.f32.mrb[102].mxu1  ;;  %1550 = vadd.xlane.f32.xlu1 %v1549_v62 }
 0x1d2   : > { %v1502_v31 = vmax.f32 %v1430_v63, 0.0  ;;  %v1434_v16 = vadd.f32 %v1433_v4, %v5593_v38  ;;  %v1435_v14 = vpop.f32.mrb[103].mxu1  ;;  %v5966_v20 = vpop.xlane.xlu1 %1857 }
 0x1d3   : > { %v1503_v17 = vmax.f32 %v1432_v3, 0.0  ;;  %808 = vst.msk [vmem:[#allocation2 + $0x50] sm:$0xff] %vm797_vm4, %v791_v25  ;;  %v1436_v22 = vadd.f32 %v1435_v14, %v5593_v38 }
 0x1d4   : > { %v1504_v51 = vmax.f32 %v1434_v16, 0.0  ;;  %v5970_v24 = vpop.xlane.xlu0 %1848  ;;  %v731_v16 = vld [vmem:[#allocation2 + $0x70] sm:$0xff] }
 0x1d5   : > { %v1552_v52 = vadd.f32 %v1503_v17, %v1502_v31  ;;  %v1505_v2 = vmax.f32 %v1436_v22, 0.0  ;;  %v988_v31 = vld [vmem:[#allocation2] sm:$0xff] }
 0x1d6   : > { %v780_v33 = vpop.xlane.xlu1 %779 }
 0x1d7   : > { %v796_v7 = vadd.f32 %v780_v33, %v732_v27  ;;  %v1439_v37 = vpop.f32.mrb[104].mxu1  ;;  %1553 = vadd.xlane.f32.xlu0 %v1552_v52  ;;  %v1555_v44 = vadd.f32 %v1505_v2, %v1504_v51 }
 0x1d8   : > { %v1440_v47 = vadd.f32 %v1439_v37, %v5605_v8  ;;  %v1441_v41 = vpop.f32.mrb[105].mxu1  ;;  %v771_v40 = vpop.xlane.xlu0 %770 }
 0x1d9   : > { %813 = vst.msk [vmem:[#allocation2 + $0x78] sm:$0xff] %vm797_vm4, %v796_v7  ;;  %v1442_v50 = vadd.f32 %v1441_v41, %v5605_v8  ;;  %v793_v53 = vadd.f32 %v771_v40, %v729_v23  ;;  %v1443_v35 = vpop.f32.mrb[106].mxu1  ;;  %1556 = vadd.xlane.f32.xlu1 %v1555_v44 }
 0x1da   : > { %v1506_v18 = vmax.f32 %v1440_v47, 0.0  ;;  %v1444_v56 = vadd.f32 %v1443_v35, %v5624_v46  ;;  %v1445_v57 = vpop.f32.mrb[107].mxu1  ;;  %v5976_v60 = vpop.xlane.xlu1 %1863  ;;  %v989_v47 = vld [vmem:[#allocation2 + $0x8] sm:$0xff] }
 0x1db   : > { %v1507_v62 = vmax.f32 %v1442_v50, 0.0  ;;  %810 = vst.msk [vmem:[#allocation2 + $0x60] sm:$0xff] %vm797_vm4, %v793_v53  ;;  %v1446_v63 = vadd.f32 %v1445_v57, %v5624_v46 }
 0x1dc   : > { %v1508_v1 = vmax.f32 %v1444_v56, 0.0  ;;  %v5980_v28 = vpop.xlane.xlu0 %1854 }
 0x1dd   : > { %v1558_v3 = vadd.f32 %v1507_v62, %v1506_v18  ;;  %v1509_v25 = vmax.f32 %v1446_v63, 0.0 }
 0x1de   : > { %v1006_v4 = vpop.xlane.xlu1 %1005 }
 0x1df   : > { %v1052_v14 = vadd.f32 %v1006_v4, %v988_v31  ;;  %v1449_v17 = vpop.f32.mrb[108].mxu1  ;;  %1559 = vadd.xlane.f32.xlu0 %v1558_v3  ;;  %v1561_v22 = vadd.f32 %v1509_v25, %v1508_v1 }
 0x1e0   : > { %v1450_v51 = vadd.f32 %v1449_v17, %v5636_v42  ;;  %v1451_v27 = vpop.f32.mrb[109].mxu1  ;;  %v777_v52 = vpop.xlane.xlu0 %776 }
 0x1e1   : > { %1069 = vst.msk [vmem:[#allocation2] sm:$0xff] %vm1068_vm5, %v1052_v14  ;;  %v1452_v2 = vadd.f32 %v1451_v27, %v5636_v42  ;;  %v795_v33 = vadd.f32 %v777_v52, %v731_v16  ;;  %v1453_v23 = vpop.f32.mrb[110].mxu1  ;;  %1562 = vadd.xlane.f32.xlu1 %v1561_v22  ;;  %v990_v27 = vld [vmem:[#allocation2 + $0x10] sm:$0xff] }
 0x1e2   : > { %v1510_v7 = vmax.f32 %v1450_v51, 0.0  ;;  %v1454_v37 = vadd.f32 %v1453_v23, %v5639_v45  ;;  %v1455_v44 = vpop.f32.mrb[111].mxu1  ;;  %v1009_v41 = vpop.xlane.xlu1 %1008  ;;  %v1000_v0 = vld [vmem:[#allocation2 + $0x60] sm:$0xff] }
 0x1e3   : > { %v1511_v40 = vmax.f32 %v1452_v2, 0.0  ;;  %812 = vst.msk [vmem:[#allocation2 + $0x70] sm:$0xff] %vm797_vm4, %v795_v33  ;;  %v1456_v50 = vadd.f32 %v1455_v44, %v5639_v45  ;;  %v1053_v53 = vadd.f32 %v1009_v41, %v989_v47  ;;  %v991_v41 = vld [vmem:[#allocation2 + $0x18] sm:$0xff] }
 0x1e4   : > { %v1512_v35 = vmax.f32 %v1454_v37, 0.0  ;;  %v5988_v18 = vpop.xlane.xlu0 %1860 }
 0x1e5   : > { %v1564_v56 = vadd.f32 %v1511_v40, %v1510_v7  ;;  %v1513_v57 = vmax.f32 %v1456_v50, 0.0  ;;  %1070 = vst.msk [vmem:[#allocation2 + $0x8] sm:$0xff] %vm1068_vm5, %v1053_v53 }
 0x1e6   : > { %v5991_v62 = vpop.xlane.xlu1 %2363 }
 0x1e7   : > { %v1459_v63 = vpop.f32.mrb[112].mxu1  ;;  %1565 = vadd.xlane.f32.xlu0 %v1564_v56  ;;  %v1567_v1 = vadd.f32 %v1513_v57, %v1512_v35 }
 0x1e8   : > { %v1460_v3 = vadd.f32 %v1459_v63, %v5651_v15  ;;  %v1461_v25 = vpop.f32.mrb[113].mxu1  ;;  %v5994_v4 = vpop.xlane.xlu0 %2360 }
 0x1e9   : > { %v1462_v31 = vadd.f32 %v1461_v25, %v5651_v15  ;;  %v1463_v16 = vpop.f32.mrb[114].mxu1  ;;  %1568 = vadd.xlane.f32.xlu1 %v1567_v1 }
 0x1ea   : > { %v1514_v14 = vmax.f32 %v1460_v3, 0.0  ;;  %v1464_v17 = vadd.f32 %v1463_v16, %v5654_v19  ;;  %v1465_v22 = vpop.f32.mrb[115].mxu1  ;;  %v1012_v51 = vpop.xlane.xlu1 %1011 }
 0x1eb   : > { %v1515_v52 = vmax.f32 %v1462_v31, 0.0  ;;  %v1466_v2 = vadd.f32 %v1465_v22, %v5654_v19  ;;  %v1054_v33 = vadd.f32 %v1012_v51, %v990_v27  ;;  %v994_v51 = vld [vmem:[#allocation2 + $0x30] sm:$0xff] }
 0x1ec   : > { %v1516_v23 = vmax.f32 %v1464_v17, 0.0  ;;  %v5999_v7 = vpop.xlane.xlu0 %2366 }
 0x1ed   : > { %v1570_v37 = vadd.f32 %v1515_v52, %v1514_v14  ;;  %v1517_v44 = vmax.f32 %v1466_v2, 0.0  ;;  %1071 = vst.msk [vmem:[#allocation2 + $0x10] sm:$0xff] %vm1068_vm5, %v1054_v33 }
 0x1ee   : > { %v1015_v47 = vpop.xlane.xlu1 %1014 }
 0x1ef   : > { %v1573_v40 = vadd.f32 %v1517_v44, %v1516_v23  ;;  %v1055_v50 = vadd.f32 %v1015_v47, %v991_v41  ;;  %v1469_v53 = vpop.f32.mrb[116].mxu1  ;;  %1571 = vadd.xlane.f32.xlu0 %v1570_v37  ;;  %v992_v23 = vld [vmem:[#allocation2 + $0x20] sm:$0xff] }
 0x1f0   : > { %v1470_v35 = vadd.f32 %v1469_v53, %v5666_v49  ;;  %v1471_v56 = vpop.f32.mrb[117].mxu1  ;;  %v6003_v57 = vpop.xlane.xlu0 %2372 }
 0x1f1   : > { %1072 = vst.msk [vmem:[#allocation2 + $0x18] sm:$0xff] %vm1068_vm5, %v1055_v50  ;;  %v1472_v63 = vadd.f32 %v1471_v56, %v5666_v49  ;;  %v1473_v1 = vpop.f32.mrb[118].mxu1  ;;  %1574 = vadd.xlane.f32.xlu1 %v1573_v40 }
 0x1f2   : > { %v1518_v3 = vmax.f32 %v1470_v35, 0.0  ;;  %v1474_v25 = vadd.f32 %v1473_v1, %v5672_v55  ;;  %v1475_v31 = vpop.f32.mrb[119].mxu1  ;;  %v6008_v16 = vpop.xlane.xlu1 %2369 }
 0x1f3   : > { %v1519_v14 = vmax.f32 %v1472_v63, 0.0  ;;  %v1476_v17 = vadd.f32 %v1475_v31, %v5672_v55  ;;  %v993_v31 = vld [vmem:[#allocation2 + $0x28] sm:$0xff] }
 0x1f4   : > { %v1520_v22 = vmax.f32 %v1474_v25, 0.0  ;;  %v1024_v27 = vpop.xlane.xlu0 %1023 }
 0x1f5   : > { %v1576_v52 = vadd.f32 %v1519_v14, %v1518_v3  ;;  %v1521_v2 = vmax.f32 %v1476_v17, 0.0  ;;  %v1058_v33 = vadd.f32 %v1024_v27, %v994_v51  ;;  %v996_v27 = vld [vmem:[#allocation2 + $0x40] sm:$0xff] }
 0x1f6   : > { %v1018_v37 = vpop.xlane.xlu1 %1017 }
 0x1f7   : > { %v1579_v44 = vadd.f32 %v1521_v2, %v1520_v22  ;;  %1075 = vst.msk [vmem:[#allocation2 + $0x30] sm:$0xff] %vm1068_vm5, %v1058_v33  ;;  %v1056_v47 = vadd.f32 %v1018_v37, %v992_v23  ;;  %v1479_v41 = vpop.f32.mrb[120].mxu1  ;;  %1577 = vadd.xlane.f32.xlu0 %v1576_v52 }
 0x1f8   : > { %v1480_v40 = vadd.f32 %v1479_v41, %v5695_v30  ;;  %v1481_v50 = vpop.f32.mrb[121].mxu1  ;;  %v6013_v53 = vpop.xlane.xlu0 %2378 }
 0x1f9   : > { %1073 = vst.msk [vmem:[#allocation2 + $0x20] sm:$0xff] %vm1068_vm5, %v1056_v47  ;;  %v1482_v35 = vadd.f32 %v1481_v50, %v5695_v30  ;;  %v1483_v56 = vpop.f32.mrb[122].mxu1  ;;  %1580 = vadd.xlane.f32.xlu1 %v1579_v44 }
 0x1fa   : > { %v1522_v63 = vmax.f32 %v1480_v40, 0.0  ;;  %v1484_v1 = vadd.f32 %v1483_v56, %v5702_v32  ;;  %v1485_v3 = vpop.f32.mrb[123].mxu1  ;;  %v1021_v25 = vpop.xlane.xlu1 %1020 }
 0x1fb   : > { %v1523_v14 = vmax.f32 %v1482_v35, 0.0  ;;  %v1486_v17 = vadd.f32 %v1485_v3, %v5702_v32  ;;  %v1057_v22 = vadd.f32 %v1021_v25, %v993_v31  ;;  %v995_v31 = vld [vmem:[#allocation2 + $0x38] sm:$0xff] }
 0x1fc   : > { %v1524_v51 = vmax.f32 %v1484_v1, 0.0  ;;  %v1030_v52 = vpop.xlane.xlu0 %1029 }
 0x1fd   : > { %v1582_v2 = vadd.f32 %v1523_v14, %v1522_v63  ;;  %v1525_v33 = vmax.f32 %v1486_v17, 0.0  ;;  %1074 = vst.msk [vmem:[#allocation2 + $0x28] sm:$0xff] %vm1068_vm5, %v1057_v22  ;;  %v1060_v23 = vadd.f32 %v1030_v52, %v996_v27  ;;  %v998_v27 = vld [vmem:[#allocation2 + $0x50] sm:$0xff] }
 0x1fe   : > { %v6020_v37 = vpop.xlane.xlu1 %2375 }
 0x1ff   : > { %v1585_v44 = vadd.f32 %v1525_v33, %v1524_v51  ;;  %1077 = vst.msk [vmem:[#allocation2 + $0x40] sm:$0xff] %vm1068_vm5, %v1060_v23  ;;  %v1489_v47 = vpop.f32.mrb[124].mxu1  ;;  %1583 = vadd.xlane.f32.xlu0 %v1582_v2 }
 0x200   : > { %v1490_v41 = vadd.f32 %v1489_v47, %v5720_v5  ;;  %v1491_v40 = vpop.f32.mrb[125].mxu1  ;;  %v6024_v50 = vpop.xlane.xlu0 %2384 }
 0x201   : > { %6958 = vst [vmem:[#allocation9_spill] sm:$0xff] %v6024_v50  ;;  %v1492_v35 = vadd.f32 %v1491_v40, %v5720_v5  ;;  %v1493_v56 = vpop.f32.mrb[126].mxu1  ;;  %1586 = vadd.xlane.f32.xlu1 %v1585_v44 }
 0x202   : > { %v1526_v63 = vmax.f32 %v1490_v41, 0.0  ;;  %v1494_v1 = vadd.f32 %v1493_v56, %v5725_v12  ;;  %v1495_v3 = vpop.f32.mrb[127].mxu1  ;;  %v1027_v25 = vpop.xlane.xlu1 %1026 }
 0x203   : > { %v1527_v14 = vmax.f32 %v1492_v35, 0.0  ;;  %v1496_v17 = vadd.f32 %v1495_v3, %v5725_v12  ;;  %v1059_v22 = vadd.f32 %v1027_v25, %v995_v31 }
 0x204   : > { %v1528_v51 = vmax.f32 %v1494_v1, 0.0  ;;  %v1036_v52 = vpop.xlane.xlu0 %1035 }
 0x205   : > { %v1588_v2 = vadd.f32 %v1527_v14, %v1526_v63  ;;  %v1529_v33 = vmax.f32 %v1496_v17, 0.0  ;;  %1076 = vst.msk [vmem:[#allocation2 + $0x38] sm:$0xff] %vm1068_vm5, %v1059_v22  ;;  %v1062_v23 = vadd.f32 %v1036_v52, %v998_v27  ;;  %v997_v17 = vld [vmem:[#allocation2 + $0x48] sm:$0xff] }
 0x206   : > { %v6030_v47 = vpop.xlane.xlu1 %2381 }
 0x207   : > { %v1591_v44 = vadd.f32 %v1529_v33, %v1528_v51  ;;  %1079 = vst.msk [vmem:[#allocation2 + $0x50] sm:$0xff] %vm1068_vm5, %v1062_v23  ;;  %v1961_v41 = vpop.f32.mrb[128].mxu1  ;;  %1589 = vadd.xlane.f32.xlu0 %v1588_v2 }
 0x208   : > { %v1962_v40 = vadd.f32 %v1961_v41, %v5573_v9  ;;  %v1963_v35 = vpop.f32.mrb[129].mxu1  ;;  %v6034_v56 = vpop.xlane.xlu0 %2390 }
 0x209   : > { %6959 = vst [vmem:[#allocation10_spill] sm:$0xff] %v6034_v56  ;;  %v1964_v1 = vadd.f32 %v1963_v35, %v5573_v9  ;;  %v1965_v3 = vpop.f32.mrb[130].mxu1  ;;  %1592 = vadd.xlane.f32.xlu1 %v1591_v44 }
 0x20a   : > { %v2040_v63 = vmax.f32 %v1962_v40, 0.0  ;;  %v1966_v25 = vadd.f32 %v1965_v3, %v5578_v10  ;;  %v1967_v31 = vpop.f32.mrb[131].mxu1  ;;  %v1033_v14 = vpop.xlane.xlu1 %1032 }
 0x20b   : > { %v2041_v22 = vmax.f32 %v1964_v1, 0.0  ;;  %v1968_v51 = vadd.f32 %v1967_v31, %v5578_v10  ;;  %v1061_v27 = vadd.f32 %v1033_v14, %v997_v17 }
 0x20c   : > { %v2042_v52 = vmax.f32 %v1966_v25, 0.0  ;;  %v6039_v2 = vpop.xlane.xlu0 %2393 }
 0x20d   : > { %6960 = vst [vmem:[#allocation11_spill] sm:$0xff] %v6039_v2  ;;  %v2088_v33 = vadd.f32 %v2041_v22, %v2040_v63  ;;  %v2043_v23 = vmax.f32 %v1968_v51, 0.0  ;;  %1078 = vst.msk [vmem:[#allocation2 + $0x48] sm:$0xff] %vm1068_vm5, %v1061_v27  ;;  %v999_v51 = vld [vmem:[#allocation2 + $0x58] sm:$0xff] }
 0x20e   : > { %v6042_v41 = vpop.xlane.xlu1 %2387 }
 0x20f   : > { %6961 = vst [vmem:[#allocation12_spill] sm:$0xff] %v6042_v41  ;;  %v2091_v44 = vadd.f32 %v2043_v23, %v2042_v52  ;;  %v1971_v40 = vpop.f32.mrb[132].mxu1  ;;  %2089 = vadd.xlane.f32.xlu0 %v2088_v33 }
 0x210   : > { %v1972_v35 = vadd.f32 %v1971_v40, %v5580_v11  ;;  %v1973_v3 = vpop.f32.mrb[133].mxu1  ;;  %v1042_v1 = vpop.xlane.xlu0 %1041 }
 0x211   : > { %v1974_v31 = vadd.f32 %v1973_v3, %v5580_v11  ;;  %v1064_v14 = vadd.f32 %v1042_v1, %v1000_v0  ;;  %v1975_v25 = vpop.f32.mrb[134].mxu1  ;;  %2092 = vadd.xlane.f32.xlu1 %v2091_v44  ;;  %v1001_v0 = vld [vmem:[#allocation2 + $0x68] sm:$0xff] }
 0x212   : > { %v2044_v17 = vmax.f32 %v1972_v35, 0.0  ;;  %v1976_v63 = vadd.f32 %v1975_v25, %v5593_v38  ;;  %v1977_v22 = vpop.f32.mrb[135].mxu1  ;;  %v1039_v27 = vpop.xlane.xlu1 %1038 }
 0x213   : > { %v2045_v2 = vmax.f32 %v1974_v31, 0.0  ;;  %1081 = vst.msk [vmem:[#allocation2 + $0x60] sm:$0xff] %vm1068_vm5, %v1064_v14  ;;  %v1978_v52 = vadd.f32 %v1977_v22, %v5593_v38  ;;  %v1063_v33 = vadd.f32 %v1039_v27, %v999_v51  ;;  %v1002_v14 = vld [vmem:[#allocation2 + $0x70] sm:$0xff] }
 0x214   : > { %v2046_v23 = vmax.f32 %v1976_v63, 0.0  ;;  %v6049_v40 = vpop.xlane.xlu0 %2396 }
 0x215   : > { %v2094_v56 = vadd.f32 %v2045_v2, %v2044_v17  ;;  %v2047_v3 = vmax.f32 %v1978_v52, 0.0  ;;  %1080 = vst.msk [vmem:[#allocation2 + $0x58] sm:$0xff] %vm1068_vm5, %v1063_v33  ;;  %v1003_v52 = vld [vmem:[#allocation2 + $0x78] sm:$0xff] }
 0x216   : > { %v1045_v44 = vpop.xlane.xlu1 %1044 }
 0x217   : > { %v2097_v35 = vadd.f32 %v2047_v3, %v2046_v23  ;;  %v1065_v1 = vadd.f32 %v1045_v44, %v1001_v0  ;;  %v1981_v25 = vpop.f32.mrb[136].mxu1  ;;  %2095 = vadd.xlane.f32.xlu0 %v2094_v56  ;;  %v1259_v44 = vld [vmem:[#allocation2] sm:$0xff] }
 0x218   : > { %v1982_v31 = vadd.f32 %v1981_v25, %v5605_v8  ;;  %v1983_v41 = vpop.f32.mrb[137].mxu1  ;;  %v1048_v50 = vpop.xlane.xlu0 %1047  ;;  %v1260_v25 = vld [vmem:[#allocation2 + $0x8] sm:$0xff] }
 0x219   : > { %1082 = vst.msk [vmem:[#allocation2 + $0x68] sm:$0xff] %vm1068_vm5, %v1065_v1  ;;  %v1984_v63 = vadd.f32 %v1983_v41, %v5605_v8  ;;  %v1066_v22 = vadd.f32 %v1048_v50, %v1002_v14  ;;  %v1985_v2 = vpop.f32.mrb[138].mxu1  ;;  %2098 = vadd.xlane.f32.xlu1 %v2097_v35 }
 0x21a   : > { %v2048_v17 = vmax.f32 %v1982_v31, 0.0  ;;  %v1986_v51 = vadd.f32 %v1985_v2, %v5624_v46  ;;  %v1987_v27 = vpop.f32.mrb[139].mxu1  ;;  %v1051_v33 = vpop.xlane.xlu1 %1050 }
 0x21b   : > { %v2049_v23 = vmax.f32 %v1984_v63, 0.0  ;;  %1083 = vst.msk [vmem:[#allocation2 + $0x70] sm:$0xff] %vm1068_vm5, %v1066_v22  ;;  %v1988_v56 = vadd.f32 %v1987_v27, %v5624_v46  ;;  %v1067_v3 = vadd.f32 %v1051_v33, %v1003_v52 }
 0x21c   : > { %v2050_v0 = vmax.f32 %v1986_v51, 0.0  ;;  %v1277_v1 = vpop.xlane.xlu0 %1276 }
 0x21d   : > { %v2100_v41 = vadd.f32 %v2049_v23, %v2048_v17  ;;  %v2051_v50 = vmax.f32 %v1988_v56, 0.0  ;;  %1084 = vst.msk [vmem:[#allocation2 + $0x78] sm:$0xff] %vm1068_vm5, %v1067_v3  ;;  %v1323_v35 = vadd.f32 %v1277_v1, %v1259_v44  ;;  %v1261_v44 = vld [vmem:[#allocation2 + $0x10] sm:$0xff] }
 0x21e   : > { %v1280_v31 = vpop.xlane.xlu1 %1279 }
 0x21f   : > { %v2103_v14 = vadd.f32 %v2051_v50, %v2050_v0  ;;  %1340 = vst.msk [vmem:[#allocation2] sm:$0xff] %vm1339_vm6, %v1323_v35  ;;  %v1324_v63 = vadd.f32 %v1280_v31, %v1260_v25  ;;  %v1991_v2 = vpop.f32.mrb[140].mxu1  ;;  %2101 = vadd.xlane.f32.xlu0 %v2100_v41  ;;  %v1262_v31 = vld [vmem:[#allocation2 + $0x18] sm:$0xff] }
 0x220   : > { %v1992_v22 = vadd.f32 %v1991_v2, %v5636_v42  ;;  %v1993_v27 = vpop.f32.mrb[141].mxu1 }
 0x221   : > { %1341 = vst.msk [vmem:[#allocation2 + $0x8] sm:$0xff] %vm1339_vm6, %v1324_v63  ;;  %v1994_v51 = vadd.f32 %v1993_v27, %v5636_v42  ;;  %v1995_v17 = vpop.f32.mrb[142].mxu1  ;;  %2104 = vadd.xlane.f32.xlu1 %v2103_v14 }
 0x222   : > { %v2052_v52 = vmax.f32 %v1992_v22, 0.0  ;;  %v1996_v33 = vadd.f32 %v1995_v17, %v5639_v45  ;;  %v1997_v23 = vpop.f32.mrb[143].mxu1 }
 0x223   : > { %v2053_v56 = vmax.f32 %v1994_v51, 0.0  ;;  %v1998_v3 = vadd.f32 %v1997_v23, %v5639_v45 }
 0x224   : > { %v2054_v0 = vmax.f32 %v1996_v33, 0.0  ;;  %v1283_v1 = vpop.xlane.xlu0 %1282 }
 0x225   : > { %v2106_v41 = vadd.f32 %v2053_v56, %v2052_v52  ;;  %v2055_v50 = vmax.f32 %v1998_v3, 0.0  ;;  %v1325_v35 = vadd.f32 %v1283_v1, %v1261_v44  ;;  %v1263_v44 = vld [vmem:[#allocation2 + $0x20] sm:$0xff] }
 0x226   : > { %v1286_v25 = vpop.xlane.xlu1 %1285 }
 0x227   : > { %v2109_v63 = vadd.f32 %v2055_v50, %v2054_v0  ;;  %1342 = vst.msk [vmem:[#allocation2 + $0x10] sm:$0xff] %vm1339_vm6, %v1325_v35  ;;  %v1326_v2 = vadd.f32 %v1286_v25, %v1262_v31  ;;  %v2001_v14 = vpop.f32.mrb[144].mxu1  ;;  %2107 = vadd.xlane.f32.xlu0 %v2106_v41  ;;  %v1264_v31 = vld [vmem:[#allocation2 + $0x28] sm:$0xff] }
 0x228   : > { %v2002_v22 = vadd.f32 %v2001_v14, %v5651_v15  ;;  %v2003_v27 = vpop.f32.mrb[145].mxu1 }
 0x229   : > { %1343 = vst.msk [vmem:[#allocation2 + $0x18] sm:$0xff] %vm1339_vm6, %v1326_v2  ;;  %v2004_v51 = vadd.f32 %v2003_v27, %v5651_v15  ;;  %v2005_v17 = vpop.f32.mrb[146].mxu1  ;;  %2110 = vadd.xlane.f32.xlu1 %v2109_v63 }
 0x22a   : > { %v2056_v52 = vmax.f32 %v2002_v22, 0.0  ;;  %v2006_v33 = vadd.f32 %v2005_v17, %v5654_v19  ;;  %v2007_v23 = vpop.f32.mrb[147].mxu1 }
 0x22b   : > { %v2057_v56 = vmax.f32 %v2004_v51, 0.0  ;;  %v2008_v3 = vadd.f32 %v2007_v23, %v5654_v19 }
 0x22c   : > { %v2058_v0 = vmax.f32 %v2006_v33, 0.0  ;;  %v1289_v1 = vpop.xlane.xlu0 %1288 }
 0x22d   : > { %v2112_v41 = vadd.f32 %v2057_v56, %v2056_v52  ;;  %v2059_v50 = vmax.f32 %v2008_v3, 0.0  ;;  %v1327_v35 = vadd.f32 %v1289_v1, %v1263_v44  ;;  %v1265_v44 = vld [vmem:[#allocation2 + $0x30] sm:$0xff] }
 0x22e   : > { %v1292_v25 = vpop.xlane.xlu1 %1291 }
 0x22f   : > { %v2115_v2 = vadd.f32 %v2059_v50, %v2058_v0  ;;  %1344 = vst.msk [vmem:[#allocation2 + $0x20] sm:$0xff] %vm1339_vm6, %v1327_v35  ;;  %v1328_v14 = vadd.f32 %v1292_v25, %v1264_v31  ;;  %v2011_v63 = vpop.f32.mrb[148].mxu1  ;;  %2113 = vadd.xlane.f32.xlu0 %v2112_v41  ;;  %v1266_v31 = vld [vmem:[#allocation2 + $0x38] sm:$0xff] }
 0x230   : > { %v2012_v22 = vadd.f32 %v2011_v63, %v5666_v49  ;;  %v2013_v27 = vpop.f32.mrb[149].mxu1 }
 0x231   : > { %1345 = vst.msk [vmem:[#allocation2 + $0x28] sm:$0xff] %vm1339_vm6, %v1328_v14  ;;  %v2014_v51 = vadd.f32 %v2013_v27, %v5666_v49  ;;  %v2015_v17 = vpop.f32.mrb[150].mxu1  ;;  %2116 = vadd.xlane.f32.xlu1 %v2115_v2 }
 0x232   : > { %v2060_v52 = vmax.f32 %v2012_v22, 0.0  ;;  %v2016_v33 = vadd.f32 %v2015_v17, %v5672_v55  ;;  %v2017_v23 = vpop.f32.mrb[151].mxu1 }
 0x233   : > { %v2061_v56 = vmax.f32 %v2014_v51, 0.0  ;;  %v2018_v3 = vadd.f32 %v2017_v23, %v5672_v55 }
 0x234   : > { %v2062_v0 = vmax.f32 %v2016_v33, 0.0  ;;  %v1295_v1 = vpop.xlane.xlu0 %1294 }
 0x235   : > { %v2118_v41 = vadd.f32 %v2061_v56, %v2060_v52  ;;  %v2063_v50 = vmax.f32 %v2018_v3, 0.0  ;;  %v1329_v35 = vadd.f32 %v1295_v1, %v1265_v44  ;;  %v1267_v44 = vld [vmem:[#allocation2 + $0x40] sm:$0xff] }
 0x236   : > { %v1298_v25 = vpop.xlane.xlu1 %1297 }
 0x237   : > { %v2121_v14 = vadd.f32 %v2063_v50, %v2062_v0  ;;  %1346 = vst.msk [vmem:[#allocation2 + $0x30] sm:$0xff] %vm1339_vm6, %v1329_v35  ;;  %v1330_v63 = vadd.f32 %v1298_v25, %v1266_v31  ;;  %v2021_v2 = vpop.f32.mrb[152].mxu1  ;;  %2119 = vadd.xlane.f32.xlu0 %v2118_v41  ;;  %v1268_v31 = vld [vmem:[#allocation2 + $0x48] sm:$0xff] }
 0x238   : > { %v2022_v22 = vadd.f32 %v2021_v2, %v5695_v30  ;;  %v2023_v27 = vpop.f32.mrb[153].mxu1 }
 0x239   : > { %1347 = vst.msk [vmem:[#allocation2 + $0x38] sm:$0xff] %vm1339_vm6, %v1330_v63  ;;  %v2024_v51 = vadd.f32 %v2023_v27, %v5695_v30  ;;  %v2025_v17 = vpop.f32.mrb[154].mxu1  ;;  %2122 = vadd.xlane.f32.xlu1 %v2121_v14 }
 0x23a   : > { %v2064_v52 = vmax.f32 %v2022_v22, 0.0  ;;  %v2026_v33 = vadd.f32 %v2025_v17, %v5702_v32  ;;  %v2027_v23 = vpop.f32.mrb[155].mxu1 }
 0x23b   : > { %v2065_v56 = vmax.f32 %v2024_v51, 0.0  ;;  %v2028_v3 = vadd.f32 %v2027_v23, %v5702_v32 }
 0x23c   : > { %v2066_v0 = vmax.f32 %v2026_v33, 0.0  ;;  %v1301_v1 = vpop.xlane.xlu0 %1300 }
 0x23d   : > { %v2124_v41 = vadd.f32 %v2065_v56, %v2064_v52  ;;  %v2067_v50 = vmax.f32 %v2028_v3, 0.0  ;;  %v1331_v35 = vadd.f32 %v1301_v1, %v1267_v44  ;;  %v1269_v44 = vld [vmem:[#allocation2 + $0x50] sm:$0xff] }
 0x23e   : > { %v1304_v25 = vpop.xlane.xlu1 %1303 }
 0x23f   : > { %v2127_v63 = vadd.f32 %v2067_v50, %v2066_v0  ;;  %1348 = vst.msk [vmem:[#allocation2 + $0x40] sm:$0xff] %vm1339_vm6, %v1331_v35  ;;  %v1332_v2 = vadd.f32 %v1304_v25, %v1268_v31  ;;  %v2031_v14 = vpop.f32.mrb[156].mxu1  ;;  %2125 = vadd.xlane.f32.xlu0 %v2124_v41  ;;  %v1270_v25 = vld [vmem:[#allocation2 + $0x58] sm:$0xff] }
 0x240   : > { %v2032_v22 = vadd.f32 %v2031_v14, %v5720_v5  ;;  %v2033_v27 = vpop.f32.mrb[157].mxu1 }
 0x241   : > { %1349 = vst.msk [vmem:[#allocation2 + $0x48] sm:$0xff] %vm1339_vm6, %v1332_v2  ;;  %v2034_v51 = vadd.f32 %v2033_v27, %v5720_v5  ;;  %v2035_v17 = vpop.f32.mrb[158].mxu1  ;;  %2128 = vadd.xlane.f32.xlu1 %v2127_v63 }
 0x242   : > { %v2068_v52 = vmax.f32 %v2032_v22, 0.0  ;;  %v2036_v33 = vadd.f32 %v2035_v17, %v5725_v12  ;;  %v2037_v23 = vpop.f32.mrb[159].mxu1 }
 0x243   : > { %v2069_v56 = vmax.f32 %v2034_v51, 0.0  ;;  %v2038_v3 = vadd.f32 %v2037_v23, %v5725_v12 }
 0x244   : > { %v2070_v0 = vmax.f32 %v2036_v33, 0.0  ;;  %v1307_v1 = vpop.xlane.xlu0 %1306 }
 0x245   : > { %v2130_v41 = vadd.f32 %v2069_v56, %v2068_v52  ;;  %v2071_v50 = vmax.f32 %v2038_v3, 0.0  ;;  %v1333_v35 = vadd.f32 %v1307_v1, %v1269_v44  ;;  %v1271_v44 = vld [vmem:[#allocation2 + $0x60] sm:$0xff] }
 0x246   : > { %v1310_v31 = vpop.xlane.xlu1 %1309 }
 0x247   : > { %v2133_v2 = vadd.f32 %v2071_v50, %v2070_v0  ;;  %1350 = vst.msk [vmem:[#allocation2 + $0x50] sm:$0xff] %vm1339_vm6, %v1333_v35  ;;  %v1334_v14 = vadd.f32 %v1310_v31, %v1270_v25  ;;  %v2503_v63 = vpop.f32.mrb[160].mxu1  ;;  %2131 = vadd.xlane.f32.xlu0 %v2130_v41  ;;  %v1272_v25 = vld [vmem:[#allocation2 + $0x68] sm:$0xff] }
 0x248   : > { %v2504_v22 = vadd.f32 %v2503_v63, %v5573_v9  ;;  %v2505_v27 = vpop.f32.mrb[161].mxu1 }
 0x249   : > { %1351 = vst.msk [vmem:[#allocation2 + $0x58] sm:$0xff] %vm1339_vm6, %v1334_v14  ;;  %v2506_v51 = vadd.f32 %v2505_v27, %v5573_v9  ;;  %v2507_v17 = vpop.f32.mrb[162].mxu1  ;;  %2134 = vadd.xlane.f32.xlu1 %v2133_v2 }
 0x24a   : > { %v2582_v52 = vmax.f32 %v2504_v22, 0.0  ;;  %v2508_v33 = vadd.f32 %v2507_v17, %v5578_v10  ;;  %v2509_v23 = vpop.f32.mrb[163].mxu1 }
 0x24b   : > { %v2583_v56 = vmax.f32 %v2506_v51, 0.0  ;;  %v2510_v3 = vadd.f32 %v2509_v23, %v5578_v10 }
 0x24c   : > { %v2584_v0 = vmax.f32 %v2508_v33, 0.0  ;;  %v1313_v1 = vpop.xlane.xlu0 %1312 }
 0x24d   : > { %v2630_v41 = vadd.f32 %v2583_v56, %v2582_v52  ;;  %v2585_v50 = vmax.f32 %v2510_v3, 0.0  ;;  %v1335_v35 = vadd.f32 %v1313_v1, %v1271_v44  ;;  %v1273_v3 = vld [vmem:[#allocation2 + $0x70] sm:$0xff] }
 0x24e   : > { %v1316_v31 = vpop.xlane.xlu1 %1315 }
 0x24f   : > { %v2633_v14 = vadd.f32 %v2585_v50, %v2584_v0  ;;  %1352 = vst.msk [vmem:[#allocation2 + $0x60] sm:$0xff] %vm1339_vm6, %v1335_v35  ;;  %v1336_v9 = vadd.f32 %v1316_v31, %v1272_v25  ;;  %v2513_v2 = vpop.f32.mrb[164].mxu1  ;;  %2631 = vadd.xlane.f32.xlu0 %v2630_v41  ;;  %v1274_v50 = vld [vmem:[#allocation2 + $0x78] sm:$0xff] }
 0x250   : > { %v2514_v63 = vadd.f32 %v2513_v2, %v5580_v11  ;;  %v2515_v22 = vpop.f32.mrb[165].mxu1 }
 0x251   : > { %1353 = vst.msk [vmem:[#allocation2 + $0x68] sm:$0xff] %vm1339_vm6, %v1336_v9  ;;  %v2516_v10 = vadd.f32 %v2515_v22, %v5580_v11  ;;  %v2517_v27 = vpop.f32.mrb[166].mxu1  ;;  %2634 = vadd.xlane.f32.xlu1 %v2633_v14 }
 0x252   : > { %v2586_v51 = vmax.f32 %v2514_v63, 0.0  ;;  %v2518_v17 = vadd.f32 %v2517_v27, %v5593_v38  ;;  %v2519_v52 = vpop.f32.mrb[167].mxu1 }
 0x253   : > { %v2587_v33 = vmax.f32 %v2516_v10, 0.0  ;;  %v2520_v23 = vadd.f32 %v2519_v52, %v5593_v38  ;;  %v1530_v52 = vld [vmem:[#allocation2] sm:$0xff] }
 0x254   : > { %v2588_v56 = vmax.f32 %v2518_v17, 0.0  ;;  %v1319_v0 = vpop.xlane.xlu0 %1318 }
 0x255   : > { %v2636_v44 = vadd.f32 %v2587_v33, %v2586_v51  ;;  %v2589_v1 = vmax.f32 %v2520_v23, 0.0  ;;  %v1337_v41 = vadd.f32 %v1319_v0, %v1273_v3  ;;  %v1531_v0 = vld [vmem:[#allocation2 + $0x8] sm:$0xff] }
 0x256   : > { %v1322_v35 = vpop.xlane.xlu1 %1321 }
 0x257   : > { %v2639_v25 = vadd.f32 %v2589_v1, %v2588_v56  ;;  %1354 = vst.msk [vmem:[#allocation2 + $0x70] sm:$0xff] %vm1339_vm6, %v1337_v41  ;;  %v1338_v11 = vadd.f32 %v1322_v35, %v1274_v50  ;;  %v2523_v31 = vpop.f32.mrb[168].mxu1  ;;  %2637 = vadd.xlane.f32.xlu0 %v2636_v44 }
 0x258   : > { %v2524_v14 = vadd.f32 %v2523_v31, %v5605_v8  ;;  %v2525_v9 = vpop.f32.mrb[169].mxu1 }
 0x259   : > { %1355 = vst.msk [vmem:[#allocation2 + $0x78] sm:$0xff] %vm1339_vm6, %v1338_v11  ;;  %v2526_v38 = vadd.f32 %v2525_v9, %v5605_v8  ;;  %v2527_v2 = vpop.f32.mrb[170].mxu1  ;;  %2640 = vadd.xlane.f32.xlu1 %v2639_v25 }
 0x25a   : > { %v2590_v63 = vmax.f32 %v2524_v14, 0.0  ;;  %v2528_v22 = vadd.f32 %v2527_v2, %v5624_v46  ;;  %v2529_v10 = vpop.f32.mrb[171].mxu1 }
 0x25b   : > { %v2591_v27 = vmax.f32 %v2526_v38, 0.0  ;;  %v2530_v51 = vadd.f32 %v2529_v10, %v5624_v46 }
 0x25c   : > { %v2592_v17 = vmax.f32 %v2528_v22, 0.0  ;;  %v1548_v33 = vpop.xlane.xlu0 %1547 }
 0x25d   : > { %v2642_v23 = vadd.f32 %v2591_v27, %v2590_v63  ;;  %v2593_v56 = vmax.f32 %v2530_v51, 0.0  ;;  %v1594_v3 = vadd.f32 %v1548_v33, %v1530_v52  ;;  %v1532_v63 = vld [vmem:[#allocation2 + $0x10] sm:$0xff]  ;;  %v1533_v52 = vld [vmem:[#allocation2 + $0x18] sm:$0xff] }
 0x25e   : > { %v1551_v44 = vpop.xlane.xlu1 %1550 }
 0x25f   : > { %v2645_v1 = vadd.f32 %v2593_v56, %v2592_v17  ;;  %1611 = vst.msk [vmem:[#allocation2] sm:$0xff] %vm1610_vm7, %v1594_v3  ;;  %v1595_v8 = vadd.f32 %v1551_v44, %v1531_v0  ;;  %v2533_v41 = vpop.f32.mrb[172].mxu1  ;;  %2643 = vadd.xlane.f32.xlu0 %v2642_v23 }
 0x260   : > { %v2534_v50 = vadd.f32 %v2533_v41, %v5636_v42  ;;  %v2535_v35 = vpop.f32.mrb[173].mxu1 }
 0x261   : > { %1612 = vst.msk [vmem:[#allocation2 + $0x8] sm:$0xff] %vm1610_vm7, %v1595_v8  ;;  %v2536_v46 = vadd.f32 %v2535_v35, %v5636_v42  ;;  %v2537_v25 = vpop.f32.mrb[174].mxu1  ;;  %2646 = vadd.xlane.f32.xlu1 %v2645_v1 }
 0x262   : > { %v2594_v11 = vmax.f32 %v2534_v50, 0.0  ;;  %v2538_v31 = vadd.f32 %v2537_v25, %v5639_v45  ;;  %v2539_v14 = vpop.f32.mrb[175].mxu1  ;;  %v1534_v25 = vld [vmem:[#allocation2 + $0x20] sm:$0xff] }
 0x263   : > { %v2595_v9 = vmax.f32 %v2536_v46, 0.0  ;;  %v2540_v38 = vadd.f32 %v2539_v14, %v5639_v45  ;;  %2399 = vadd.xlane.f32.xlu0 %v5860_v6 }
 0x264   : > { %v2596_v2 = vmax.f32 %v2538_v31, 0.0  ;;  %v1554_v22 = vpop.xlane.xlu0 %1553 }
 0x265   : > { %v2648_v10 = vadd.f32 %v2595_v9, %v2594_v11  ;;  %v2597_v27 = vmax.f32 %v2540_v38, 0.0  ;;  %v1596_v51 = vadd.f32 %v1554_v22, %v1532_v63 }
 0x266   : > { %v1557_v17 = vpop.xlane.xlu1 %1556  ;;  %v1801_v42 = vld [vmem:[#allocation2] sm:$0xff] }
 0x267   : > { %v2651_v33 = vadd.f32 %v2597_v27, %v2596_v2  ;;  %1613 = vst.msk [vmem:[#allocation2 + $0x10] sm:$0xff] %vm1610_vm7, %v1596_v51  ;;  %v1597_v23 = vadd.f32 %v1557_v17, %v1533_v52  ;;  %v2543_v56 = vpop.f32.mrb[176].mxu1  ;;  %2649 = vadd.xlane.f32.xlu1 %v2648_v10  ;;  %2402 = vadd.xlane.f32.xlu0 %v5873_v29 }
 0x268   : > { %v1865_v45 = vadd.f32 %v5901_v54, %v1801_v42  ;;  %v2544_v6 = vadd.f32 %v2543_v56, %v5651_v15  ;;  %v2545_v3 = vpop.f32.mrb[177].mxu1  ;;  %v1802_v0 = vld [vmem:[#allocation2 + $0x8] sm:$0xff] }
 0x269   : > { %1614 = vst.msk [vmem:[#allocation2 + $0x18] sm:$0xff] %vm1610_vm7, %v1597_v23  ;;  %v2546_v44 = vadd.f32 %v2545_v3, %v5651_v15  ;;  %v2547_v1 = vpop.f32.mrb[178].mxu1  ;;  %v1866_v8 = vadd.f32 %v5906_v61, %v1802_v0  ;;  %v1535_v61 = vld [vmem:[#allocation2 + $0x28] sm:$0xff] }
 0x26a   : > { %1882 = vst.msk [vmem:[#allocation2] sm:$0xff] %vm1881_vm8, %v1865_v45  ;;  %v2598_v41 = vmax.f32 %v2544_v6, 0.0  ;;  %v2548_v50 = vadd.f32 %v2547_v1, %v5654_v19  ;;  %v2549_v35 = vpop.f32.mrb[179].mxu1  ;;  %v1536_v6 = vld [vmem:[#allocation2 + $0x30] sm:$0xff] }
 0x26b   : > { %v2599_v29 = vmax.f32 %v2546_v44, 0.0  ;;  %v2550_v54 = vadd.f32 %v2549_v35, %v5654_v19  ;;  %2652 = vadd.xlane.f32.xlu1 %v2651_v33  ;;  %2405 = vadd.xlane.f32.xlu0 %v5876_v34  ;;  %1883 = vst.msk [vmem:[#allocation2 + $0x8] sm:$0xff] %vm1881_vm8, %v1866_v8  ;;  %v1537_v8 = vld [vmem:[#allocation2 + $0x38] sm:$0xff] }
 0x26c   : > { %v2600_v46 = vmax.f32 %v2548_v50, 0.0  ;;  %v1560_v15 = vpop.xlane.xlu0 %1559 }
 0x26d   : > { %v2654_v11 = vadd.f32 %v2599_v29, %v2598_v41  ;;  %v2601_v31 = vmax.f32 %v2550_v54, 0.0  ;;  %v1598_v14 = vadd.f32 %v1560_v15, %v1534_v25 }
 0x26e   : > { %v1563_v9 = vpop.xlane.xlu1 %1562  ;;  %v1803_v38 = vld [vmem:[#allocation2 + $0x10] sm:$0xff] }
 0x26f   : > { %v2657_v2 = vadd.f32 %v2601_v31, %v2600_v46  ;;  %1615 = vst.msk [vmem:[#allocation2 + $0x20] sm:$0xff] %vm1610_vm7, %v1598_v14  ;;  %v1599_v63 = vadd.f32 %v1563_v9, %v1535_v61  ;;  %v2553_v22 = vpop.f32.mrb[180].mxu1  ;;  %2655 = vadd.xlane.f32.xlu1 %v2654_v11  ;;  %v1867_v19 = vadd.f32 %v5916_v21, %v1803_v38 }
 0x270   : > { %v2554_v34 = vadd.f32 %v2553_v22, %v5666_v49  ;;  %v2555_v10 = vpop.f32.mrb[181].mxu1  ;;  %v1804_v27 = vld [vmem:[#allocation2 + $0x18] sm:$0xff] }
 0x271   : > { %1616 = vst.msk [vmem:[#allocation2 + $0x28] sm:$0xff] %vm1610_vm7, %v1599_v63  ;;  %v2556_v51 = vadd.f32 %v2555_v10, %v5666_v49  ;;  %v2557_v17 = vpop.f32.mrb[182].mxu1  ;;  %v1868_v52 = vadd.f32 %v5912_v13, %v1804_v27  ;;  %v1539_v10 = vld [vmem:[#allocation2 + $0x48] sm:$0xff] }
 0x272   : > { %1884 = vst.msk [vmem:[#allocation2 + $0x10] sm:$0xff] %vm1881_vm8, %v1867_v19  ;;  %v2602_v42 = vmax.f32 %v2554_v34, 0.0  ;;  %v2558_v33 = vadd.f32 %v2557_v17, %v5672_v55  ;;  %v2559_v23 = vpop.f32.mrb[183].mxu1 }
 0x273   : > { %v2603_v56 = vmax.f32 %v2556_v51, 0.0  ;;  %v2560_v21 = vadd.f32 %v2559_v23, %v5672_v55  ;;  %2658 = vadd.xlane.f32.xlu1 %v2657_v2  ;;  %1885 = vst.msk [vmem:[#allocation2 + $0x18] sm:$0xff] %vm1881_vm8, %v1868_v52  ;;  %v1538_v2 = vld [vmem:[#allocation2 + $0x40] sm:$0xff] }
 0x274   : > { %v2604_v45 = vmax.f32 %v2558_v33, 0.0  ;;  %v1566_v3 = vpop.xlane.xlu0 %1565 }
 0x275   : > { %v2660_v0 = vadd.f32 %v2603_v56, %v2602_v42  ;;  %v2605_v49 = vmax.f32 %v2560_v21, 0.0  ;;  %v1600_v44 = vadd.f32 %v1566_v3, %v1536_v6 }
 0x276   : > { %v1569_v1 = vpop.xlane.xlu1 %1568  ;;  %v1805_v41 = vld [vmem:[#allocation2 + $0x20] sm:$0xff] }
 0x277   : > { %v2663_v13 = vadd.f32 %v2605_v49, %v2604_v45  ;;  %1617 = vst.msk [vmem:[#allocation2 + $0x30] sm:$0xff] %vm1610_vm7, %v1600_v44  ;;  %v1601_v50 = vadd.f32 %v1569_v1, %v1537_v8  ;;  %v2563_v35 = vpop.f32.mrb[184].mxu1  ;;  %2661 = vadd.xlane.f32.xlu1 %v2660_v0  ;;  %v1869_v55 = vadd.f32 %v5927_v48, %v1805_v41  ;;  %v1540_v44 = vld [vmem:[#allocation2 + $0x50] sm:$0xff] }
 0x278   : > { %v2564_v29 = vadd.f32 %v2563_v35, %v5695_v30  ;;  %v2565_v54 = vpop.f32.mrb[185].mxu1  ;;  %v1806_v46 = vld [vmem:[#allocation2 + $0x28] sm:$0xff] }
 0x279   : > { %1618 = vst.msk [vmem:[#allocation2 + $0x38] sm:$0xff] %vm1610_vm7, %v1601_v50  ;;  %v2566_v25 = vadd.f32 %v2565_v54, %v5695_v30  ;;  %v2567_v15 = vpop.f32.mrb[186].mxu1  ;;  %2664 = vadd.xlane.f32.xlu0 %v2663_v13  ;;  %v1870_v11 = vadd.f32 %v5932_v59, %v1806_v46  ;;  %v1541_v13 = vld [vmem:[#allocation2 + $0x58] sm:$0xff]  ;;  %v1542_v46 = vld [vmem:[#allocation2 + $0x60] sm:$0xff] }
 0x27a   : > { %1886 = vst.msk [vmem:[#allocation2 + $0x20] sm:$0xff] %vm1881_vm8, %v1869_v55  ;;  %v2606_v31 = vmax.f32 %v2564_v29, 0.0  ;;  %v2568_v14 = vadd.f32 %v2567_v15, %v5702_v32  ;;  %v2569_v9 = vpop.f32.mrb[187].mxu1 }
 0x27b   : > { %v2607_v61 = vmax.f32 %v2566_v25, 0.0  ;;  %v2570_v48 = vadd.f32 %v2569_v9, %v5702_v32  ;;  %1887 = vst.msk [vmem:[#allocation2 + $0x28] sm:$0xff] %vm1881_vm8, %v1870_v11  ;;  %v1543_v11 = vld [vmem:[#allocation2 + $0x68] sm:$0xff] }
 0x27c   : > { %v2608_v38 = vmax.f32 %v2568_v14, 0.0  ;;  %v1572_v63 = vpop.xlane.xlu0 %1571 }
 0x27d   : > { %v2666_v22 = vadd.f32 %v2607_v61, %v2606_v31  ;;  %v2609_v30 = vmax.f32 %v2570_v48, 0.0  ;;  %v1602_v19 = vadd.f32 %v1572_v63, %v1538_v2  ;;  %v1544_v48 = vld [vmem:[#allocation2 + $0x70] sm:$0xff]  ;;  %v1545_v63 = vld [vmem:[#allocation2 + $0x78] sm:$0xff] }
 0x27e   : > { %v1575_v34 = vpop.xlane.xlu1 %1574  ;;  %v1807_v27 = vld [vmem:[#allocation2 + $0x30] sm:$0xff] }
 0x27f   : > { %v2669_v51 = vadd.f32 %v2609_v30, %v2608_v38  ;;  %1619 = vst.msk [vmem:[#allocation2 + $0x40] sm:$0xff] %vm1610_vm7, %v1602_v19  ;;  %v1603_v59 = vadd.f32 %v1575_v34, %v1539_v10  ;;  %v2573_v17 = vpop.f32.mrb[188].mxu1  ;;  %2667 = vadd.xlane.f32.xlu1 %v2666_v22  ;;  %v1871_v52 = vadd.f32 %v5942_v36, %v1807_v27  ;;  %v2072_v10 = vld [vmem:[#allocation2] sm:$0xff] }
 0x280   : > { %v2574_v32 = vadd.f32 %v2573_v17, %v5720_v5  ;;  %v2575_v42 = vpop.f32.mrb[189].mxu1  ;;  %v1808_v33 = vld [vmem:[#allocation2 + $0x38] sm:$0xff] }
 0x281   : > { %1620 = vst.msk [vmem:[#allocation2 + $0x48] sm:$0xff] %vm1610_vm7, %v1603_v59  ;;  %v2576_v23 = vadd.f32 %v2575_v42, %v5720_v5  ;;  %v2577_v56 = vpop.f32.mrb[190].mxu1  ;;  %2670 = vadd.xlane.f32.xlu0 %v2669_v51  ;;  %v1872_v21 = vadd.f32 %v5937_v39, %v1808_v33  ;;  %v2073_v59 = vld [vmem:[#allocation2 + $0x8] sm:$0xff]  ;;  %v2764_v33 = vld [vmem:[%s6949_s4] sm:$0xff] }
 0x282   : > { %1888 = vst.msk [vmem:[#allocation2 + $0x30] sm:$0xff] %vm1881_vm8, %v1871_v52  ;;  %v2610_v45 = vmax.f32 %v2574_v32, 0.0  ;;  %v2578_v6 = vadd.f32 %v2577_v56, %v5725_v12  ;;  %v2579_v3 = vpop.f32.mrb[191].mxu1  ;;  %v2074_v56 = vld [vmem:[#allocation2 + $0x10] sm:$0xff] }
 0x283   : > { %v2611_v0 = vmax.f32 %v2576_v23, 0.0  ;;  %v2580_v36 = vadd.f32 %v2579_v3, %v5725_v12  ;;  %1889 = vst.msk [vmem:[#allocation2 + $0x38] sm:$0xff] %vm1881_vm8, %v1872_v21  ;;  %v2768_v23 = vld [vmem:[%s6949_s4 + $0x20] sm:$0xff] }
 0x284   : > { %v2612_v49 = vmax.f32 %v2578_v6, 0.0  ;;  %v1578_v1 = vpop.xlane.xlu0 %1577  ;;  %v4572_v6 = vcombine.high %v2764_v33, %v2768_v23 }
 0x285   : > { %v2672_v8 = vadd.f32 %v2611_v0, %v2610_v45  ;;  %v2613_v5 = vmax.f32 %v2580_v36, 0.0  ;;  %v1604_v41 = vadd.f32 %v1578_v1, %v1540_v44  ;;  %v4571_v45 = vcombine.low %v2764_v33, %v2768_v23  ;;  %v2780_v36 = vld [vmem:[%s6949_s4 + $0x80] sm:$0xff]  ;;  %v2765_v44 = vld [vmem:[%s6949_s4 + $0x8] sm:$0xff] }
 0x286   : > { %v1581_v50 = vpop.xlane.xlu1 %1580  ;;  %v1809_v35 = vld [vmem:[#allocation2 + $0x40] sm:$0xff]  ;;  %3190 = vmatprep.subr.bf16.mxu0 %v4572_v6  ;;  %v2809_v6 = vld [vmem:[%s6949_s4 + $0x168] sm:$0xff] }
 0x287   : > { %v2675_v55 = vadd.f32 %v2613_v5, %v2612_v49  ;;  %1621 = vst.msk [vmem:[#allocation2 + $0x50] sm:$0xff] %vm1610_vm7, %v1604_v41  ;;  %v1605_v39 = vadd.f32 %v1581_v50, %v1541_v13  ;;  %2673 = vadd.xlane.f32.xlu1 %v2672_v8  ;;  %v1873_v29 = vadd.f32 %v5953_v26, %v1809_v35  ;;  %v2784_v49 = vld [vmem:[%s6949_s4 + $0xa0] sm:$0xff]  ;;  %v2075_v8 = vld [vmem:[#allocation2 + $0x18] sm:$0xff]  ;;  %v2769_v13 = vld [vmem:[%s6949_s4 + $0x28] sm:$0xff] }
 0x288   : > { %v1810_v54 = vld [vmem:[#allocation2 + $0x48] sm:$0xff]  ;;  %3191 = vmatpush1.bf16.msra.mxu0 %v4571_v45 }
 0x289   : > { %1622 = vst.msk [vmem:[#allocation2 + $0x58] sm:$0xff] %vm1610_vm7, %v1605_v39  ;;  %2676 = vadd.xlane.f32.xlu0 %v2675_v55  ;;  %v1874_v12 = vadd.f32 %v5944_v43, %v1810_v54  ;;  %v4573_v55 = vcombine.low %v2765_v44, %v2769_v13  ;;  %v4574_v39 = vcombine.high %v2765_v44, %v2769_v13  ;;  %v2777_v54 = vld [vmem:[%s6949_s4 + $0x68] sm:$0xff] }
 0x28a   : > { %1890 = vst.msk [vmem:[#allocation2 + $0x40] sm:$0xff] %vm1881_vm8, %v1873_v29  ;;  %v2773_v29 = vld [vmem:[%s6949_s4 + $0x48] sm:$0xff] }
 0x28b   : > { %1891 = vst.msk [vmem:[#allocation2 + $0x48] sm:$0xff] %vm1881_vm8, %v1874_v12  ;;  %3231 = vmatprep.subr.bf16.mxu1 %v4574_v39  ;;  %v2805_v45 = vld [vmem:[%s6949_s4 + $0x148] sm:$0xff] }
 0x28c   : > { %v1584_v25 = vpop.xlane.xlu0 %1583  ;;  %3232 = vmatpush1.bf16.msra.mxu1 %v4573_v55  ;;  %v4614_v13 = vcombine.high %v2805_v45, %v2809_v6  ;;  %v2813_v55 = vld [vmem:[%s6949_s4 + $0x188] sm:$0xff] }
 0x28d   : > { %v1606_v15 = vadd.f32 %v1584_v25, %v1542_v46  ;;  %v4588_v46 = vcombine.high %v2780_v36, %v2784_v49  ;;  %v4582_v25 = vcombine.high %v2773_v29, %v2777_v54  ;;  %v2817_v39 = vld [vmem:[%s6949_s4 + $0x1a8] sm:$0xff] }
 0x28e   : > { %v1587_v31 = vpop.xlane.xlu1 %1586  ;;  %v1811_v14 = vld [vmem:[#allocation2 + $0x50] sm:$0xff] }
 0x28f   : > { %1623 = vst.msk [vmem:[#allocation2 + $0x60] sm:$0xff] %vm1610_vm7, %v1606_v15  ;;  %v1607_v9 = vadd.f32 %v1587_v31, %v1543_v11  ;;  %v1875_v26 = vadd.f32 %v5970_v24, %v1811_v14  ;;  %v2781_v15 = vld [vmem:[%s6949_s4 + $0x88] sm:$0xff]  ;;  %v2788_v11 = vld [vmem:[%s6949_s4 + $0xc0] sm:$0xff]  ;;  %3233 = vmatprep.subr.bf16.mxu1 %v4582_v25  ;;  %v4622_v25 = vcombine.high %v2813_v55, %v2817_v39 }
 0x290   : > { %v1812_v61 = vld [vmem:[#allocation2 + $0x58] sm:$0xff]  ;;  %v2792_v31 = vld [vmem:[%s6949_s4 + $0xe0] sm:$0xff]  ;;  %v2785_v14 = vld [vmem:[%s6949_s4 + $0xa8] sm:$0xff] }
 0x291   : > { %1624 = vst.msk [vmem:[#allocation2 + $0x68] sm:$0xff] %vm1610_vm7, %v1607_v9  ;;  %v1876_v43 = vadd.f32 %v5958_v58, %v1812_v61  ;;  %v4581_v9 = vcombine.low %v2773_v29, %v2777_v54  ;;  %v2076_v61 = vld [vmem:[#allocation2 + $0x20] sm:$0xff] }
 0x292   : > { %1892 = vst.msk [vmem:[#allocation2 + $0x50] sm:$0xff] %vm1881_vm8, %v1875_v26  ;;  %v4587_v26 = vcombine.low %v2780_v36, %v2784_v49  ;;  %v2079_v49 = vld [vmem:[#allocation2 + $0x38] sm:$0xff]  ;;  %v2820_v29 = vld [vmem:[%s6949_s4 + $0x1c0] sm:$0xff] }
 0x293   : > { %1893 = vst.msk [vmem:[#allocation2 + $0x58] sm:$0xff] %vm1881_vm8, %v1876_v43  ;;  %3234 = vmatpush1.bf16.msra.mxu1 %v4581_v9  ;;  %v2824_v54 = vld [vmem:[%s6949_s4 + $0x1e0] sm:$0xff] }
 0x294   : > { %v1590_v38 = vpop.xlane.xlu0 %1589 }
 0x295   : > { %v1608_v2 = vadd.f32 %v1590_v38, %v1544_v48  ;;  %v4596_v48 = vcombine.high %v2788_v11, %v2792_v31  ;;  %v2789_v38 = vld [vmem:[%s6949_s4 + $0xc8] sm:$0xff] }
 0x296   : > { %v1593_v22 = vpop.xlane.xlu1 %1592  ;;  %v1813_v30 = vld [vmem:[#allocation2 + $0x60] sm:$0xff] }
 0x297   : > { %1625 = vst.msk [vmem:[#allocation2 + $0x70] sm:$0xff] %vm1610_vm7, %v1608_v2  ;;  %v1609_v19 = vadd.f32 %v1593_v22, %v1545_v63  ;;  %v1877_v24 = vadd.f32 %v5980_v28, %v1813_v30  ;;  %v2793_v2 = vld [vmem:[%s6949_s4 + $0xe8] sm:$0xff]  ;;  %v2796_v22 = vld [vmem:[%s6949_s4 + $0x100] sm:$0xff] }
 0x298   : > { %v1814_v34 = vld [vmem:[#allocation2 + $0x68] sm:$0xff]  ;;  %v2800_v30 = vld [vmem:[%s6949_s4 + $0x120] sm:$0xff]  ;;  %v4597_v33 = vcombine.low %v2789_v38, %v2793_v2 }
 0x299   : > { %1626 = vst.msk [vmem:[#allocation2 + $0x78] sm:$0xff] %vm1610_vm7, %v1609_v19  ;;  %v1878_v58 = vadd.f32 %v5966_v20, %v1814_v34  ;;  %v4603_v23 = vcombine.low %v2796_v22, %v2800_v30 }
 0x29a   : > { %1894 = vst.msk [vmem:[#allocation2 + $0x60] sm:$0xff] %vm1881_vm8, %v1877_v24  ;;  %v2077_v24 = vld [vmem:[#allocation2 + $0x28] sm:$0xff] }
 0x29b   : > { %1895 = vst.msk [vmem:[#allocation2 + $0x68] sm:$0xff] %vm1881_vm8, %v1878_v58  ;;  %v4595_v58 = vcombine.low %v2788_v11, %v2792_v31  ;;  %v2821_v11 = vld [vmem:[%s6949_s4 + $0x1c8] sm:$0xff] }
 0x29c   : > { %v2090_v27 = vpop.xlane.xlu0 %2089  ;;  %v2825_v31 = vld [vmem:[%s6949_s4 + $0x1e8] sm:$0xff] }
 0x29d   : > { %v2136_v51 = vadd.f32 %v2090_v27, %v2072_v10  ;;  %v4589_v10 = vcombine.low %v2781_v15, %v2785_v14 }
 0x29e   : > { %v2093_v17 = vpop.xlane.xlu1 %2092  ;;  %v1815_v52 = vld [vmem:[#allocation2 + $0x70] sm:$0xff] }
 0x29f   : > { %2153 = vst.msk [vmem:[#allocation2] sm:$0xff] %vm2152_vm9, %v2136_v51  ;;  %v2137_v32 = vadd.f32 %v2093_v17, %v2073_v59  ;;  %v1879_v28 = vadd.f32 %v5988_v18, %v1815_v52  ;;  %v2772_v18 = vld [vmem:[%s6949_s4 + $0x40] sm:$0xff]  ;;  %v4598_v59 = vcombine.high %v2789_v38, %v2793_v2  ;;  %v4604_v52 = vcombine.high %v2796_v22, %v2800_v30 }
 0x2a0   : > { %v1816_v42 = vld [vmem:[#allocation2 + $0x78] sm:$0xff]  ;;  %v4630_v2 = vcombine.high %v2821_v11, %v2825_v31  ;;  %v4629_v30 = vcombine.low %v2821_v11, %v2825_v31 }
 0x2a1   : > { %2154 = vst.msk [vmem:[#allocation2 + $0x8] sm:$0xff] %vm2152_vm9, %v2137_v32  ;;  %v1880_v20 = vadd.f32 %v5976_v60, %v1816_v42  ;;  %v2776_v60 = vld [vmem:[%s6949_s4 + $0x60] sm:$0xff]  ;;  %v2797_v32 = vld [vmem:[%s6949_s4 + $0x108] sm:$0xff] }
 0x2a2   : > { %1896 = vst.msk [vmem:[#allocation2 + $0x70] sm:$0xff] %vm1881_vm8, %v1879_v28  ;;  %v4580_v0 = vcombine.high %v2772_v18, %v2776_v60  ;;  %v4579_v41 = vcombine.low %v2772_v18, %v2776_v60  ;;  %v2801_v28 = vld [vmem:[%s6949_s4 + $0x128] sm:$0xff]  ;;  %v2804_v42 = vld [vmem:[%s6949_s4 + $0x140] sm:$0xff] }
 0x2a3   : > { %1897 = vst.msk [vmem:[#allocation2 + $0x78] sm:$0xff] %vm1881_vm8, %v1880_v20  ;;  %v2808_v20 = vld [vmem:[%s6949_s4 + $0x160] sm:$0xff]  ;;  %v4606_v18 = vcombine.high %v2797_v32, %v2801_v28 }
 0x2a4   : > { %v2096_v21 = vpop.xlane.xlu0 %2095  ;;  %3192 = vmatprep.subr.bf16.mxu0 %v4580_v0  ;;  %v2816_v0 = vld [vmem:[%s6949_s4 + $0x1a0] sm:$0xff] }
 0x2a5   : > { %v2138_v3 = vadd.f32 %v2096_v21, %v2074_v56  ;;  %3193 = vmatpush1.bf16.msra.mxu0 %v4579_v41  ;;  %v2078_v56 = vld [vmem:[#allocation2 + $0x30] sm:$0xff] }
 0x2a6   : > { %v2099_v1 = vpop.xlane.xlu1 %2098  ;;  %v2343_v5 = vld [vmem:[#allocation2] sm:$0xff]  ;;  %3194 = vmatprep.subr.bf16.mxu0 %v4588_v46 }
 0x2a7   : > { %2155 = vst.msk [vmem:[#allocation2 + $0x10] sm:$0xff] %vm2152_vm9, %v2138_v3  ;;  %v2139_v50 = vadd.f32 %v2099_v1, %v2075_v8  ;;  %v2407_v35 = vadd.f32 %v5994_v4, %v2343_v5  ;;  %v2812_v3 = vld [vmem:[%s6949_s4 + $0x180] sm:$0xff]  ;;  %v4611_v1 = vcombine.low %v2804_v42, %v2808_v20  ;;  %v4605_v8 = vcombine.low %v2797_v32, %v2801_v28 }
 0x2a8   : > { %v2344_v12 = vld [vmem:[#allocation2 + $0x8] sm:$0xff]  ;;  %v4619_v46 = vcombine.low %v2812_v3, %v2816_v0  ;;  %v2084_v32 = vld [vmem:[#allocation2 + $0x60] sm:$0xff] }
 0x2a9   : > { %2156 = vst.msk [vmem:[#allocation2 + $0x18] sm:$0xff] %vm2152_vm9, %v2139_v50  ;;  %v2408_v4 = vadd.f32 %v5991_v62, %v2344_v12  ;;  %v4590_v62 = vcombine.high %v2781_v15, %v2785_v14  ;;  %3195 = vmatpush1.bf16.msra.mxu0 %v4587_v26  ;;  %v4613_v12 = vcombine.low %v2805_v45, %v2809_v6  ;;  %v2080_v15 = vld [vmem:[#allocation2 + $0x40] sm:$0xff]  ;;  %v2081_v26 = vld [vmem:[#allocation2 + $0x48] sm:$0xff]  ;;  %v2086_v6 = vld [vmem:[#allocation2 + $0x70] sm:$0xff] }
 0x2aa   : > { %2424 = vst.msk [vmem:[#allocation2] sm:$0xff] %vm2423_vm10, %v2407_v35  ;;  %3196 = vmatprep.subr.bf16.mxu0 %v4596_v48  ;;  %v4620_v35 = vcombine.high %v2812_v3, %v2816_v0  ;;  %v2087_v0 = vld [vmem:[#allocation2 + $0x78] sm:$0xff] }
 0x2ab   : > { %2425 = vst.msk [vmem:[#allocation2 + $0x8] sm:$0xff] %vm2423_vm10, %v2408_v4  ;;  %3235 = vmatprep.subr.bf16.mxu1 %v4590_v62 }
 0x2ac   : > { %v2102_v43 = vpop.xlane.xlu0 %2101  ;;  %3236 = vmatpush1.bf16.msra.mxu1 %v4589_v10 }
 0x2ad   : > { %v2140_v63 = vadd.f32 %v2102_v43, %v2076_v61  ;;  %3197 = vmatpush1.bf16.msra.mxu0 %v4595_v58  ;;  %3237 = vmatprep.subr.bf16.mxu1 %v4598_v59  ;;  %v4621_v61 = vcombine.low %v2813_v55, %v2817_v39  ;;  %v4627_v43 = vcombine.low %v2820_v29, %v2824_v54 }
 0x2ae   : > { %v2105_v19 = vpop.xlane.xlu1 %2104  ;;  %v2345_v34 = vld [vmem:[#allocation2 + $0x10] sm:$0xff]  ;;  %3198 = vmatprep.subr.bf16.mxu0 %v4604_v52 }
 0x2af   : > { %2157 = vst.msk [vmem:[#allocation2 + $0x20] sm:$0xff] %vm2152_vm9, %v2140_v63  ;;  %v2141_v27 = vadd.f32 %v2105_v19, %v2077_v24  ;;  %v2409_v51 = vadd.f32 %v5999_v7, %v2345_v34  ;;  %v2082_v19 = vld [vmem:[#allocation2 + $0x50] sm:$0xff]  ;;  %v2083_v34 = vld [vmem:[#allocation2 + $0x58] sm:$0xff] }
 0x2b0   : > { %v2346_v17 = vld [vmem:[#allocation2 + $0x18] sm:$0xff]  ;;  %3238 = vmatpush1.bf16.msra.mxu1 %v4597_v33 }
 0x2b1   : > { %2158 = vst.msk [vmem:[#allocation2 + $0x28] sm:$0xff] %vm2152_vm9, %v2141_v27  ;;  %v2410_v7 = vadd.f32 %v6008_v16, %v2346_v17  ;;  %v4612_v16 = vcombine.high %v2804_v42, %v2808_v20  ;;  %3199 = vmatpush1.bf16.msra.mxu0 %v4603_v23  ;;  %3239 = vmatprep.subr.bf16.mxu1 %v4606_v18  ;;  %v2085_v42 = vld [vmem:[#allocation2 + $0x68] sm:$0xff] }
 0x2b2   : > { %2426 = vst.msk [vmem:[#allocation2 + $0x10] sm:$0xff] %vm2423_vm10, %v2409_v51  ;;  %v6962_v51 = vld [vmem:[#allocation9_spill] sm:$0xff]  ;;  %v6964_v18 = vld [vmem:[#allocation10_spill] sm:$0xff] }
 0x2b3   : > { %2427 = vst.msk [vmem:[#allocation2 + $0x18] sm:$0xff] %vm2423_vm10, %v2410_v7  ;;  %3200 = vmatprep.subr.bf16.mxu0 %v4612_v16  ;;  %v6965_v16 = vld [vmem:[#allocation11_spill] sm:$0xff] }
 0x2b4   : > { %v2108_v21 = vpop.xlane.xlu0 %2107  ;;  %3240 = vmatpush1.bf16.msra.mxu1 %v4605_v8  ;;  %v2614_v8 = vld [vmem:[#allocation2] sm:$0xff] }
 0x2b5   : > { %v2142_v60 = vadd.f32 %v2108_v21, %v2078_v56  ;;  %3201 = vmatpush1.bf16.msra.mxu0 %v4611_v1  ;;  %3241 = vmatprep.subr.bf16.mxu1 %v4614_v13  ;;  %v2615_v13 = vld [vmem:[#allocation2 + $0x8] sm:$0xff] }
 0x2b6   : > { %v2111_v36 = vpop.xlane.xlu1 %2110  ;;  %v2347_v44 = vld [vmem:[#allocation2 + $0x20] sm:$0xff]  ;;  %3202 = vmatprep.subr.bf16.mxu0 %v4620_v35 }
 0x2b7   : > { %2159 = vst.msk [vmem:[#allocation2 + $0x30] sm:$0xff] %vm2152_vm9, %v2142_v60  ;;  %v2143_v5 = vadd.f32 %v2111_v36, %v2079_v49  ;;  %v2411_v41 = vadd.f32 %v6003_v57, %v2347_v44 }
 0x2b8   : > { %v2348_v50 = vld [vmem:[#allocation2 + $0x28] sm:$0xff]  ;;  %3242 = vmatpush1.bf16.msra.mxu1 %v4613_v12 }
 0x2b9   : > { %2160 = vst.msk [vmem:[#allocation2 + $0x38] sm:$0xff] %vm2152_vm9, %v2143_v5  ;;  %v2412_v57 = vadd.f32 %v6020_v37, %v2348_v50  ;;  %v4628_v37 = vcombine.high %v2820_v29, %v2824_v54  ;;  %3203 = vmatpush1.bf16.msra.mxu0 %v4619_v46  ;;  %3243 = vmatprep.subr.bf16.mxu1 %v4622_v25  ;;  %v2616_v55 = vld [vmem:[#allocation2 + $0x10] sm:$0xff] }
 0x2ba   : > { %2428 = vst.msk [vmem:[#allocation2 + $0x20] sm:$0xff] %vm2423_vm10, %v2411_v41  ;;  %v6322_v46 = vld [vmem:[%s6949_s4 + $0x10] sm:$0xff] }
 0x2bb   : > { %2429 = vst.msk [vmem:[#allocation2 + $0x28] sm:$0xff] %vm2423_vm10, %v2412_v57  ;;  %3204 = vmatprep.subr.bf16.mxu0 %v4628_v37  ;;  %v6327_v25 = vld [vmem:[%s6949_s4 + $0x30] sm:$0xff]  ;;  %v6340_v37 = vld [vmem:[%s6949_s4 + $0x38] sm:$0xff] }
 0x2bc   : > { %v2114_v4 = vpop.xlane.xlu0 %2113  ;;  %3244 = vmatpush1.bf16.msra.mxu1 %v4621_v61  ;;  %v4575_v31 = vcombine.low %v6322_v46, %v6327_v25 }
 0x2bd   : > { %v2144_v14 = vadd.f32 %v2114_v4, %v2080_v15  ;;  %3205 = vmatpush1.bf16.msra.mxu0 %v4627_v43  ;;  %3245 = vmatprep.subr.bf16.mxu1 %v4630_v2  ;;  %v4576_v15 = vcombine.high %v6322_v46, %v6327_v25  ;;  %v6335_v4 = vld [vmem:[%s6949_s4 + $0x18] sm:$0xff] }
 0x2be   : > { %v2117_v9 = vpop.xlane.xlu1 %2116  ;;  %v2349_v62 = vld [vmem:[#allocation2 + $0x30] sm:$0xff]  ;;  %v2791_v46 = vld [vmem:[%s6949_s4 + $0xd8] sm:$0xff] }
 0x2bf   : > { %2161 = vst.msk [vmem:[#allocation2 + $0x40] sm:$0xff] %vm2152_vm9, %v2144_v14  ;;  %v2145_v48 = vadd.f32 %v2117_v9, %v2081_v26  ;;  %v2413_v38 = vadd.f32 %v6013_v53, %v2349_v62  ;;  %v4577_v14 = vcombine.low %v6335_v4, %v6340_v37  ;;  %v4578_v9 = vcombine.high %v6335_v4, %v6340_v37  ;;  %v2795_v25 = vld [vmem:[%s6949_s4 + $0xf8] sm:$0xff] }
 0x2c0   : > { %v2350_v63 = vld [vmem:[#allocation2 + $0x38] sm:$0xff]  ;;  %3246 = vmatpush1.bf16.msra.mxu1 %v4629_v30  ;;  %3272 = vmatprep.subr.bf16.mxu0 %v4576_v15  ;;  %v6966_v4 = vmov 0  }
 0x2c1   : > { %2162 = vst.msk [vmem:[#allocation2 + $0x48] sm:$0xff] %vm2152_vm9, %v2145_v48  ;;  %v2414_v22 = vadd.f32 %v6030_v47, %v2350_v63  ;;  %v6963_v47 = vld [vmem:[#allocation12_spill] sm:$0xff]  ;;  %v2618_v26 = vld [vmem:[#allocation2 + $0x20] sm:$0xff]  ;;  %3313 = vmatprep.subr.bf16.mxu1 %v4578_v9 }
 0x2c2   : > { %2430 = vst.msk [vmem:[#allocation2 + $0x30] sm:$0xff] %vm2423_vm10, %v2413_v38  ;;  %v2619_v48 = vld [vmem:[#allocation2 + $0x28] sm:$0xff] }
 0x2c3   : > { %2431 = vst.msk [vmem:[#allocation2 + $0x38] sm:$0xff] %vm2423_vm10, %v2414_v22 }
 0x2c4   : > { %v2120_v24 = vpop.xlane.xlu0 %2119 }
 0x2c5   : > { %v2146_v53 = vadd.f32 %v2120_v24, %v2082_v19 }
 0x2c6   : > { %v2123_v58 = vpop.xlane.xlu1 %2122  ;;  %v2351_v10 = vld [vmem:[#allocation2 + $0x40] sm:$0xff] }
 0x2c7   : > { %2163 = vst.msk [vmem:[#allocation2 + $0x50] sm:$0xff] %vm2152_vm9, %v2146_v53  ;;  %v2147_v27 = vadd.f32 %v2123_v58, %v2083_v34  ;;  %v2415_v59 = vadd.f32 %v6962_v51, %v2351_v10 }
 0x2c8   : > { %v2352_v17 = vld [vmem:[#allocation2 + $0x48] sm:$0xff] }
 0x2c9   : > { %2164 = vst.msk [vmem:[#allocation2 + $0x58] sm:$0xff] %vm2152_vm9, %v2147_v27  ;;  %v2416_v52 = vadd.f32 %v6963_v47, %v2352_v17  ;;  %v2620_v53 = vld [vmem:[#allocation2 + $0x30] sm:$0xff] }
 0x2ca   : > { %2432 = vst.msk [vmem:[#allocation2 + $0x40] sm:$0xff] %vm2423_vm10, %v2415_v59  ;;  %v2621_v17 = vld [vmem:[#allocation2 + $0x38] sm:$0xff] }
 0x2cb   : > { %2433 = vst.msk [vmem:[#allocation2 + $0x48] sm:$0xff] %vm2423_vm10, %v2416_v52 }
 0x2cc   : > { %v2126_v28 = vpop.xlane.xlu0 %2125 }
 0x2cd   : > { %v2148_v7 = vadd.f32 %v2126_v28, %v2084_v32 }
 0x2ce   : > { %v2129_v20 = vpop.xlane.xlu1 %2128  ;;  %v2353_v33 = vld [vmem:[#allocation2 + $0x50] sm:$0xff] }
 0x2cf   : > { %2165 = vst.msk [vmem:[#allocation2 + $0x60] sm:$0xff] %vm2152_vm9, %v2148_v7  ;;  %v2149_v23 = vadd.f32 %v2129_v20, %v2085_v42  ;;  %v2417_v56 = vadd.f32 %v6964_v18, %v2353_v33 }
 0x2d0   : > { %v2354_v21 = vld [vmem:[#allocation2 + $0x58] sm:$0xff] }
 0x2d1   : > { %2166 = vst.msk [vmem:[#allocation2 + $0x68] sm:$0xff] %vm2152_vm9, %v2149_v23  ;;  %v2418_v45 = vadd.f32 %v6965_v16, %v2354_v21  ;;  %v2622_v20 = vld [vmem:[#allocation2 + $0x40] sm:$0xff] }
 0x2d2   : > { %2434 = vst.msk [vmem:[#allocation2 + $0x50] sm:$0xff] %vm2423_vm10, %v2417_v56  ;;  %v2623_v56 = vld [vmem:[#allocation2 + $0x48] sm:$0xff] }
 0x2d3   : > { %2435 = vst.msk [vmem:[#allocation2 + $0x58] sm:$0xff] %vm2423_vm10, %v2418_v45 }
 0x2d4   : > { %v2132_v60 = vpop.xlane.xlu0 %2131 }
 0x2d5   : > { %v2150_v3 = vadd.f32 %v2132_v60, %v2086_v6 }
 0x2d6   : > { %v2135_v36 = vpop.xlane.xlu1 %2134  ;;  %v2355_v49 = vld [vmem:[#allocation2 + $0x60] sm:$0xff] }
 0x2d7   : > { %2167 = vst.msk [vmem:[#allocation2 + $0x70] sm:$0xff] %vm2152_vm9, %v2150_v3  ;;  %v2151_v44 = vadd.f32 %v2135_v36, %v2087_v0  ;;  %v2419_v1 = vadd.f32 %v6049_v40, %v2355_v49  ;;  %v2617_v40 = vld [vmem:[#allocation2 + $0x18] sm:$0xff] }
 0x2d8   : > { %v2356_v63 = vld [vmem:[#allocation2 + $0x68] sm:$0xff] }
 0x2d9   : > { %2168 = vst.msk [vmem:[#allocation2 + $0x78] sm:$0xff] %vm2152_vm9, %v2151_v44  ;;  %v2624_v6 = vld [vmem:[#allocation2 + $0x50] sm:$0xff] }
 0x2da   : > { %2436 = vst.msk [vmem:[#allocation2 + $0x60] sm:$0xff] %vm2423_vm10, %v2419_v1  ;;  %v2625_v3 = vld [vmem:[#allocation2 + $0x58] sm:$0xff] }
 0x2dc   : > { %v2632_v5 = vpop.xlane.xlu0 %2631 }
 0x2dd   : > { %v2678_v41 = vadd.f32 %v2632_v5, %v2614_v8 }
 0x2de   : > { %v2635_v50 = vpop.xlane.xlu1 %2634  ;;  %v2357_v34 = vld [vmem:[#allocation2 + $0x70] sm:$0xff] }
 0x2df   : > { %2695 = vst.msk [vmem:[#allocation2] sm:$0xff] %vm2694_vm11, %v2678_v41  ;;  %v2679_v35 = vadd.f32 %v2635_v50, %v2615_v13 }
 0x2e0   : > { %v2358_v47 = vld [vmem:[#allocation2 + $0x78] sm:$0xff] }
 0x2e1   : > { %2696 = vst.msk [vmem:[#allocation2 + $0x8] sm:$0xff] %vm2694_vm11, %v2679_v35  ;;  %v2626_v8 = vld [vmem:[#allocation2 + $0x60] sm:$0xff] }
 0x2e4   : > { %v2638_v39 = vpop.xlane.xlu0 %2637 }
 0x2e5   : > { %v2680_v57 = vadd.f32 %v2638_v39, %v2616_v55 }
 0x2e6   : > { %v2641_v29 = vpop.xlane.xlu1 %2640  ;;  %v2714_v54 = vld [vmem:[#allocation2] sm:$0xff] }
 0x2e7   : > { %2697 = vst.msk [vmem:[#allocation2 + $0x10] sm:$0xff] %vm2694_vm11, %v2680_v57  ;;  %v2681_v12 = vadd.f32 %v2641_v29, %v2617_v40  ;;  %2730 = vxpose.xlu1.b32.start [1/16] (narrow) %v2714_v54, 8 }
 0x2e8   : > { %v2715_v11 = vld [vmem:[#allocation2 + $0x8] sm:$0xff] }
 0x2e9   : > { %2698 = vst.msk [vmem:[#allocation2 + $0x18] sm:$0xff] %vm2694_vm11, %v2681_v12 }
 0x2eb   : > { %2731 = vxpose.xlu1.b32.cont [2/16] (narrow) %v2715_v11, 8 }
 0x2ec   : > { %v2644_v62 = vpop.xlane.xlu0 %2643 }
 0x2ed   : > { %v2682_v61 = vadd.f32 %v2644_v62, %v2618_v26  ;;  %v2774_v62 = vld [vmem:[%s6949_s4 + $0x50] sm:$0xff] }
 0x2ee   : > { %v2647_v43 = vpop.xlane.xlu1 %2646  ;;  %v2716_v38 = vld [vmem:[#allocation2 + $0x10] sm:$0xff] }
 0x2ef   : > { %2699 = vst.msk [vmem:[#allocation2 + $0x20] sm:$0xff] %vm2694_vm11, %v2682_v61  ;;  %v2683_v2 = vadd.f32 %v2647_v43, %v2619_v48  ;;  %2732 = vxpose.xlu1.b32.cont [3/16] (narrow) %v2716_v38, 8  ;;  %v2778_v43 = vld [vmem:[%s6949_s4 + $0x70] sm:$0xff]  ;;  %v2775_v48 = vld [vmem:[%s6949_s4 + $0x58] sm:$0xff] }
 0x2f0   : > { %v2400_v22 = vpop.xlane.xlu0 %2399  ;;  %v2717_v19 = vld [vmem:[#allocation2 + $0x18] sm:$0xff] }
 0x2f1   : > { %2700 = vst.msk [vmem:[#allocation2 + $0x28] sm:$0xff] %vm2694_vm11, %v2683_v2  ;;  %v2420_v30 = vadd.f32 %v2400_v22, %v2356_v63  ;;  %v2779_v38 = vld [vmem:[%s6949_s4 + $0x78] sm:$0xff]  ;;  %v4584_v22 = vcombine.high %v2774_v62, %v2778_v43 }
 0x2f3   : > { %2437 = vst.msk [vmem:[#allocation2 + $0x68] sm:$0xff] %vm2423_vm10, %v2420_v30  ;;  %2733 = vxpose.xlu1.b32.cont [4/16] (narrow) %v2717_v19, 8  ;;  %v4586_v30 = vcombine.high %v2775_v48, %v2779_v38  ;;  %v2782_v19 = vld [vmem:[%s6949_s4 + $0x90] sm:$0xff] }
 0x2f4   : > { %v2650_v24 = vpop.xlane.xlu1 %2649  ;;  %v2403_v58 = vpop.xlane.xlu0 %2402 }
 0x2f5   : > { %v2684_v10 = vadd.f32 %v2650_v24, %v2620_v53  ;;  %v2421_v27 = vadd.f32 %v2403_v58, %v2357_v34  ;;  %v2786_v24 = vld [vmem:[%s6949_s4 + $0xb0] sm:$0xff]  ;;  %v2783_v53 = vld [vmem:[%s6949_s4 + $0x98] sm:$0xff]  ;;  %v4583_v58 = vcombine.low %v2774_v62, %v2778_v43  ;;  %v4909_v62 = vld [vmem:[%s6951_s6 + $0x24] ss:$8 sps:$4 sm:$0xff]  }
 0x2f6   : > { %v2718_v51 = vld [vmem:[#allocation2 + $0x20] sm:$0xff]  ;;  %v2787_v34 = vld [vmem:[%s6949_s4 + $0xb8] sm:$0xff]  ;;  %v4591_v37 = vcombine.low %v2782_v19, %v2786_v24 }
 0x2f7   : > { %2701 = vst.msk [vmem:[#allocation2 + $0x30] sm:$0xff] %vm2694_vm11, %v2684_v10  ;;  %2734 = vxpose.xlu1.b32.cont [5/16] (narrow) %v2718_v51, 8  ;;  %v4585_v10 = vcombine.low %v2775_v48, %v2779_v38  ;;  %v4594_v51 = vcombine.high %v2783_v53, %v2787_v34  ;;  %v4912_v43 = vld [vmem:[%s6951_s6 + $0x34] ss:$8 sps:$4 sm:$0xff]   ;;  %v4910_v48 = vld [vmem:[%s6951_s6 + $0x30] ss:$8 sps:$4 sm:$0xff]  }
 0x2f8   : > { %2438 = vst.msk [vmem:[#allocation2 + $0x70] sm:$0xff] %vm2423_vm10, %v2421_v27  ;;  %v2653_v59 = vpop.xlane.xlu1 %2652  ;;  %v2406_v52 = vpop.xlane.xlu0 %2405  ;;  %v2719_v7 = vld [vmem:[#allocation2 + $0x28] sm:$0xff]  ;;  %v4592_v27 = vcombine.high %v2782_v19, %v2786_v24  ;;  %v4924_v24 = vld [vmem:[%s6951_s6 + $0x74] ss:$8 sps:$4 sm:$0xff]  }
 0x2f9   : > { %v2685_v32 = vadd.f32 %v2653_v59, %v2621_v17  ;;  %v2422_v28 = vadd.f32 %v2406_v52, %v2358_v47  ;;  %v2790_v59 = vld [vmem:[%s6949_s4 + $0xd0] sm:$0xff]  ;;  %v4602_v47 = vcombine.high %v2791_v46, %v2795_v25  ;;  %v4915_v38 = vld [vmem:[%s6951_s6 + $0x44] ss:$8 sps:$4 sm:$0xff]   ;;  %v4919_v19 = vld [vmem:[%s6951_s6 + $0x60] ss:$8 sps:$4 sm:$0xff]  }
 0x2fa   : > { %v2627_v41 = vld [vmem:[#allocation2 + $0x68] sm:$0xff]  ;;  %v2794_v17 = vld [vmem:[%s6949_s4 + $0xf0] sm:$0xff] }
 0x2fb   : > { %2702 = vst.msk [vmem:[#allocation2 + $0x38] sm:$0xff] %vm2694_vm11, %v2685_v32  ;;  %2735 = vxpose.xlu1.b32.cont [6/16] (narrow) %v2719_v7, 8  ;;  %v2798_v52 = vld [vmem:[%s6949_s4 + $0x110] sm:$0xff]  ;;  %v2803_v7 = vld [vmem:[%s6949_s4 + $0x138] sm:$0xff] }
 0x2fc   : > { %2439 = vst.msk [vmem:[#allocation2 + $0x78] sm:$0xff] %vm2423_vm10, %v2422_v28  ;;  %v2656_v42 = vpop.xlane.xlu1 %2655  ;;  %v2802_v32 = vld [vmem:[%s6949_s4 + $0x130] sm:$0xff]  ;;  %v2799_v28 = vld [vmem:[%s6949_s4 + $0x118] sm:$0xff] }
 0x2fd   : > { %v2686_v33 = vadd.f32 %v2656_v42, %v2622_v20  ;;  %v4599_v42 = vcombine.low %v2790_v59, %v2794_v17  ;;  %v4601_v20 = vcombine.low %v2791_v46, %v2795_v25  ;;  %v4934_v46 = vld [vmem:[%s6951_s6 + $0xb0] ss:$8 sps:$4 sm:$0xff]   ;;  %v4939_v25 = vld [vmem:[%s6951_s6 + $0xc4] ss:$8 sps:$4 sm:$0xff]  }
 0x2fe   : > { %v2720_v23 = vld [vmem:[#allocation2 + $0x30] sm:$0xff] }
 0x2ff   : > { %2703 = vst.msk [vmem:[#allocation2 + $0x40] sm:$0xff] %vm2694_vm11, %v2686_v33  ;;  %2736 = vxpose.xlu1.b32.cont [7/16] (narrow) %v2720_v23, 8  ;;  %v2628_v57 = vld [vmem:[#allocation2 + $0x70] sm:$0xff]  ;;  %v4608_v33 = vcombine.high %v2798_v52, %v2802_v32  ;;  %v4610_v23 = vcombine.high %v2799_v28, %v2803_v7 }
 0x300   : > { %v2659_v18 = vpop.xlane.xlu1 %2658 }
 0x301   : > { %v2687_v21 = vadd.f32 %v2659_v18, %v2623_v56  ;;  %v2806_v18 = vld [vmem:[%s6949_s4 + $0x150] sm:$0xff] }
 0x302   : > { %v2721_v16 = vld [vmem:[#allocation2 + $0x38] sm:$0xff]  ;;  %v2810_v56 = vld [vmem:[%s6949_s4 + $0x170] sm:$0xff] }
 0x303   : > { %2704 = vst.msk [vmem:[#allocation2 + $0x48] sm:$0xff] %vm2694_vm11, %v2687_v21  ;;  %2737 = vxpose.xlu1.b32.cont [8/16] (narrow) %v2721_v16, 8  ;;  %v2629_v40 = vld [vmem:[#allocation2 + $0x78] sm:$0xff] }
 0x304   : > { %v2662_v45 = vpop.xlane.xlu1 %2661  ;;  %v2807_v21 = vld [vmem:[%s6949_s4 + $0x158] sm:$0xff] }
 0x305   : > { %v2688_v60 = vadd.f32 %v2662_v45, %v2624_v6  ;;  %v2811_v16 = vld [vmem:[%s6949_s4 + $0x178] sm:$0xff]  ;;  %v4607_v45 = vcombine.low %v2798_v52, %v2802_v32  ;;  %v4609_v6 = vcombine.low %v2799_v28, %v2803_v7  ;;  %v4951_v28 = vld [vmem:[%s6951_s6 + $0x104] ss:$8 sps:$4 sm:$0xff]   ;;  %v2830_v7 = vlaneseq }
 0x306   : > { %v2665_v0 = vpop.xlane.xlu0 %2664  ;;  %v2722_v36 = vld [vmem:[#allocation2 + $0x40] sm:$0xff]  ;;  %v4948_v52 = vld [vmem:[%s6951_s6 + $0xf4] ss:$8 sps:$4 sm:$0xff]   ;;  %v4946_v32 = vld [vmem:[%s6951_s6 + $0xf0] ss:$8 sps:$4 sm:$0xff]  }
 0x307   : > { %2705 = vst.msk [vmem:[#allocation2 + $0x50] sm:$0xff] %vm2694_vm11, %v2688_v60  ;;  %v2689_v49 = vadd.f32 %v2665_v0, %v2625_v3  ;;  %2738 = vxpose.xlu1.b32.cont [9/16] (narrow) %v2722_v36, 8  ;;  %v4616_v60 = vcombine.high %v2806_v18, %v2810_v56  ;;  %v4618_v3 = vcombine.high %v2807_v21, %v2811_v16  ;;  %v2814_v0 = vld [vmem:[%s6949_s4 + $0x190] sm:$0xff] }
 0x308   : > { %v2818_v36 = vld [vmem:[%s6949_s4 + $0x1b0] sm:$0xff] }
 0x309   : > { %2706 = vst.msk [vmem:[#allocation2 + $0x58] sm:$0xff] %vm2694_vm11, %v2689_v49  ;;  %v2815_v49 = vld [vmem:[%s6949_s4 + $0x198] sm:$0xff] }
 0x30a   : > { %v2723_v44 = vld [vmem:[#allocation2 + $0x48] sm:$0xff] }
 0x30b   : > { %2739 = vxpose.xlu1.b32.cont [10/16] (narrow) %v2723_v44, 8  ;;  %v2819_v44 = vld [vmem:[%s6949_s4 + $0x1b8] sm:$0xff] }
 0x30c   : > { %v2668_v1 = vpop.xlane.xlu1 %2667 }
 0x30d   : > { %v2690_v5 = vadd.f32 %v2668_v1, %v2626_v8  ;;  %v4615_v1 = vcombine.low %v2806_v18, %v2810_v56  ;;  %v4617_v8 = vcombine.low %v2807_v21, %v2811_v16 }
 0x30e   : > { %v2671_v13 = vpop.xlane.xlu0 %2670  ;;  %v2724_v50 = vld [vmem:[#allocation2 + $0x50] sm:$0xff] }
 0x30f   : > { %2707 = vst.msk [vmem:[#allocation2 + $0x60] sm:$0xff] %vm2694_vm11, %v2690_v5  ;;  %v2691_v35 = vadd.f32 %v2671_v13, %v2627_v41  ;;  %2740 = vxpose.xlu1.b32.cont [11/16] (narrow) %v2724_v50, 8  ;;  %v4624_v5 = vcombine.high %v2814_v0, %v2818_v36  ;;  %v4626_v41 = vcombine.high %v2815_v49, %v2819_v44  ;;  %v2822_v13 = vld [vmem:[%s6949_s4 + $0x1d0] sm:$0xff] }
 0x310   : > { %v2725_v55 = vld [vmem:[#allocation2 + $0x58] sm:$0xff]  ;;  %v2826_v50 = vld [vmem:[%s6949_s4 + $0x1f0] sm:$0xff] }
 0x311   : > { %2708 = vst.msk [vmem:[#allocation2 + $0x68] sm:$0xff] %vm2694_vm11, %v2691_v35  ;;  %v2823_v35 = vld [vmem:[%s6949_s4 + $0x1d8] sm:$0xff] }
 0x313   : > { %2741 = vxpose.xlu1.b32.cont [12/16] (narrow) %v2725_v55, 8  ;;  %v2827_v55 = vld [vmem:[%s6949_s4 + $0x1f8] sm:$0xff] }
 0x314   : > { %v2674_v39 = vpop.xlane.xlu1 %2673 }
 0x315   : > { %v2692_v29 = vadd.f32 %v2674_v39, %v2628_v57  ;;  %v4623_v39 = vcombine.low %v2814_v0, %v2818_v36  ;;  %v4625_v57 = vcombine.low %v2815_v49, %v2819_v44 }
 0x316   : > { %v2677_v54 = vpop.xlane.xlu0 %2676  ;;  %v2726_v12 = vld [vmem:[#allocation2 + $0x60] sm:$0xff] }
 0x317   : > { %2709 = vst.msk [vmem:[#allocation2 + $0x70] sm:$0xff] %vm2694_vm11, %v2692_v29  ;;  %v2693_v15 = vadd.f32 %v2677_v54, %v2629_v40  ;;  %2742 = vxpose.xlu1.b32.cont [13/16] (narrow) %v2726_v12, 8  ;;  %v4632_v29 = vcombine.high %v2822_v13, %v2826_v50  ;;  %v4634_v40 = vcombine.high %v2823_v35, %v2827_v55 }
 0x318   : > { %v2727_v11 = vld [vmem:[#allocation2 + $0x68] sm:$0xff]  ;;  %v4631_v54 = vcombine.low %v2822_v13, %v2826_v50  ;;  %v4633_v12 = vcombine.low %v2823_v35, %v2827_v55 }
 0x319   : > { %2710 = vst.msk [vmem:[#allocation2 + $0x78] sm:$0xff] %vm2694_vm11, %v2693_v15  ;;  %v4903_v15 = vld [vmem:[%s6951_s6 + $0x4] ss:$8 sps:$4 sm:$0xff]   ;;  %v4949_v55 = vld [vmem:[%s6951_s6 + $0x100] ss:$8 sps:$4 sm:$0xff]  }
 0x31b   : > { %2743 = vxpose.xlu1.b32.cont [14/16] (narrow) %v2727_v11, 8  ;;  %v4901_v11 = vld [vmem:[%s6951_s6] ss:$8 sps:$4 sm:$0xff]  }
 0x31e   : > { %v2728_v9 = vld [vmem:[#allocation2 + $0x70] sm:$0xff] }
 0x31f   : > { %2744 = vxpose.xlu1.b32.cont [15/16] (narrow) %v2728_v9, 8  ;;  %v4906_v9 = vld [vmem:[%s6951_s6 + $0x14] ss:$8 sps:$4 sm:$0xff]  }
 0x320   : > { %v2729_v26 = vld [vmem:[#allocation2 + $0x78] sm:$0xff] }
 0x323   : > { %2745 = vxpose.xlu1.b32.end [16/16] (narrow) %v2729_v26, 8  ;;  %v4904_v26 = vld [vmem:[%s6951_s6 + $0x10] ss:$8 sps:$4 sm:$0xff]  }
 0x367   : > { %v2746_v61 = vpop.trf.xlu1 }
 0x368   : > { %v2762_v2 = vmul.f32 0.00390625, %v2746_v61  ;;  %v4907_v61 = vld [vmem:[%s6951_s6 + $0x20] ss:$8 sps:$4 sm:$0xff]  }
 0x36a   : > { %v6375_v63 = vpack.c.bf16 %v2762_v2, %v2762_v2  ;;  %v4913_v2 = vld [vmem:[%s6951_s6 + $0x40] ss:$8 sps:$4 sm:$0xff]  }
 0x36c   : > { %3223 = vmatmul.mubr.bf16.vlgmr.msra.gmra.mrb[64].mxu0 %v6375_v63  ;;  %3264 = vmatmul.mubr.bf16.vlgmr.msra.gmra.mrb[192].mxu1 %v6375_v63 }
 0x36d   : > { %3273 = vmatpush1.bf16.msra.mxu0 %v4575_v31  ;;  %3314 = vmatpush1.bf16.msra.mxu1 %v4577_v14  ;;  %v4593_v31 = vcombine.low %v2783_v53, %v2787_v34  ;;  %v4600_v14 = vcombine.high %v2790_v59, %v2794_v17  ;;  %v4922_v53 = vld [vmem:[%s6951_s6 + $0x70] ss:$8 sps:$4 sm:$0xff]   ;;  %v4927_v34 = vld [vmem:[%s6951_s6 + $0x84] ss:$8 sps:$4 sm:$0xff]   ;;  %v4931_v59 = vld [vmem:[%s6951_s6 + $0xa0] ss:$8 sps:$4 sm:$0xff]  }
 0x36e   : > { %3274 = vmatprep.subr.bf16.mxu0 %v4584_v22  ;;  %3315 = vmatprep.subr.bf16.mxu1 %v4586_v30  ;;  %v4916_v22 = vld [vmem:[%s6951_s6 + $0x50] ss:$8 sps:$4 sm:$0xff]   ;;  %v4921_v30 = vld [vmem:[%s6951_s6 + $0x64] ss:$8 sps:$4 sm:$0xff]   ;;  %v4936_v17 = vld [vmem:[%s6951_s6 + $0xb4] ss:$8 sps:$4 sm:$0xff]  }
 0x36f   : > { %3304 = vmatprep.mubr.bf16.mxu0 %v6966_v4  ;;  %3345 = vmatprep.mubr.bf16.mxu1 %v6966_v4  ;;  %v4937_v4 = vld [vmem:[%s6951_s6 + $0xc0] ss:$8 sps:$4 sm:$0xff]  }
 0x371   : > { %3275 = vmatpush1.bf16.msra.mxu0 %v4583_v58  ;;  %3316 = vmatpush1.bf16.msra.mxu1 %v4585_v10  ;;  %v4925_v58 = vld [vmem:[%s6951_s6 + $0x80] ss:$8 sps:$4 sm:$0xff]   ;;  %v4930_v10 = vld [vmem:[%s6951_s6 + $0x94] ss:$8 sps:$4 sm:$0xff]  }
 0x372   : > { %3276 = vmatprep.subr.bf16.mxu0 %v4592_v27  ;;  %3317 = vmatprep.subr.bf16.mxu1 %v4594_v51  ;;  %v4928_v27 = vld [vmem:[%s6951_s6 + $0x90] ss:$8 sps:$4 sm:$0xff]   ;;  %v4933_v51 = vld [vmem:[%s6951_s6 + $0xa4] ss:$8 sps:$4 sm:$0xff]  }
 0x375   : > { %3277 = vmatpush1.bf16.msra.mxu0 %v4591_v37  ;;  %3318 = vmatpush1.bf16.msra.mxu1 %v4593_v31  ;;  %v4942_v37 = vld [vmem:[%s6951_s6 + $0xd4] ss:$8 sps:$4 sm:$0xff]   ;;  %v4940_v31 = vld [vmem:[%s6951_s6 + $0xd0] ss:$8 sps:$4 sm:$0xff]  }
 0x376   : > { %3278 = vmatprep.subr.bf16.mxu0 %v4600_v14  ;;  %3319 = vmatprep.subr.bf16.mxu1 %v4602_v47  ;;  %v4945_v14 = vld [vmem:[%s6951_s6 + $0xe4] ss:$8 sps:$4 sm:$0xff]   ;;  %v4943_v47 = vld [vmem:[%s6951_s6 + $0xe0] ss:$8 sps:$4 sm:$0xff]  }
 0x379   : > { %3279 = vmatpush1.bf16.msra.mxu0 %v4599_v42  ;;  %3320 = vmatpush1.bf16.msra.mxu1 %v4601_v20  ;;  %v6560_v42 = vshrl.u32 %v2830_v7, 7  ;;  %v4993_v7 = vld [vmem:[%s6951_s6 + $0x1e4] ss:$8 sps:$4 sm:$0xff]  }
 0x37a   : > { %3280 = vmatprep.subr.bf16.mxu0 %v4608_v33  ;;  %3321 = vmatprep.subr.bf16.mxu1 %v4610_v23  ;;  %v6566_v33 = vld [vmem:[%s6950_s5] sm:$0xff] }
 0x37b   : > { %v2832_v20 = vsub.s32 0, %v6560_v42  ;;  %v2836_v23 = vsub.s32 1, %v6560_v42  ;;  %v2844_v18 = vsub.s32 3, %v6560_v42 }
 0x37d   : > { %3281 = vmatpush1.bf16.msra.mxu0 %v4607_v45  ;;  %3322 = vmatpush1.bf16.msra.mxu1 %v4609_v6  ;;  %v2833_v56 = vrot.slane %v6566_v33, %v2832_v20  ;;  %v2837_v21 = vrot.slane %v6566_v33, %v2836_v23  ;;  %v2845_v16 = vrot.slane %v6566_v33, %v2844_v18 }
 0x37e   : > { %3282 = vmatprep.subr.bf16.mxu0 %v4616_v60  ;;  %3323 = vmatprep.subr.bf16.mxu1 %v4618_v3 }
 0x381   : > { %3283 = vmatpush1.bf16.msra.mxu0 %v4615_v1  ;;  %3324 = vmatpush1.bf16.msra.mxu1 %v4617_v8 }
 0x382   : > { %3284 = vmatprep.subr.bf16.mxu0 %v4624_v5  ;;  %3325 = vmatprep.subr.bf16.mxu1 %v4626_v41 }
 0x385   : > { %3285 = vmatpush1.bf16.msra.mxu0 %v4623_v39  ;;  %3326 = vmatpush1.bf16.msra.mxu1 %v4625_v57  ;;  %v4954_v57 = vld [vmem:[%s6951_s6 + $0x114] ss:$8 sps:$4 sm:$0xff]  }
 0x386   : > { %3286 = vmatprep.subr.bf16.mxu0 %v4632_v29  ;;  %3327 = vmatprep.subr.bf16.mxu1 %v4634_v40  ;;  %v4952_v40 = vld [vmem:[%s6951_s6 + $0x110] ss:$8 sps:$4 sm:$0xff]  }
 0x389   : > { %3287 = vmatpush1.bf16.msra.mxu0 %v4631_v54  ;;  %3328 = vmatpush1.bf16.msra.mxu1 %v4633_v12  ;;  %v4957_v54 = vld [vmem:[%s6951_s6 + $0x124] ss:$8 sps:$4 sm:$0xff]   ;;  %v4955_v12 = vld [vmem:[%s6951_s6 + $0x120] ss:$8 sps:$4 sm:$0xff]  }
 0x38a   : > { %4150 = vmatprep.subr.bf16.mxu0 %v4903_v15  ;;  %v4960_v15 = vld [vmem:[%s6951_s6 + $0x134] ss:$8 sps:$4 sm:$0xff]  }
 0x38c   : > { %3305 = vmatmul.mubr.bf16.vlgmr.msra.gmra.mrb[68].mxu0 %v6375_v63  ;;  %3346 = vmatmul.mubr.bf16.vlgmr.msra.gmra.mrb[196].mxu1 %v6375_v63  ;;  %v4918_v63 = vld [vmem:[%s6951_s6 + $0x54] ss:$8 sps:$4 sm:$0xff]  }
 0x38d   : > { %4151 = vmatpush1.bf16.msra.mxu0 %v4901_v11  ;;  %v4958_v11 = vld [vmem:[%s6951_s6 + $0x130] ss:$8 sps:$4 sm:$0xff]  }
 0x38e   : > { %4152 = vmatprep.subr.bf16.mxu0 %v4906_v9  ;;  %v4963_v9 = vld [vmem:[%s6951_s6 + $0x144] ss:$8 sps:$4 sm:$0xff]  }
 0x391   : > { %4153 = vmatpush1.bf16.msra.mxu0 %v4904_v26  ;;  %v4961_v26 = vld [vmem:[%s6951_s6 + $0x140] ss:$8 sps:$4 sm:$0xff]  }
 0x392   : > { %4154 = vmatprep.subr.bf16.mxu0 %v4909_v62  ;;  %v4966_v62 = vld [vmem:[%s6951_s6 + $0x154] ss:$8 sps:$4 sm:$0xff]  }
 0x395   : > { %4155 = vmatpush1.bf16.msra.mxu0 %v4907_v61  ;;  %v4964_v61 = vld [vmem:[%s6951_s6 + $0x150] ss:$8 sps:$4 sm:$0xff]  }
 0x396   : > { %4156 = vmatprep.subr.bf16.mxu0 %v4912_v43  ;;  %v4969_v43 = vld [vmem:[%s6951_s6 + $0x164] ss:$8 sps:$4 sm:$0xff]  }
 0x399   : > { %4157 = vmatpush1.bf16.msra.mxu0 %v4910_v48  ;;  %v4967_v48 = vld [vmem:[%s6951_s6 + $0x160] ss:$8 sps:$4 sm:$0xff]  }
 0x39a   : > { %4158 = vmatprep.subr.bf16.mxu0 %v4915_v38  ;;  %v4972_v38 = vld [vmem:[%s6951_s6 + $0x174] ss:$8 sps:$4 sm:$0xff]  }
 0x39d   : > { %4159 = vmatpush1.bf16.msra.mxu0 %v4913_v2 }
 0x39e   : > { %4160 = vmatprep.subr.bf16.mxu0 %v4918_v63 }
 0x3a1   : > { %4161 = vmatpush1.bf16.msra.mxu0 %v4916_v22 }
 0x3a2   : > { %4162 = vmatprep.subr.bf16.mxu0 %v4921_v30 }
 0x3a5   : > { %4163 = vmatpush1.bf16.msra.mxu0 %v4919_v19 }
 0x3a6   : > { %4164 = vmatprep.subr.bf16.mxu0 %v4924_v24 }
 0x3a9   : > { %4165 = vmatpush1.bf16.msra.mxu0 %v4922_v53  ;;  %v4970_v53 = vld [vmem:[%s6951_s6 + $0x170] ss:$8 sps:$4 sm:$0xff]  }
 0x3aa   : > { %4166 = vmatprep.subr.bf16.mxu0 %v4927_v34 }
 0x3ad   : > { %4167 = vmatpush1.bf16.msra.mxu0 %v4925_v58 }
 0x3ae   : > { %4168 = vmatprep.subr.bf16.mxu0 %v4930_v10  ;;  %v4975_v10 = vld [vmem:[%s6951_s6 + $0x184] ss:$8 sps:$4 sm:$0xff]  }
 0x3b1   : > { %4169 = vmatpush1.bf16.msra.mxu0 %v4928_v27  ;;  %v4973_v27 = vld [vmem:[%s6951_s6 + $0x180] ss:$8 sps:$4 sm:$0xff]  }
 0x3b2   : > { %4170 = vmatprep.subr.bf16.mxu0 %v4933_v51  ;;  %v4978_v51 = vld [vmem:[%s6951_s6 + $0x194] ss:$8 sps:$4 sm:$0xff]  }
 0x3b5   : > { %4171 = vmatpush1.bf16.msra.mxu0 %v4931_v59  ;;  %v4976_v59 = vld [vmem:[%s6951_s6 + $0x190] ss:$8 sps:$4 sm:$0xff]  }
 0x3b6   : > { %4172 = vmatprep.subr.bf16.mxu0 %v4936_v17  ;;  %v4981_v17 = vld [vmem:[%s6951_s6 + $0x1a4] ss:$8 sps:$4 sm:$0xff]  }
 0x3b9   : > { %4173 = vmatpush1.bf16.msra.mxu0 %v4934_v46  ;;  %v4979_v46 = vld [vmem:[%s6951_s6 + $0x1a0] ss:$8 sps:$4 sm:$0xff]  }
 0x3ba   : > { %4174 = vmatprep.subr.bf16.mxu0 %v4939_v25  ;;  %v4984_v25 = vld [vmem:[%s6951_s6 + $0x1b4] ss:$8 sps:$4 sm:$0xff]  }
 0x3bd   : > { %4175 = vmatpush1.bf16.msra.mxu0 %v4937_v4  ;;  %v4982_v4 = vld [vmem:[%s6951_s6 + $0x1b0] ss:$8 sps:$4 sm:$0xff]  }
 0x3be   : > { %4176 = vmatprep.subr.bf16.mxu0 %v4942_v37  ;;  %v4987_v37 = vld [vmem:[%s6951_s6 + $0x1c4] ss:$8 sps:$4 sm:$0xff]  }
 0x3c1   : > { %4177 = vmatpush1.bf16.msra.mxu0 %v4940_v31  ;;  %v4985_v31 = vld [vmem:[%s6951_s6 + $0x1c0] ss:$8 sps:$4 sm:$0xff]  }
 0x3c2   : > { %4178 = vmatprep.subr.bf16.mxu0 %v4945_v14  ;;  %v2840_v14 = vsub.s32 2, %v6560_v42 }
 0x3c5   : > { %4179 = vmatpush1.bf16.msra.mxu0 %v4943_v47  ;;  %v4990_v47 = vld [vmem:[%s6951_s6 + $0x1d4] ss:$8 sps:$4 sm:$0xff]  }
 0x3c6   : > { %4180 = vmatprep.subr.bf16.mxu0 %v4948_v52  ;;  %v2852_v52 = vsub.s32 5, %v6560_v42 }
 0x3c8   : > { %v2853_v18 = vrot.slane %v6566_v33, %v2852_v52  ;;  %v5048_v52 = vld [vmem:[%s6951_s6 + $0x310] ss:$8 sps:$4 sm:$0xff]  }
 0x3c9   : > { %4181 = vmatpush1.bf16.msra.mxu0 %v4946_v32  ;;  %v4988_v32 = vld [vmem:[%s6951_s6 + $0x1d0] ss:$8 sps:$4 sm:$0xff]  }
 0x3ca   : > { %4191 = vmatprep.subr.bf16.mxu0 %v4951_v28  ;;  %v2841_v28 = vrot.slane %v6566_v33, %v2840_v14 }
 0x43f   : > { %v3224_v45 = vpop.f32.mrb[64].mxu0  ;;  %v6577_v6 = vpop.f32.mrb[192].mxu1 }
 0x440   : > { %v3225_v60 = vadd.f32 %v3224_v45, %v2833_v56  ;;  %v3226_v3 = vpop.f32.mrb[65].mxu0  ;;  %v3267_v0 = vpop.f32.mrb[193].mxu1  ;;  %v4991_v56 = vld [vmem:[%s6951_s6 + $0x1e0] ss:$8 sps:$4 sm:$0xff]  }
 0x441   : > { %v3227_v36 = vadd.f32 %v3226_v3, %v2837_v21  ;;  %v3268_v49 = vadd.f32 %v3267_v0, %v2845_v16  ;;  %v3228_v44 = vpop.f32.mrb[66].mxu0  ;;  %v3269_v1 = vpop.f32.mrb[194].mxu1  ;;  %v3266_v21 = vadd.f32 %v6577_v6, %v2841_v28  ;;  %v4996_v16 = vld [vmem:[%s6951_s6 + $0x1f4] ss:$8 sps:$4 sm:$0xff]   ;;  %v4999_v0 = vld [vmem:[%s6951_s6 + $0x204] ss:$8 sps:$4 sm:$0xff]  }
 0x442   : > { %v3354_v8 = vmax.f32 %v3225_v60, 0.0  ;;  %v3229_v5 = vpop.f32.mrb[67].mxu0  ;;  %v3270_v41 = vpop.f32.mrb[195].mxu1  ;;  %v4994_v60 = vld [vmem:[%s6951_s6 + $0x1f0] ss:$8 sps:$4 sm:$0xff]  }
 0x443   : > { %v3355_v13 = vmax.f32 %v3227_v36, 0.0  ;;  %v3357_v50 = vmax.f32 %v3268_v49, 0.0  ;;  %v3356_v3 = vmax.f32 %v3266_v21, 0.0  ;;  %v4997_v6 = vld [vmem:[%s6951_s6 + $0x200] ss:$8 sps:$4 sm:$0xff]  }
 0x444   : > { %v3362_v39 = vpack.c.bf16 %v3354_v8, %v3354_v8  ;;  %v5002_v44 = vld [vmem:[%s6951_s6 + $0x214] ss:$8 sps:$4 sm:$0xff]   ;;  %v5000_v8 = vld [vmem:[%s6951_s6 + $0x210] ss:$8 sps:$4 sm:$0xff]   ;;  %v5005_v5 = vld [vmem:[%s6951_s6 + $0x224] ss:$8 sps:$4 sm:$0xff]  }
 0x445   : > { %v3363_v35 = vpack.c.bf16 %v3355_v13, %v3355_v13  ;;  %v3365_v29 = vpack.c.bf16 %v3357_v50, %v3357_v50  ;;  %v3364_v49 = vpack.c.bf16 %v3356_v3, %v3356_v3  ;;  %v5003_v41 = vld [vmem:[%s6951_s6 + $0x220] ss:$8 sps:$4 sm:$0xff]   ;;  %v5008_v13 = vld [vmem:[%s6951_s6 + $0x234] ss:$8 sps:$4 sm:$0xff]   ;;  %v5006_v50 = vld [vmem:[%s6951_s6 + $0x230] ss:$8 sps:$4 sm:$0xff]  }
 0x446   : > { %v5051_v28 = vld [vmem:[%s6951_s6 + $0x320] ss:$8 sps:$4 sm:$0xff]  }
 0x447   : > { %4182 = vmatprep.mubr.bf16.mxu0 %v3363_v35  ;;  %v5011_v35 = vld [vmem:[%s6951_s6 + $0x244] ss:$8 sps:$4 sm:$0xff]   ;;  %v5057_v21 = vld [vmem:[%s6951_s6 + $0x340] ss:$8 sps:$4 sm:$0xff]  }
 0x448   : > { %4183 = vmatmul.mubr.bf16.vlgmr.msra.gmra.mrb[72].mxu0 %v3362_v39  ;;  %v5014_v39 = vld [vmem:[%s6951_s6 + $0x254] ss:$8 sps:$4 sm:$0xff]   ;;  %v5063_v3 = vld [vmem:[%s6951_s6 + $0x360] ss:$8 sps:$4 sm:$0xff]  }
 0x449   : > { %4192 = vmatpush1.bf16.msra.mxu0 %v4949_v55  ;;  %4223 = vmatprep.mubr.bf16.mxu0 %v3365_v29  ;;  %v5009_v55 = vld [vmem:[%s6951_s6 + $0x240] ss:$8 sps:$4 sm:$0xff]   ;;  %v5017_v29 = vld [vmem:[%s6951_s6 + $0x264] ss:$8 sps:$4 sm:$0xff]  }
 0x44a   : > { %4193 = vmatprep.subr.bf16.mxu0 %v4954_v57  ;;  %v5012_v57 = vld [vmem:[%s6951_s6 + $0x250] ss:$8 sps:$4 sm:$0xff]  }
 0x44d   : > { %4194 = vmatpush1.bf16.msra.mxu0 %v4952_v40  ;;  %v5015_v40 = vld [vmem:[%s6951_s6 + $0x260] ss:$8 sps:$4 sm:$0xff]  }
 0x44e   : > { %4195 = vmatprep.subr.bf16.mxu0 %v4957_v54  ;;  %v5020_v54 = vld [vmem:[%s6951_s6 + $0x274] ss:$8 sps:$4 sm:$0xff]  }
 0x451   : > { %4196 = vmatpush1.bf16.msra.mxu0 %v4955_v12  ;;  %v5018_v12 = vld [vmem:[%s6951_s6 + $0x270] ss:$8 sps:$4 sm:$0xff]  }
 0x452   : > { %4197 = vmatprep.subr.bf16.mxu0 %v4960_v15  ;;  %v5023_v15 = vld [vmem:[%s6951_s6 + $0x284] ss:$8 sps:$4 sm:$0xff]  }
 0x455   : > { %4198 = vmatpush1.bf16.msra.mxu0 %v4958_v11  ;;  %v5021_v11 = vld [vmem:[%s6951_s6 + $0x280] ss:$8 sps:$4 sm:$0xff]  }
 0x456   : > { %4199 = vmatprep.subr.bf16.mxu0 %v4963_v9  ;;  %v5026_v9 = vld [vmem:[%s6951_s6 + $0x294] ss:$8 sps:$4 sm:$0xff]  }
 0x459   : > { %4200 = vmatpush1.bf16.msra.mxu0 %v4961_v26  ;;  %v5024_v26 = vld [vmem:[%s6951_s6 + $0x290] ss:$8 sps:$4 sm:$0xff]  }
 0x45a   : > { %4201 = vmatprep.subr.bf16.mxu0 %v4966_v62  ;;  %v5029_v62 = vld [vmem:[%s6951_s6 + $0x2a4] ss:$8 sps:$4 sm:$0xff]  }
 0x45d   : > { %4202 = vmatpush1.bf16.msra.mxu0 %v4964_v61  ;;  %v5027_v61 = vld [vmem:[%s6951_s6 + $0x2a0] ss:$8 sps:$4 sm:$0xff]  }
 0x45e   : > { %4203 = vmatprep.subr.bf16.mxu0 %v4969_v43  ;;  %v5032_v43 = vld [vmem:[%s6951_s6 + $0x2b4] ss:$8 sps:$4 sm:$0xff]  }
 0x45f   : > { %v6621_v2 = vpop.f32.mrb[68].mxu0  ;;  %v6623_v63 = vpop.f32.mrb[196].mxu1 }
 0x460   : > { %v3308_v22 = vpop.f32.mrb[69].mxu0  ;;  %v6625_v30 = vpop.f32.mrb[197].mxu1 }
 0x461   : > { %v3310_v19 = vpop.f32.mrb[70].mxu0  ;;  %v3351_v24 = vpop.f32.mrb[198].mxu1  ;;  %4204 = vmatpush1.bf16.msra.mxu0 %v4967_v48  ;;  %v3309_v45 = vadd.f32 %v3308_v22, %v2853_v18  ;;  %v5030_v48 = vld [vmem:[%s6951_s6 + $0x2b0] ss:$8 sps:$4 sm:$0xff]   ;;  %v5033_v22 = vld [vmem:[%s6951_s6 + $0x2c0] ss:$8 sps:$4 sm:$0xff]  }
 0x462   : > { %v3311_v34 = vpop.f32.mrb[71].mxu0  ;;  %v3352_v58 = vpop.f32.mrb[199].mxu1  ;;  %4205 = vmatprep.subr.bf16.mxu0 %v4972_v38  ;;  %v5035_v38 = vld [vmem:[%s6951_s6 + $0x2c4] ss:$8 sps:$4 sm:$0xff]   ;;  %v2848_v19 = vsub.s32 4, %v6560_v42 }
 0x463   : > { %v3359_v36 = vmax.f32 %v3309_v45, 0.0  ;;  %v5038_v24 = vld [vmem:[%s6951_s6 + $0x2d4] ss:$8 sps:$4 sm:$0xff]   ;;  %v5036_v34 = vld [vmem:[%s6951_s6 + $0x2d0] ss:$8 sps:$4 sm:$0xff]  }
 0x464   : > { %v2849_v58 = vrot.slane %v6566_v33, %v2848_v19  ;;  %v5054_v18 = vld [vmem:[%s6951_s6 + $0x330] ss:$8 sps:$4 sm:$0xff]  }
 0x465   : > { %4206 = vmatpush1.bf16.msra.mxu0 %v4970_v53  ;;  %v3367_v1 = vpack.c.bf16 %v3359_v36, %v3359_v36  ;;  %v2860_v53 = vsub.s32 7, %v6560_v42  ;;  %v5060_v45 = vld [vmem:[%s6951_s6 + $0x350] ss:$8 sps:$4 sm:$0xff]  }
 0x466   : > { %4207 = vmatprep.subr.bf16.mxu0 %v4975_v10  ;;  %v5041_v10 = vld [vmem:[%s6951_s6 + $0x2e4] ss:$8 sps:$4 sm:$0xff]   ;;  %v5066_v36 = vld [vmem:[%s6951_s6 + $0x370] ss:$8 sps:$4 sm:$0xff]  }
 0x469   : > { %4208 = vmatpush1.bf16.msra.mxu0 %v4973_v27  ;;  %v2861_v27 = vrot.slane %v6566_v33, %v2860_v53 }
 0x46a   : > { %4209 = vmatprep.subr.bf16.mxu0 %v4978_v51  ;;  %v5039_v51 = vld [vmem:[%s6951_s6 + $0x2e0] ss:$8 sps:$4 sm:$0xff]  }
 0x46d   : > { %4210 = vmatpush1.bf16.msra.mxu0 %v4976_v59  ;;  %v3307_v59 = vadd.f32 %v6621_v2, %v2849_v58  ;;  %v5045_v2 = vld [vmem:[%s6951_s6 + $0x300] ss:$8 sps:$4 sm:$0xff]  }
 0x46e   : > { %4211 = vmatprep.subr.bf16.mxu0 %v4981_v17  ;;  %v5044_v17 = vld [vmem:[%s6951_s6 + $0x2f4] ss:$8 sps:$4 sm:$0xff]  }
 0x471   : > { %4212 = vmatpush1.bf16.msra.mxu0 %v4979_v46  ;;  %v3350_v46 = vadd.f32 %v6625_v30, %v2861_v27  ;;  %v5050_v30 = vld [vmem:[%s6951_s6 + $0x314] ss:$8 sps:$4 sm:$0xff]  }
 0x472   : > { %4213 = vmatprep.subr.bf16.mxu0 %v4984_v25  ;;  %v5042_v25 = vld [vmem:[%s6951_s6 + $0x2f0] ss:$8 sps:$4 sm:$0xff]  }
 0x475   : > { %4214 = vmatpush1.bf16.msra.mxu0 %v4982_v4  ;;  %v3358_v4 = vmax.f32 %v3307_v59, 0.0 }
 0x476   : > { %4215 = vmatprep.subr.bf16.mxu0 %v4987_v37  ;;  %v5047_v37 = vld [vmem:[%s6951_s6 + $0x304] ss:$8 sps:$4 sm:$0xff]  }
 0x477   : > { %v3366_v14 = vpack.c.bf16 %v3358_v4, %v3358_v4 }
 0x479   : > { %4216 = vmatpush1.bf16.msra.mxu0 %v4985_v31  ;;  %v3361_v31 = vmax.f32 %v3350_v46, 0.0 }
 0x47a   : > { %4217 = vmatprep.subr.bf16.mxu0 %v4990_v47 }
 0x47b   : > { %v3369_v47 = vpack.c.bf16 %v3361_v31, %v3361_v31 }
 0x47d   : > { %4218 = vmatpush1.bf16.msra.mxu0 %v4988_v32  ;;  %v5053_v32 = vld [vmem:[%s6951_s6 + $0x324] ss:$8 sps:$4 sm:$0xff]  }
 0x47e   : > { %4219 = vmatprep.subr.bf16.mxu0 %v4993_v7  ;;  %v5056_v7 = vld [vmem:[%s6951_s6 + $0x334] ss:$8 sps:$4 sm:$0xff]  }
 0x481   : > { %4220 = vmatpush1.bf16.msra.mxu0 %v4991_v56  ;;  %v5059_v56 = vld [vmem:[%s6951_s6 + $0x344] ss:$8 sps:$4 sm:$0xff]  }
 0x482   : > { %4221 = vmatprep.subr.bf16.mxu0 %v4996_v16  ;;  %v5062_v16 = vld [vmem:[%s6951_s6 + $0x354] ss:$8 sps:$4 sm:$0xff]  }
 0x485   : > { %4222 = vmatpush1.bf16.msra.mxu0 %v4994_v60  ;;  %v5065_v60 = vld [vmem:[%s6951_s6 + $0x364] ss:$8 sps:$4 sm:$0xff]  }
 0x486   : > { %4232 = vmatprep.subr.bf16.mxu0 %v4999_v0  ;;  %v5068_v0 = vld [vmem:[%s6951_s6 + $0x374] ss:$8 sps:$4 sm:$0xff]  }
 0x488   : > { %4224 = vmatmul.mubr.bf16.vlgmr.msra.gmra.mrb[72].mxu0 %v3364_v49  ;;  %v5069_v49 = vld [vmem:[%s6951_s6 + $0x380] ss:$8 sps:$4 sm:$0xff]  }
 0x489   : > { %4233 = vmatpush1.bf16.msra.mxu0 %v4997_v6  ;;  %4264 = vmatprep.mubr.bf16.mxu0 %v3367_v1  ;;  %v5071_v6 = vld [vmem:[%s6951_s6 + $0x384] ss:$8 sps:$4 sm:$0xff]   ;;  %v5072_v1 = vld [vmem:[%s6951_s6 + $0x390] ss:$8 sps:$4 sm:$0xff]  }
 0x48a   : > { %4234 = vmatprep.subr.bf16.mxu0 %v5002_v44  ;;  %v5074_v44 = vld [vmem:[%s6951_s6 + $0x394] ss:$8 sps:$4 sm:$0xff]  }
 0x48d   : > { %4235 = vmatpush1.bf16.msra.mxu0 %v5000_v8  ;;  %v5077_v8 = vld [vmem:[%s6951_s6 + $0x3a4] ss:$8 sps:$4 sm:$0xff]  }
 0x48e   : > { %4236 = vmatprep.subr.bf16.mxu0 %v5005_v5  ;;  %v5075_v5 = vld [vmem:[%s6951_s6 + $0x3a0] ss:$8 sps:$4 sm:$0xff]  }
 0x491   : > { %4237 = vmatpush1.bf16.msra.mxu0 %v5003_v41  ;;  %v5080_v41 = vld [vmem:[%s6951_s6 + $0x3b4] ss:$8 sps:$4 sm:$0xff]  }
 0x492   : > { %4238 = vmatprep.subr.bf16.mxu0 %v5008_v13  ;;  %v5078_v13 = vld [vmem:[%s6951_s6 + $0x3b0] ss:$8 sps:$4 sm:$0xff]  }
 0x495   : > { %4239 = vmatpush1.bf16.msra.mxu0 %v5006_v50  ;;  %v5083_v50 = vld [vmem:[%s6951_s6 + $0x3c4] ss:$8 sps:$4 sm:$0xff]  }
 0x496   : > { %4240 = vmatprep.subr.bf16.mxu0 %v5011_v35  ;;  %v5081_v35 = vld [vmem:[%s6951_s6 + $0x3c0] ss:$8 sps:$4 sm:$0xff]  }
 0x499   : > { %4241 = vmatpush1.bf16.msra.mxu0 %v5009_v55  ;;  %v2856_v55 = vsub.s32 6, %v6560_v42 }
 0x49a   : > { %4242 = vmatprep.subr.bf16.mxu0 %v5014_v39  ;;  %v5086_v39 = vld [vmem:[%s6951_s6 + $0x3d4] ss:$8 sps:$4 sm:$0xff]  }
 0x49d   : > { %4243 = vmatpush1.bf16.msra.mxu0 %v5012_v57  ;;  %v5084_v57 = vld [vmem:[%s6951_s6 + $0x3d0] ss:$8 sps:$4 sm:$0xff]  }
 0x49e   : > { %4244 = vmatprep.subr.bf16.mxu0 %v5017_v29  ;;  %v2857_v29 = vrot.slane %v6566_v33, %v2856_v55  ;;  %v5090_v33 = vld [vmem:[%s6951_s6 + $0x3f0] ss:$8 sps:$4 sm:$0xff]  }
 0x4a1   : > { %4245 = vmatpush1.bf16.msra.mxu0 %v5015_v40  ;;  %v5089_v40 = vld [vmem:[%s6951_s6 + $0x3e4] ss:$8 sps:$4 sm:$0xff]  }
 0x4a2   : > { %4246 = vmatprep.subr.bf16.mxu0 %v5020_v54  ;;  %v5087_v54 = vld [vmem:[%s6951_s6 + $0x3e0] ss:$8 sps:$4 sm:$0xff]  }
 0x4a5   : > { %4247 = vmatpush1.bf16.msra.mxu0 %v5018_v12  ;;  %v3348_v12 = vadd.f32 %v6623_v63, %v2857_v29  ;;  %v3498_v63 = vld [vmem:[%s6952_s7] sm:$0x3] }
 0x4a6   : > { %4248 = vmatprep.subr.bf16.mxu0 %v5023_v15  ;;  %v5092_v15 = vld [vmem:[%s6951_s6 + $0x3f4] ss:$8 sps:$4 sm:$0xff]  }
 0x4a9   : > { %4249 = vmatpush1.bf16.msra.mxu0 %v5021_v11  ;;  %v3360_v11 = vmax.f32 %v3348_v12, 0.0 }
 0x4aa   : > { %4250 = vmatprep.subr.bf16.mxu0 %v5026_v9 }
 0x4ab   : > { %v3368_v9 = vpack.c.bf16 %v3360_v11, %v3360_v11 }
 0x4ad   : > { %4251 = vmatpush1.bf16.msra.mxu0 %v5024_v26  ;;  %v3503_v26 = vrot.slane %v3498_v63, %v2832_v20 }
 0x4ae   : > { %4252 = vmatprep.subr.bf16.mxu0 %v5029_v62  ;;  %v3507_v62 = vrot.slane %v3498_v63, %v2836_v23 }
 0x4b1   : > { %4253 = vmatpush1.bf16.msra.mxu0 %v5027_v61  ;;  %v4321_v61 = vstv %s341_s26  ;;  %s5117_s26 = sshll.u32 %s5199_s25, 4  ;;  %s5118_s26 = int_to_ptr.vmem [resolvable:$false] %s5117_s26 }
 0x4b2   : > { %4254 = vmatprep.subr.bf16.mxu0 %v5032_v43  ;;  %vm4322_vm12 = vcmp.lt.s32.totalorder %v6560_v42, %v4321_v61  ;;  %s5119_s28 = scalar_lea.vmem %s5118_s26, 512  ;;  %p5120_p6 = scmp.lt.s32.totalorder %s6900_s16, %s5118_s26 }
 0x4b3   : > { %p5121_p7 = scmp.lt.s32.totalorder %s5119_s28, %s5113_s24 }
 0x4b5   : > { %4255 = vmatpush1.bf16.msra.mxu0 %v5030_v48  ;;  %p5122_p8 = por %p5121_p7, %p5120_p6 }
 0x4b6   : > { %4256 = vmatprep.subr.bf16.mxu0 %v5035_v38 }
 0x4b7   : > { %p5123_p10 = pnand %p5122_p8, %p5116_p5 }
 0x4b9   : > { %4257 = vmatpush1.bf16.msra.mxu0 %v5033_v22 }
 0x4ba   : > { %4258 = vmatprep.subr.bf16.mxu0 %v5038_v24 }
 0x4bd   : > { %4259 = vmatpush1.bf16.msra.mxu0 %v5036_v34 }
 0x4be   : > { %4260 = vmatprep.subr.bf16.mxu0 %v5041_v10 }
 0x4c1   : > { %4261 = vmatpush1.bf16.msra.mxu0 %v5039_v51 }
 0x4c2   : > { %4262 = vmatprep.subr.bf16.mxu0 %v5044_v17 }
 0x4c5   : > { %4263 = vmatpush1.bf16.msra.mxu0 %v5042_v25 }
 0x4c6   : > { %4273 = vmatprep.subr.bf16.mxu0 %v5047_v37 }
 0x4c8   : > { %4265 = vmatmul.mubr.bf16.vlgmr.msra.gmra.mrb[72].mxu0 %v3366_v14 }
 0x4c9   : > { %4274 = vmatpush1.bf16.msra.mxu0 %v5045_v2  ;;  %4305 = vmatprep.mubr.bf16.mxu0 %v3369_v47 }
 0x4ca   : > { %4275 = vmatprep.subr.bf16.mxu0 %v5050_v30 }
 0x4cd   : > { %4276 = vmatpush1.bf16.msra.mxu0 %v5048_v52 }
 0x4ce   : > { %4277 = vmatprep.subr.bf16.mxu0 %v5053_v32 }
 0x4d1   : > { %4278 = vmatpush1.bf16.msra.mxu0 %v5051_v28 }
 0x4d2   : > { %4279 = vmatprep.subr.bf16.mxu0 %v5056_v7 }
 0x4d5   : > { %4280 = vmatpush1.bf16.msra.mxu0 %v5054_v18 }
 0x4d6   : > { %4281 = vmatprep.subr.bf16.mxu0 %v5059_v56 }
 0x4d9   : > { %4282 = vmatpush1.bf16.msra.mxu0 %v5057_v21 }
 0x4da   : > { %4283 = vmatprep.subr.bf16.mxu0 %v5062_v16 }
 0x4dd   : > { %4284 = vmatpush1.bf16.msra.mxu0 %v5060_v45 }
 0x4de   : > { %4285 = vmatprep.subr.bf16.mxu0 %v5065_v60 }
 0x4e1   : > { %4286 = vmatpush1.bf16.msra.mxu0 %v5063_v3 }
 0x4e2   : > { %4287 = vmatprep.subr.bf16.mxu0 %v5068_v0 }
 0x4e5   : > { %4288 = vmatpush1.bf16.msra.mxu0 %v5066_v36 }
 0x4e6   : > { %4289 = vmatprep.subr.bf16.mxu0 %v5071_v6 }
 0x4e9   : > { %4290 = vmatpush1.bf16.msra.mxu0 %v5069_v49 }
 0x4ea   : > { %4291 = vmatprep.subr.bf16.mxu0 %v5074_v44 }
 0x4ed   : > { %4292 = vmatpush1.bf16.msra.mxu0 %v5072_v1 }
 0x4ee   : > { %4293 = vmatprep.subr.bf16.mxu0 %v5077_v8 }
 0x4f1   : > { %4294 = vmatpush1.bf16.msra.mxu0 %v5075_v5 }
 0x4f2   : > { %4295 = vmatprep.subr.bf16.mxu0 %v5080_v41 }
 0x4f5   : > { %4296 = vmatpush1.bf16.msra.mxu0 %v5078_v13 }
 0x4f6   : > { %4297 = vmatprep.subr.bf16.mxu0 %v5083_v50 }
 0x4f9   : > { %4298 = vmatpush1.bf16.msra.mxu0 %v5081_v35 }
 0x4fa   : > { %4299 = vmatprep.subr.bf16.mxu0 %v5086_v39 }
 0x4fd   : > { %4300 = vmatpush1.bf16.msra.mxu0 %v5084_v57 }
 0x4fe   : > { %4301 = vmatprep.subr.bf16.mxu0 %v5089_v40 }
 0x501   : > { %4302 = vmatpush1.bf16.msra.mxu0 %v5087_v54 }
 0x502   : > { %4303 = vmatprep.subr.bf16.mxu0 %v5092_v15 }
 0x505   : > { %4304 = vmatpush1.bf16.msra.mxu0 %v5090_v33 }
 0x508   : > { %4306 = vmatmul.mubr.bf16.vlgmr.msra.gmra.mrb[72].mxu0 %v3368_v9 }
 0x5db   : > { %v4307_v43 = vpop.f32.mrb[72].mxu0 }
 0x5dc   : > { %v4770_v48 = vadd.f32 %v4307_v43, %v3503_v26  ;;  %v4309_v38 = vpop.f32.mrb[73].mxu0 }
 0x5dd   : > { %v4771_v22 = vadd.f32 %v4309_v38, %v3507_v62  ;;  %v4311_v19 = vpop.f32.mrb[74].mxu0 }
 0x5de   : > { %v4314_v24 = vmax.f32 %v4770_v48, 0.0  ;;  %v4312_v53 = vpop.f32.mrb[75].mxu0 }
 0x5df   : > { %v4315_v34 = vmax.f32 %v4771_v22, 0.0 }
 0x5e0   : > { %v4325_v58 = vsel %vm4322_vm12, %v4314_v24, 0.0 }
 0x5e1   : > { %4327 = vst [vmem:[%s323_s15] sm:$0xff] %v4325_v58  ;;  %v4326_v42 = vsel %vm4322_vm12, %v4315_v34, 0.0 }
 0x5e2   : > { %4328 = vst [vmem:[%s323_s15 + $0x8] sm:$0xff] %v4326_v42 }
 0x5e3   : > { %5126 = shalt.err (!%p5123_p10)
}
 0x5e4   : > { %s5127_s27 = scalar_lea.hbm %s6898_s23, 256  ;;  %s5131_s9 = scalar_lea.hbm %s6953_s8, 512 }
 0x5e5   : > { %p5128_p11 = scmp.ne.s32.totalorder %s6898_s23, %s5127_s27  ;;  %p5132_p1 = scmp.lt.u32.totalorder %s6898_s23, %s6953_s8 }
 0x5e6   : > { %p5133_p2 = scmp.lt.u32.totalorder %s5131_s9, %s5127_s27  ;;  %p5135_p4 = scmp.lt.u32.totalorder %s5127_s27, %s6898_s23 }
 0x5e7   : > { %p5129_p12 = pnand %p5128_p11, %p5288_p9 }
 0x5e8   : > { %p5134_p3 = por %p5133_p2, %p5132_p1 }
 0x5e9   : > { %p5130_p0 = pneg %p5129_p12 }
 0x5ea   : > { %p5136_p5 = por %p5135_p4, %p5134_p3 }
 0x5ec   : > { %p5137_p6 = pnand %p5136_p5, %p5130_p0 }
 0x5ee   : > { %5140 = shalt.err (!%p5137_p6)
}
 0x5ef   : > { %4784 = dma.vmem_to_hbm [thread:$0]  (%p5288_p9), %s6900_s16, 256, %s6898_s23, %s4330_s12  }
 0x5f0 PF: > { %p4790_p7 = scmp.ge.s32.totalorder %s5193_s14, 2  ;;  %s4358_s20 = sand.u32 1, %s5173_s10  }
 0x5f1   : > { %s4359_s24 = scalar_lea.sflag [#allocation6], %s4358_s20 }
 0x5f2   : > { %p4787_p8 = pnand %p4790_p7, %p5295_p13 }
 0x5f4   : > { %5168 = dma.done.wait (!%p4787_p8), %s4359_s24, 256  }
 0x5f5   : > { %5170 = vsyncadd (!%p4787_p8), %s4359_s24, 4294967040  ;;  %s27_s14 = sadd.s32 1, %s5193_s14   ;;  %s6967_s10 = smov %s5177_s11 }
 0x5f6   : > { %p24_p10 = scmp.ge.s32.totalorder %s27_s14, 4   ;;  %s6968_s11 = smov %s5181_s0 }
 0x5f7   : > { %s6969_s0 = smov %s5301_s22  ;;  %s6970_s12 = smov %s5189_s13 }
 0x5f8   : > { %s6971_s13 = smov %s6973_s17  ;;  %26 = sbr.rel (!%p24_p10) target bundleno = 19 (0x13), region = 98 }
 0x5ff   :  { %4364 = vsyncpa [#allocation6], 1 }
 0x600   :  { %4366 = vsyncpa [#allocation6 + $0x1], 1 }

</bundles_post_ra>
